<compile_context>
chip_gen: v6e
topology: v6e:2x2x1
jax: 0.10.0
libtpu: 0.0.40
codegen_flags: <defaults>
</compile_context>

<pallas_src>
import jax
import jax.numpy as jnp
from jax import lax
from jax.experimental import pallas as pl
from jax.experimental.pallas import tpu as pltpu

EPS = 1e-5


# ---------------------------------------------------------------------------
# Fused Pallas kernels (one batch element per grid step)
# ---------------------------------------------------------------------------
def _conv3x3_acc(src_ref, w_ref, H, W, C, Cout):
    """3x3 conv from a (H+2, W+2, C) zero-haloed VMEM ref -> (H*W, Cout) f32."""
    acc = jnp.zeros((H * W, Cout), jnp.float32)
    for kh in range(3):
        for kw in range(3):
            patch = src_ref[kh:kh + H, kw:kw + W, :].reshape(H * W, C)
            acc = acc + jnp.dot(patch, w_ref[kh * 3 + kw],
                                preferred_element_type=jnp.float32)
    return acc


def _double_conv_proj_kernel(x_ref, w1_ref, s1_ref, b1_ref,
                             w2_ref, s2_ref, b2_ref,
                             wc_ref, sc_ref, bc_ref,
                             o_ref, xpad_ref, hpad_ref):
    """Cin != Cout: conv3x3+BN+ReLU -> conv3x3+BN+ReLU -> + (1x1 conv + BN)(x)."""
    _, H, W, Cout = o_ref.shape
    Cin = x_ref.shape[-1]

    # in-kernel halo (no host-side jnp.pad): zero scratch, copy interior only
    xpad_ref[...] = jnp.zeros_like(xpad_ref)
    hpad_ref[...] = jnp.zeros_like(hpad_ref)
    xpad_ref[1:H + 1, 1:W + 1, :] = x_ref[0]

    # residual branch first (independent MXU work): 1x1 conv + folded BN
    res = jnp.dot(x_ref[0].reshape(H * W, Cin), wc_ref[...],
                  preferred_element_type=jnp.float32)
    res = res * sc_ref[...] + bc_ref[...]

    # conv1 3x3 + folded BN + ReLU
    acc1 = _conv3x3_acc(xpad_ref, w1_ref, H, W, Cin, Cout)
    h = jnp.maximum(acc1 * s1_ref[...] + b1_ref[...], 0.0)

    # stage h (with zero halo) in VMEM -- no HBM round trip between the convs
    hpad_ref[1:H + 1, 1:W + 1, :] = h.reshape(H, W, Cout)

    # conv2 3x3 + folded BN + ReLU
    acc2 = _conv3x3_acc(hpad_ref, w2_ref, H, W, Cout, Cout)
    y = jnp.maximum(acc2 * s2_ref[...] + b2_ref[...], 0.0)

    o_ref[0] = (y + res).reshape(H, W, Cout).astype(o_ref.dtype)


def _double_conv_id_kernel(x_ref, w1_ref, s1_ref, b1_ref,
                           w2_ref, s2_ref, b2_ref,
                           o_ref, pad_ref):
    """Cin == Cout: identity residual (channel_conv skipped in PyTorch).
    Single padded scratch is reused for x (conv1 input) and then h (conv2
    input), halving scratch VMEM vs. the projection path."""
    _, H, W, Cout = o_ref.shape
    Cin = x_ref.shape[-1]

    pad_ref[...] = jnp.zeros_like(pad_ref)
    pad_ref[1:H + 1, 1:W + 1, :] = x_ref[0]

    acc1 = _conv3x3_acc(pad_ref, w1_ref, H, W, Cin, Cout)
    h = jnp.maximum(acc1 * s1_ref[...] + b1_ref[...], 0.0)

    # x interior is fully consumed by conv1; reuse the same scratch for h.
    pad_ref[1:H + 1, 1:W + 1, :] = h.reshape(H, W, Cout)

    acc2 = _conv3x3_acc(pad_ref, w2_ref, H, W, Cout, Cout)
    y = jnp.maximum(acc2 * s2_ref[...] + b2_ref[...], 0.0)

    out = y + x_ref[0].reshape(H * W, Cin)
    o_ref[0] = out.reshape(H, W, Cout).astype(o_ref.dtype)


# ---------------------------------------------------------------------------
# Wrapper (layout transpose, BN folding, pallas_call plumbing)
# ---------------------------------------------------------------------------
def _fold_bn(gamma, beta, mean, var, conv_bias=None):
    scale = gamma / jnp.sqrt(var + EPS)
    if conv_bias is None:
        bias = beta - scale * mean
    else:
        bias = scale * (conv_bias - mean) + beta
    return scale, bias


def _oihw_to_taps(w):
    # (Cout, Cin, 3, 3) -> (9, Cin, Cout), tap index = kh*3 + kw
    return jnp.transpose(w, (2, 3, 1, 0)).reshape(9, w.shape[1], w.shape[0])


def double_conv_forward(x_nchw, p):
    x = jnp.transpose(x_nchw, (0, 2, 3, 1)).astype(jnp.float32)   # NHWC
    N, H, W, Cin = x.shape
    Cout = p["w1"].shape[0]

    w1 = _oihw_to_taps(p["w1"])                                   # (9, Cin, Cout)
    w2 = _oihw_to_taps(p["w2"])                                   # (9, Cout, Cout)
    s1, b1 = _fold_bn(p["bn1_g"], p["bn1_b"], p["bn1_m"], p["bn1_v"], p["b1"])
    s2, b2 = _fold_bn(p["bn2_g"], p["bn2_b"], p["bn2_m"], p["bn2_v"], p["b2"])

    proj = (Cin != Cout)

    flops = 2 * N * H * W * (9 * Cin * Cout + 9 * Cout * Cout
                             + (Cin * Cout if proj else 0))
    bytes_accessed = 4 * (int(x.size) + N * H * W * Cout
                          + int(w1.size) + int(w2.size)
                          + (Cin * Cout if proj else 0))
    cost = pl.CostEstimate(flops=flops, transcendentals=0,
                           bytes_accessed=bytes_accessed)

    cparams = pltpu.CompilerParams(
        dimension_semantics=("parallel",),          # batch axis -> megacore
        vmem_limit_bytes=48 * 1024 * 1024,          # raise default scoped VMEM
    )

    base_in_specs = [
        pl.BlockSpec((1, H, W, Cin), lambda n: (n, 0, 0, 0)),
        pl.BlockSpec((9, Cin, Cout), lambda n: (0, 0, 0)),
        pl.BlockSpec((1, Cout), lambda n: (0, 0)),
        pl.BlockSpec((1, Cout), lambda n: (0, 0)),
        pl.BlockSpec((9, Cout, Cout), lambda n: (0, 0, 0)),
        pl.BlockSpec((1, Cout), lambda n: (0, 0)),
        pl.BlockSpec((1, Cout), lambda n: (0, 0)),
    ]
    out_spec = pl.BlockSpec((1, H, W, Cout), lambda n: (n, 0, 0, 0))
    out_shape = jax.ShapeDtypeStruct((N, H, W, Cout), jnp.float32)

    args = [x, w1, s1.reshape(1, Cout), b1.reshape(1, Cout),
            w2, s2.reshape(1, Cout), b2.reshape(1, Cout)]

    if proj:
        wc = jnp.transpose(p["wc"][:, :, 0, 0], (1, 0))           # (Cin, Cout)
        sc, bc = _fold_bn(p["bnc_g"], p["bnc_b"], p["bnc_m"], p["bnc_v"])
        in_specs = base_in_specs + [
            pl.BlockSpec((Cin, Cout), lambda n: (0, 0)),
            pl.BlockSpec((1, Cout), lambda n: (0, 0)),
            pl.BlockSpec((1, Cout), lambda n: (0, 0)),
        ]
        scratch = [pltpu.VMEM((H + 2, W + 2, Cin), jnp.float32),   # padded x
                   pltpu.VMEM((H + 2, W + 2, Cout), jnp.float32)]  # padded h
        out = pl.pallas_call(
            _double_conv_proj_kernel,
            out_shape=out_shape, grid=(N,),
            in_specs=in_specs, out_specs=out_spec, scratch_shapes=scratch,
            compiler_params=cparams, cost_estimate=cost,
        )(*args, wc, sc.reshape(1, Cout), bc.reshape(1, Cout))
    else:
        scratch = [pltpu.VMEM((H + 2, W + 2, Cout), jnp.float32)]  # shared pad
        out = pl.pallas_call(
            _double_conv_id_kernel,
            out_shape=out_shape, grid=(N,),
            in_specs=base_in_specs, out_specs=out_spec, scratch_shapes=scratch,
            compiler_params=cparams, cost_estimate=cost,
        )(*args)

    return jnp.transpose(out, (0, 3, 1, 2))                        # back to NCHW


# ---------------------------------------------------------------------------
# Deterministic synthetic parameters + pure-JAX reference
# ---------------------------------------------------------------------------
def init_params(key, in_ch, out_ch):
    ks = jax.random.split(key, 17)
    return {
        "w1": 0.1 * jax.random.normal(ks[0], (out_ch, in_ch, 3, 3), jnp.float32),
        "b1": 0.1 * jax.random.normal(ks[1], (out_ch,), jnp.float32),
        "bn1_g": 1.0 + 0.1 * jax.random.normal(ks[2], (out_ch,), jnp.float32),
        "bn1_b": 0.1 * jax.random.normal(ks[3], (out_ch,), jnp.float32),
        "bn1_m": 0.1 * jax.random.normal(ks[4], (out_ch,), jnp.float32),
        "bn1_v": 0.5 + jnp.abs(jax.random.normal(ks[5], (out_ch,), jnp.float32)),
        "w2": 0.1 * jax.random.normal(ks[6], (out_ch, out_ch, 3, 3), jnp.float32),
        "b2": 0.1 * jax.random.normal(ks[7], (out_ch,), jnp.float32),
        "bn2_g": 1.0 + 0.1 * jax.random.normal(ks[8], (out_ch,), jnp.float32),
        "bn2_b": 0.1 * jax.random.normal(ks[9], (out_ch,), jnp.float32),
        "bn2_m": 0.1 * jax.random.normal(ks[10], (out_ch,), jnp.float32),
        "bn2_v": 0.5 + jnp.abs(jax.random.normal(ks[11], (out_ch,), jnp.float32)),
        "wc": 0.1 * jax.random.normal(ks[12], (out_ch, in_ch, 1, 1), jnp.float32),
        "bnc_g": 1.0 + 0.1 * jax.random.normal(ks[13], (out_ch,), jnp.float32),
        "bnc_b": 0.1 * jax.random.normal(ks[14], (out_ch,), jnp.float32),
        "bnc_m": 0.1 * jax.random.normal(ks[15], (out_ch,), jnp.float32),
        "bnc_v": 0.5 + jnp.abs(jax.random.normal(ks[16], (out_ch,), jnp.float32)),
    }


def reference_forward(x, p):
    def conv(inp, w, pad):
        return lax.conv_general_dilated(
            inp, w, (1, 1), ((pad, pad), (pad, pad)),
            dimension_numbers=("NCHW", "OIHW", "NCHW"))

    def bn(inp, g, b, m, v):
        g, b, m, v = (t[None, :, None, None] for t in (g, b, m, v))
        return g * (inp - m) / jnp.sqrt(v + EPS) + b

    h = conv(x, p["w1"], 1) + p["b1"][None, :, None, None]
    h = jnp.maximum(bn(h, p["bn1_g"], p["bn1_b"], p["bn1_m"], p["bn1_v"]), 0.0)
    h = conv(h, p["w2"], 1) + p["b2"][None, :, None, None]
    h = jnp.maximum(bn(h, p["bn2_g"], p["bn2_b"], p["bn2_m"], p["bn2_v"]), 0.0)
    if x.shape[1] != h.shape[1]:
        r = conv(x, p["wc"], 0)
        r = bn(r, p["bnc_g"], p["bnc_b"], p["bnc_m"], p["bnc_v"])
    else:
        r = x
    return h + r


# ---------------------------------------------------------------------------
if __name__ == "__main__":
    key = jax.random.PRNGKey(0)
    kx, kp, kx2, kp2 = jax.random.split(key, 4)

    # --- projection-residual path (in_ch != out_ch): the common SAR-UNet case
    x = jax.random.normal(kx, (2, 4, 16, 16), jnp.float32)        # NCHW
    params = init_params(kp, 4, 8)
    out = jax.block_until_ready(double_conv_forward(x, params))
    ref = reference_forward(x, params)
    assert out.shape == ref.shape == (2, 8, 16, 16)
    assert jnp.allclose(out, ref, atol=1e-4, rtol=1e-4), (
        float(jnp.max(jnp.abs(out - ref))))

    # --- identity-residual path (in_ch == out_ch): skips 1x1 conv, 1 scratch
    x2 = jax.random.normal(kx2, (2, 8, 16, 16), jnp.float32)
    params2 = init_params(kp2, 8, 8)
    out2 = jax.block_until_ready(double_conv_forward(x2, params2))
    ref2 = reference_forward(x2, params2)
    assert out2.shape == ref2.shape == (2, 8, 16, 16)
    assert jnp.allclose(out2, ref2, atol=1e-4, rtol=1e-4), (
        float(jnp.max(jnp.abs(out2 - ref2))))

    print("KERNEL_OK")
</pallas_src>

<mosaic_0001>
module attributes {stable_mosaic.version = 11 : i64} {
  func.func @_double_conv_proj_kernel(%arg0: i32, %arg1: memref<1x16x16x4xf32, #tpu.memory_space<vmem>>, %arg2: memref<9x4x8xf32, #tpu.memory_space<vmem>>, %arg3: memref<1x8xf32, #tpu.memory_space<vmem>>, %arg4: memref<1x8xf32, #tpu.memory_space<vmem>>, %arg5: memref<9x8x8xf32, #tpu.memory_space<vmem>>, %arg6: memref<1x8xf32, #tpu.memory_space<vmem>>, %arg7: memref<1x8xf32, #tpu.memory_space<vmem>>, %arg8: memref<4x8xf32, #tpu.memory_space<vmem>>, %arg9: memref<1x8xf32, #tpu.memory_space<vmem>>, %arg10: memref<1x8xf32, #tpu.memory_space<vmem>>, %arg11: memref<1x16x16x8xf32, #tpu.memory_space<vmem>>, %arg12: memref<18x18x4xf32, #tpu.memory_space<vmem>>, %arg13: memref<18x18x8xf32, #tpu.memory_space<vmem>>) attributes {dimension_semantics = [#tpu.dimension_semantics<parallel>], iteration_bounds = array<i64: 2>, scalar_prefetch = 0 : i64, scratch_operands = 2 : i64, tpu.core_type = #tpu.core_type<tc>, window_params = [{transform_indices = @transform_0, window_bounds = array<i64: 1, 16, 16, 4>}, {pipeline_mode = #tpu.pipeline_mode<synchronous>, transform_indices = @transform_1, window_bounds = array<i64: 9, 4, 8>}, {pipeline_mode = #tpu.pipeline_mode<synchronous>, transform_indices = @transform_2, window_bounds = array<i64: 1, 8>}, {pipeline_mode = #tpu.pipeline_mode<synchronous>, transform_indices = @transform_3, window_bounds = array<i64: 1, 8>}, {pipeline_mode = #tpu.pipeline_mode<synchronous>, transform_indices = @transform_4, window_bounds = array<i64: 9, 8, 8>}, {pipeline_mode = #tpu.pipeline_mode<synchronous>, transform_indices = @transform_5, window_bounds = array<i64: 1, 8>}, {pipeline_mode = #tpu.pipeline_mode<synchronous>, transform_indices = @transform_6, window_bounds = array<i64: 1, 8>}, {pipeline_mode = #tpu.pipeline_mode<synchronous>, transform_indices = @transform_7, window_bounds = array<i64: 4, 8>}, {pipeline_mode = #tpu.pipeline_mode<synchronous>, transform_indices = @transform_8, window_bounds = array<i64: 1, 8>}, {pipeline_mode = #tpu.pipeline_mode<synchronous>, transform_indices = @transform_9, window_bounds = array<i64: 1, 8>}, {transform_indices = @transform_10, window_bounds = array<i64: 1, 16, 16, 8>}]} {
    %cst = arith.constant 0.000000e+00 : f32
    %0 = vector.broadcast %cst : f32 to vector<18x18x4xf32>
    %c0 = arith.constant 0 : index
    %c0_0 = arith.constant 0 : index
    %c0_1 = arith.constant 0 : index
    %1 = vector.load %arg12[%c0, %c0_0, %c0_1] : memref<18x18x4xf32, #tpu.memory_space<vmem>>, vector<18x18x4xf32>
    tpu.vector_store %arg12[%c0, %c0_0, %c0_1], %0 {strides = array<i32>} : memref<18x18x4xf32, #tpu.memory_space<vmem>>, vector<18x18x4xf32>,
    %cst_2 = arith.constant 0.000000e+00 : f32
    %2 = vector.broadcast %cst_2 : f32 to vector<18x18x8xf32>
    %c0_3 = arith.constant 0 : index
    %c0_4 = arith.constant 0 : index
    %c0_5 = arith.constant 0 : index
    %3 = vector.load %arg13[%c0_3, %c0_4, %c0_5] : memref<18x18x8xf32, #tpu.memory_space<vmem>>, vector<18x18x8xf32>
    tpu.vector_store %arg13[%c0_3, %c0_4, %c0_5], %2 {strides = array<i32>} : memref<18x18x8xf32, #tpu.memory_space<vmem>>, vector<18x18x8xf32>,
    %c0_6 = arith.constant 0 : index
    %c0_7 = arith.constant 0 : index
    %c0_8 = arith.constant 0 : index
    %c0_9 = arith.constant 0 : index
    %4 = vector.load %arg1[%c0_6, %c0_7, %c0_8, %c0_9] : memref<1x16x16x4xf32, #tpu.memory_space<vmem>>, vector<1x16x16x4xf32>
    %5 = vector.shape_cast %4 : vector<1x16x16x4xf32> to vector<16x16x4xf32>
    %c1 = arith.constant 1 : index
    %c1_10 = arith.constant 1 : index
    %c0_11 = arith.constant 0 : index
    %6 = vector.load %arg12[%c1, %c1_10, %c0_11] : memref<18x18x4xf32, #tpu.memory_space<vmem>>, vector<16x16x4xf32>
    tpu.vector_store %arg12[%c1, %c1_10, %c0_11], %5 {strides = array<i32>} : memref<18x18x4xf32, #tpu.memory_space<vmem>>, vector<16x16x4xf32>,
    %c0_12 = arith.constant 0 : index
    %c0_13 = arith.constant 0 : index
    %c0_14 = arith.constant 0 : index
    %c0_15 = arith.constant 0 : index
    %7 = vector.load %arg1[%c0_12, %c0_13, %c0_14, %c0_15] : memref<1x16x16x4xf32, #tpu.memory_space<vmem>>, vector<1x16x16x4xf32>
    %8 = vector.shape_cast %7 : vector<1x16x16x4xf32> to vector<16x16x4xf32>
    %9 = vector.shape_cast %8 : vector<16x16x4xf32> to vector<256x4xf32>
    %c0_16 = arith.constant 0 : index
    %c0_17 = arith.constant 0 : index
    %10 = vector.load %arg8[%c0_16, %c0_17] : memref<4x8xf32, #tpu.memory_space<vmem>>, vector<4x8xf32>
    %cst_18 = arith.constant dense<0.000000e+00> : vector<256x8xf32>
    %11 = tpu.matmul %9, %10, %cst_18 {dimension_numbers = #tpu.dot_dimension_numbers<[1], [0], [0], [1], [0, 0, 1, 1], [], []>} : vector<256x4xf32>, vector<4x8xf32>, vector<256x8xf32> -> vector<256x8xf32>
    %c0_19 = arith.constant 0 : index
    %c0_20 = arith.constant 0 : index
    %12 = vector.load %arg9[%c0_19, %c0_20] : memref<1x8xf32, #tpu.memory_space<vmem>>, vector<1x8xf32>
    %13 = vector.broadcast %12 : vector<1x8xf32> to vector<256x8xf32>
    %14 = arith.mulf %11, %13 : vector<256x8xf32>
    %c0_21 = arith.constant 0 : index
    %c0_22 = arith.constant 0 : index
    %15 = vector.load %arg10[%c0_21, %c0_22] : memref<1x8xf32, #tpu.memory_space<vmem>>, vector<1x8xf32>
    %16 = vector.broadcast %15 : vector<1x8xf32> to vector<256x8xf32>
    %17 = arith.addf %14, %16 : vector<256x8xf32>
    %cst_23 = arith.constant 0.000000e+00 : f32
    %18 = vector.broadcast %cst_23 : f32 to vector<256x8xf32>
    %c0_24 = arith.constant 0 : index
    %c0_25 = arith.constant 0 : index
    %c0_26 = arith.constant 0 : index
    %19 = vector.load %arg12[%c0_24, %c0_25, %c0_26] : memref<18x18x4xf32, #tpu.memory_space<vmem>>, vector<16x16x4xf32>
    %20 = vector.shape_cast %19 : vector<16x16x4xf32> to vector<256x4xf32>
    %c0_27 = arith.constant 0 : index
    %c0_28 = arith.constant 0 : index
    %c0_29 = arith.constant 0 : index
    %21 = vector.load %arg2[%c0_27, %c0_28, %c0_29] : memref<9x4x8xf32, #tpu.memory_space<vmem>>, vector<1x4x8xf32>
    %22 = vector.shape_cast %21 : vector<1x4x8xf32> to vector<4x8xf32>
    %cst_30 = arith.constant dense<0.000000e+00> : vector<256x8xf32>
    %23 = tpu.matmul %20, %22, %cst_30 {dimension_numbers = #tpu.dot_dimension_numbers<[1], [0], [0], [1], [0, 0, 1, 1], [], []>} : vector<256x4xf32>, vector<4x8xf32>, vector<256x8xf32> -> vector<256x8xf32>
    %24 = arith.addf %18, %23 : vector<256x8xf32>
    %c0_31 = arith.constant 0 : index
    %c1_32 = arith.constant 1 : index
    %c0_33 = arith.constant 0 : index
    %25 = vector.load %arg12[%c0_31, %c1_32, %c0_33] : memref<18x18x4xf32, #tpu.memory_space<vmem>>, vector<16x16x4xf32>
    %26 = vector.shape_cast %25 : vector<16x16x4xf32> to vector<256x4xf32>
    %c1_34 = arith.constant 1 : index
    %c0_35 = arith.constant 0 : index
    %c0_36 = arith.constant 0 : index
    %27 = vector.load %arg2[%c1_34, %c0_35, %c0_36] : memref<9x4x8xf32, #tpu.memory_space<vmem>>, vector<1x4x8xf32>
    %28 = vector.shape_cast %27 : vector<1x4x8xf32> to vector<4x8xf32>
    %cst_37 = arith.constant dense<0.000000e+00> : vector<256x8xf32>
    %29 = tpu.matmul %26, %28, %cst_37 {dimension_numbers = #tpu.dot_dimension_numbers<[1], [0], [0], [1], [0, 0, 1, 1], [], []>} : vector<256x4xf32>, vector<4x8xf32>, vector<256x8xf32> -> vector<256x8xf32>
    %30 = arith.addf %24, %29 : vector<256x8xf32>
    %c0_38 = arith.constant 0 : index
    %c2 = arith.constant 2 : index
    %c0_39 = arith.constant 0 : index
    %31 = vector.load %arg12[%c0_38, %c2, %c0_39] : memref<18x18x4xf32, #tpu.memory_space<vmem>>, vector<16x16x4xf32>
    %32 = vector.shape_cast %31 : vector<16x16x4xf32> to vector<256x4xf32>
    %c2_40 = arith.constant 2 : index
    %c0_41 = arith.constant 0 : index
    %c0_42 = arith.constant 0 : index
    %33 = vector.load %arg2[%c2_40, %c0_41, %c0_42] : memref<9x4x8xf32, #tpu.memory_space<vmem>>, vector<1x4x8xf32>
    %34 = vector.shape_cast %33 : vector<1x4x8xf32> to vector<4x8xf32>
    %cst_43 = arith.constant dense<0.000000e+00> : vector<256x8xf32>
    %35 = tpu.matmul %32, %34, %cst_43 {dimension_numbers = #tpu.dot_dimension_numbers<[1], [0], [0], [1], [0, 0, 1, 1], [], []>} : vector<256x4xf32>, vector<4x8xf32>, vector<256x8xf32> -> vector<256x8xf32>
    %36 = arith.addf %30, %35 : vector<256x8xf32>
    %c1_44 = arith.constant 1 : index
    %c0_45 = arith.constant 0 : index
    %c0_46 = arith.constant 0 : index
    %37 = vector.load %arg12[%c1_44, %c0_45, %c0_46] : memref<18x18x4xf32, #tpu.memory_space<vmem>>, vector<16x16x4xf32>
    %38 = vector.shape_cast %37 : vector<16x16x4xf32> to vector<256x4xf32>
    %c3 = arith.constant 3 : index
    %c0_47 = arith.constant 0 : index
    %c0_48 = arith.constant 0 : index
    %39 = vector.load %arg2[%c3, %c0_47, %c0_48] : memref<9x4x8xf32, #tpu.memory_space<vmem>>, vector<1x4x8xf32>
    %40 = vector.shape_cast %39 : vector<1x4x8xf32> to vector<4x8xf32>
    %cst_49 = arith.constant dense<0.000000e+00> : vector<256x8xf32>
    %41 = tpu.matmul %38, %40, %cst_49 {dimension_numbers = #tpu.dot_dimension_numbers<[1], [0], [0], [1], [0, 0, 1, 1], [], []>} : vector<256x4xf32>, vector<4x8xf32>, vector<256x8xf32> -> vector<256x8xf32>
    %42 = arith.addf %36, %41 : vector<256x8xf32>
    %c1_50 = arith.constant 1 : index
    %c1_51 = arith.constant 1 : index
    %c0_52 = arith.constant 0 : index
    %43 = vector.load %arg12[%c1_50, %c1_51, %c0_52] : memref<18x18x4xf32, #tpu.memory_space<vmem>>, vector<16x16x4xf32>
    %44 = vector.shape_cast %43 : vector<16x16x4xf32> to vector<256x4xf32>
    %c4 = arith.constant 4 : index
    %c0_53 = arith.constant 0 : index
    %c0_54 = arith.constant 0 : index
    %45 = vector.load %arg2[%c4, %c0_53, %c0_54] : memref<9x4x8xf32, #tpu.memory_space<vmem>>, vector<1x4x8xf32>
    %46 = vector.shape_cast %45 : vector<1x4x8xf32> to vector<4x8xf32>
    %cst_55 = arith.constant dense<0.000000e+00> : vector<256x8xf32>
    %47 = tpu.matmul %44, %46, %cst_55 {dimension_numbers = #tpu.dot_dimension_numbers<[1], [0], [0], [1], [0, 0, 1, 1], [], []>} : vector<256x4xf32>, vector<4x8xf32>, vector<256x8xf32> -> vector<256x8xf32>
    %48 = arith.addf %42, %47 : vector<256x8xf32>
    %c1_56 = arith.constant 1 : index
    %c2_57 = arith.constant 2 : index
    %c0_58 = arith.constant 0 : index
    %49 = vector.load %arg12[%c1_56, %c2_57, %c0_58] : memref<18x18x4xf32, #tpu.memory_space<vmem>>, vector<16x16x4xf32>
    %50 = vector.shape_cast %49 : vector<16x16x4xf32> to vector<256x4xf32>
    %c5 = arith.constant 5 : index
    %c0_59 = arith.constant 0 : index
    %c0_60 = arith.constant 0 : index
    %51 = vector.load %arg2[%c5, %c0_59, %c0_60] : memref<9x4x8xf32, #tpu.memory_space<vmem>>, vector<1x4x8xf32>
    %52 = vector.shape_cast %51 : vector<1x4x8xf32> to vector<4x8xf32>
    %cst_61 = arith.constant dense<0.000000e+00> : vector<256x8xf32>
    %53 = tpu.matmul %50, %52, %cst_61 {dimension_numbers = #tpu.dot_dimension_numbers<[1], [0], [0], [1], [0, 0, 1, 1], [], []>} : vector<256x4xf32>, vector<4x8xf32>, vector<256x8xf32> -> vector<256x8xf32>
    %54 = arith.addf %48, %53 : vector<256x8xf32>
    %c2_62 = arith.constant 2 : index
    %c0_63 = arith.constant 0 : index
    %c0_64 = arith.constant 0 : index
    %55 = vector.load %arg12[%c2_62, %c0_63, %c0_64] : memref<18x18x4xf32, #tpu.memory_space<vmem>>, vector<16x16x4xf32>
    %56 = vector.shape_cast %55 : vector<16x16x4xf32> to vector<256x4xf32>
    %c6 = arith.constant 6 : index
    %c0_65 = arith.constant 0 : index
    %c0_66 = arith.constant 0 : index
    %57 = vector.load %arg2[%c6, %c0_65, %c0_66] : memref<9x4x8xf32, #tpu.memory_space<vmem>>, vector<1x4x8xf32>
    %58 = vector.shape_cast %57 : vector<1x4x8xf32> to vector<4x8xf32>
    %cst_67 = arith.constant dense<0.000000e+00> : vector<256x8xf32>
    %59 = tpu.matmul %56, %58, %cst_67 {dimension_numbers = #tpu.dot_dimension_numbers<[1], [0], [0], [1], [0, 0, 1, 1], [], []>} : vector<256x4xf32>, vector<4x8xf32>, vector<256x8xf32> -> vector<256x8xf32>
    %60 = arith.addf %54, %59 : vector<256x8xf32>
    %c2_68 = arith.constant 2 : index
    %c1_69 = arith.constant 1 : index
    %c0_70 = arith.constant 0 : index
    %61 = vector.load %arg12[%c2_68, %c1_69, %c0_70] : memref<18x18x4xf32, #tpu.memory_space<vmem>>, vector<16x16x4xf32>
    %62 = vector.shape_cast %61 : vector<16x16x4xf32> to vector<256x4xf32>
    %c7 = arith.constant 7 : index
    %c0_71 = arith.constant 0 : index
    %c0_72 = arith.constant 0 : index
    %63 = vector.load %arg2[%c7, %c0_71, %c0_72] : memref<9x4x8xf32, #tpu.memory_space<vmem>>, vector<1x4x8xf32>
    %64 = vector.shape_cast %63 : vector<1x4x8xf32> to vector<4x8xf32>
    %cst_73 = arith.constant dense<0.000000e+00> : vector<256x8xf32>
    %65 = tpu.matmul %62, %64, %cst_73 {dimension_numbers = #tpu.dot_dimension_numbers<[1], [0], [0], [1], [0, 0, 1, 1], [], []>} : vector<256x4xf32>, vector<4x8xf32>, vector<256x8xf32> -> vector<256x8xf32>
    %66 = arith.addf %60, %65 : vector<256x8xf32>
    %c2_74 = arith.constant 2 : index
    %c2_75 = arith.constant 2 : index
    %c0_76 = arith.constant 0 : index
    %67 = vector.load %arg12[%c2_74, %c2_75, %c0_76] : memref<18x18x4xf32, #tpu.memory_space<vmem>>, vector<16x16x4xf32>
    %68 = vector.shape_cast %67 : vector<16x16x4xf32> to vector<256x4xf32>
    %c8 = arith.constant 8 : index
    %c0_77 = arith.constant 0 : index
    %c0_78 = arith.constant 0 : index
    %69 = vector.load %arg2[%c8, %c0_77, %c0_78] : memref<9x4x8xf32, #tpu.memory_space<vmem>>, vector<1x4x8xf32>
    %70 = vector.shape_cast %69 : vector<1x4x8xf32> to vector<4x8xf32>
    %cst_79 = arith.constant dense<0.000000e+00> : vector<256x8xf32>
    %71 = tpu.matmul %68, %70, %cst_79 {dimension_numbers = #tpu.dot_dimension_numbers<[1], [0], [0], [1], [0, 0, 1, 1], [], []>} : vector<256x4xf32>, vector<4x8xf32>, vector<256x8xf32> -> vector<256x8xf32>
    %72 = arith.addf %66, %71 : vector<256x8xf32>
    %c0_80 = arith.constant 0 : index
    %c0_81 = arith.constant 0 : index
    %73 = vector.load %arg3[%c0_80, %c0_81] : memref<1x8xf32, #tpu.memory_space<vmem>>, vector<1x8xf32>
    %74 = vector.broadcast %73 : vector<1x8xf32> to vector<256x8xf32>
    %75 = arith.mulf %72, %74 : vector<256x8xf32>
    %c0_82 = arith.constant 0 : index
    %c0_83 = arith.constant 0 : index
    %76 = vector.load %arg4[%c0_82, %c0_83] : memref<1x8xf32, #tpu.memory_space<vmem>>, vector<1x8xf32>
    %77 = vector.broadcast %76 : vector<1x8xf32> to vector<256x8xf32>
    %78 = arith.addf %75, %77 : vector<256x8xf32>
    %cst_84 = arith.constant 0.000000e+00 : f32
    %79 = vector.broadcast %cst_84 : f32 to vector<256x8xf32>
    %80 = arith.maximumf %78, %79 : vector<256x8xf32>
    %81 = vector.shape_cast %80 : vector<256x8xf32> to vector<16x16x8xf32>
    %c1_85 = arith.constant 1 : index
    %c1_86 = arith.constant 1 : index
    %c0_87 = arith.constant 0 : index
    %82 = vector.load %arg13[%c1_85, %c1_86, %c0_87] : memref<18x18x8xf32, #tpu.memory_space<vmem>>, vector<16x16x8xf32>
    tpu.vector_store %arg13[%c1_85, %c1_86, %c0_87], %81 {strides = array<i32>} : memref<18x18x8xf32, #tpu.memory_space<vmem>>, vector<16x16x8xf32>,
    %cst_88 = arith.constant 0.000000e+00 : f32
    %83 = vector.broadcast %cst_88 : f32 to vector<256x8xf32>
    %c0_89 = arith.constant 0 : index
    %c0_90 = arith.constant 0 : index
    %c0_91 = arith.constant 0 : index
    %84 = vector.load %arg13[%c0_89, %c0_90, %c0_91] : memref<18x18x8xf32, #tpu.memory_space<vmem>>, vector<16x16x8xf32>
    %85 = vector.shape_cast %84 : vector<16x16x8xf32> to vector<256x8xf32>
    %c0_92 = arith.constant 0 : index
    %c0_93 = arith.constant 0 : index
    %c0_94 = arith.constant 0 : index
    %86 = vector.load %arg5[%c0_92, %c0_93, %c0_94] : memref<9x8x8xf32, #tpu.memory_space<vmem>>, vector<1x8x8xf32>
    %87 = vector.shape_cast %86 : vector<1x8x8xf32> to vector<8x8xf32>
    %cst_95 = arith.constant dense<0.000000e+00> : vector<256x8xf32>
    %88 = tpu.matmul %85, %87, %cst_95 {dimension_numbers = #tpu.dot_dimension_numbers<[1], [0], [0], [1], [0, 0, 1, 1], [], []>} : vector<256x8xf32>, vector<8x8xf32>, vector<256x8xf32> -> vector<256x8xf32>
    %89 = arith.addf %83, %88 : vector<256x8xf32>
    %c0_96 = arith.constant 0 : index
    %c1_97 = arith.constant 1 : index
    %c0_98 = arith.constant 0 : index
    %90 = vector.load %arg13[%c0_96, %c1_97, %c0_98] : memref<18x18x8xf32, #tpu.memory_space<vmem>>, vector<16x16x8xf32>
    %91 = vector.shape_cast %90 : vector<16x16x8xf32> to vector<256x8xf32>
    %c1_99 = arith.constant 1 : index
    %c0_100 = arith.constant 0 : index
    %c0_101 = arith.constant 0 : index
    %92 = vector.load %arg5[%c1_99, %c0_100, %c0_101] : memref<9x8x8xf32, #tpu.memory_space<vmem>>, vector<1x8x8xf32>
    %93 = vector.shape_cast %92 : vector<1x8x8xf32> to vector<8x8xf32>
    %cst_102 = arith.constant dense<0.000000e+00> : vector<256x8xf32>
    %94 = tpu.matmul %91, %93, %cst_102 {dimension_numbers = #tpu.dot_dimension_numbers<[1], [0], [0], [1], [0, 0, 1, 1], [], []>} : vector<256x8xf32>, vector<8x8xf32>, vector<256x8xf32> -> vector<256x8xf32>
    %95 = arith.addf %89, %94 : vector<256x8xf32>
    %c0_103 = arith.constant 0 : index
    %c2_104 = arith.constant 2 : index
    %c0_105 = arith.constant 0 : index
    %96 = vector.load %arg13[%c0_103, %c2_104, %c0_105] : memref<18x18x8xf32, #tpu.memory_space<vmem>>, vector<16x16x8xf32>
    %97 = vector.shape_cast %96 : vector<16x16x8xf32> to vector<256x8xf32>
    %c2_106 = arith.constant 2 : index
    %c0_107 = arith.constant 0 : index
    %c0_108 = arith.constant 0 : index
    %98 = vector.load %arg5[%c2_106, %c0_107, %c0_108] : memref<9x8x8xf32, #tpu.memory_space<vmem>>, vector<1x8x8xf32>
    %99 = vector.shape_cast %98 : vector<1x8x8xf32> to vector<8x8xf32>
    %cst_109 = arith.constant dense<0.000000e+00> : vector<256x8xf32>
    %100 = tpu.matmul %97, %99, %cst_109 {dimension_numbers = #tpu.dot_dimension_numbers<[1], [0], [0], [1], [0, 0, 1, 1], [], []>} : vector<256x8xf32>, vector<8x8xf32>, vector<256x8xf32> -> vector<256x8xf32>
    %101 = arith.addf %95, %100 : vector<256x8xf32>
    %c1_110 = arith.constant 1 : index
    %c0_111 = arith.constant 0 : index
    %c0_112 = arith.constant 0 : index
    %102 = vector.load %arg13[%c1_110, %c0_111, %c0_112] : memref<18x18x8xf32, #tpu.memory_space<vmem>>, vector<16x16x8xf32>
    %103 = vector.shape_cast %102 : vector<16x16x8xf32> to vector<256x8xf32>
    %c3_113 = arith.constant 3 : index
    %c0_114 = arith.constant 0 : index
    %c0_115 = arith.constant 0 : index
    %104 = vector.load %arg5[%c3_113, %c0_114, %c0_115] : memref<9x8x8xf32, #tpu.memory_space<vmem>>, vector<1x8x8xf32>
    %105 = vector.shape_cast %104 : vector<1x8x8xf32> to vector<8x8xf32>
    %cst_116 = arith.constant dense<0.000000e+00> : vector<256x8xf32>
    %106 = tpu.matmul %103, %105, %cst_116 {dimension_numbers = #tpu.dot_dimension_numbers<[1], [0], [0], [1], [0, 0, 1, 1], [], []>} : vector<256x8xf32>, vector<8x8xf32>, vector<256x8xf32> -> vector<256x8xf32>
    %107 = arith.addf %101, %106 : vector<256x8xf32>
    %c1_117 = arith.constant 1 : index
    %c1_118 = arith.constant 1 : index
    %c0_119 = arith.constant 0 : index
    %108 = vector.load %arg13[%c1_117, %c1_118, %c0_119] : memref<18x18x8xf32, #tpu.memory_space<vmem>>, vector<16x16x8xf32>
    %109 = vector.shape_cast %108 : vector<16x16x8xf32> to vector<256x8xf32>
    %c4_120 = arith.constant 4 : index
    %c0_121 = arith.constant 0 : index
    %c0_122 = arith.constant 0 : index
    %110 = vector.load %arg5[%c4_120, %c0_121, %c0_122] : memref<9x8x8xf32, #tpu.memory_space<vmem>>, vector<1x8x8xf32>
    %111 = vector.shape_cast %110 : vector<1x8x8xf32> to vector<8x8xf32>
    %cst_123 = arith.constant dense<0.000000e+00> : vector<256x8xf32>
    %112 = tpu.matmul %109, %111, %cst_123 {dimension_numbers = #tpu.dot_dimension_numbers<[1], [0], [0], [1], [0, 0, 1, 1], [], []>} : vector<256x8xf32>, vector<8x8xf32>, vector<256x8xf32> -> vector<256x8xf32>
    %113 = arith.addf %107, %112 : vector<256x8xf32>
    %c1_124 = arith.constant 1 : index
    %c2_125 = arith.constant 2 : index
    %c0_126 = arith.constant 0 : index
    %114 = vector.load %arg13[%c1_124, %c2_125, %c0_126] : memref<18x18x8xf32, #tpu.memory_space<vmem>>, vector<16x16x8xf32>
    %115 = vector.shape_cast %114 : vector<16x16x8xf32> to vector<256x8xf32>
    %c5_127 = arith.constant 5 : index
    %c0_128 = arith.constant 0 : index
    %c0_129 = arith.constant 0 : index
    %116 = vector.load %arg5[%c5_127, %c0_128, %c0_129] : memref<9x8x8xf32, #tpu.memory_space<vmem>>, vector<1x8x8xf32>
    %117 = vector.shape_cast %116 : vector<1x8x8xf32> to vector<8x8xf32>
    %cst_130 = arith.constant dense<0.000000e+00> : vector<256x8xf32>
    %118 = tpu.matmul %115, %117, %cst_130 {dimension_numbers = #tpu.dot_dimension_numbers<[1], [0], [0], [1], [0, 0, 1, 1], [], []>} : vector<256x8xf32>, vector<8x8xf32>, vector<256x8xf32> -> vector<256x8xf32>
    %119 = arith.addf %113, %118 : vector<256x8xf32>
    %c2_131 = arith.constant 2 : index
    %c0_132 = arith.constant 0 : index
    %c0_133 = arith.constant 0 : index
    %120 = vector.load %arg13[%c2_131, %c0_132, %c0_133] : memref<18x18x8xf32, #tpu.memory_space<vmem>>, vector<16x16x8xf32>
    %121 = vector.shape_cast %120 : vector<16x16x8xf32> to vector<256x8xf32>
    %c6_134 = arith.constant 6 : index
    %c0_135 = arith.constant 0 : index
    %c0_136 = arith.constant 0 : index
    %122 = vector.load %arg5[%c6_134, %c0_135, %c0_136] : memref<9x8x8xf32, #tpu.memory_space<vmem>>, vector<1x8x8xf32>
    %123 = vector.shape_cast %122 : vector<1x8x8xf32> to vector<8x8xf32>
    %cst_137 = arith.constant dense<0.000000e+00> : vector<256x8xf32>
    %124 = tpu.matmul %121, %123, %cst_137 {dimension_numbers = #tpu.dot_dimension_numbers<[1], [0], [0], [1], [0, 0, 1, 1], [], []>} : vector<256x8xf32>, vector<8x8xf32>, vector<256x8xf32> -> vector<256x8xf32>
    %125 = arith.addf %119, %124 : vector<256x8xf32>
    %c2_138 = arith.constant 2 : index
    %c1_139 = arith.constant 1 : index
    %c0_140 = arith.constant 0 : index
    %126 = vector.load %arg13[%c2_138, %c1_139, %c0_140] : memref<18x18x8xf32, #tpu.memory_space<vmem>>, vector<16x16x8xf32>
    %127 = vector.shape_cast %126 : vector<16x16x8xf32> to vector<256x8xf32>
    %c7_141 = arith.constant 7 : index
    %c0_142 = arith.constant 0 : index
    %c0_143 = arith.constant 0 : index
    %128 = vector.load %arg5[%c7_141, %c0_142, %c0_143] : memref<9x8x8xf32, #tpu.memory_space<vmem>>, vector<1x8x8xf32>
    %129 = vector.shape_cast %128 : vector<1x8x8xf32> to vector<8x8xf32>
    %cst_144 = arith.constant dense<0.000000e+00> : vector<256x8xf32>
    %130 = tpu.matmul %127, %129, %cst_144 {dimension_numbers = #tpu.dot_dimension_numbers<[1], [0], [0], [1], [0, 0, 1, 1], [], []>} : vector<256x8xf32>, vector<8x8xf32>, vector<256x8xf32> -> vector<256x8xf32>
    %131 = arith.addf %125, %130 : vector<256x8xf32>
    %c2_145 = arith.constant 2 : index
    %c2_146 = arith.constant 2 : index
    %c0_147 = arith.constant 0 : index
    %132 = vector.load %arg13[%c2_145, %c2_146, %c0_147] : memref<18x18x8xf32, #tpu.memory_space<vmem>>, vector<16x16x8xf32>
    %133 = vector.shape_cast %132 : vector<16x16x8xf32> to vector<256x8xf32>
    %c8_148 = arith.constant 8 : index
    %c0_149 = arith.constant 0 : index
    %c0_150 = arith.constant 0 : index
    %134 = vector.load %arg5[%c8_148, %c0_149, %c0_150] : memref<9x8x8xf32, #tpu.memory_space<vmem>>, vector<1x8x8xf32>
    %135 = vector.shape_cast %134 : vector<1x8x8xf32> to vector<8x8xf32>
    %cst_151 = arith.constant dense<0.000000e+00> : vector<256x8xf32>
    %136 = tpu.matmul %133, %135, %cst_151 {dimension_numbers = #tpu.dot_dimension_numbers<[1], [0], [0], [1], [0, 0, 1, 1], [], []>} : vector<256x8xf32>, vector<8x8xf32>, vector<256x8xf32> -> vector<256x8xf32>
    %137 = arith.addf %131, %136 : vector<256x8xf32>
    %c0_152 = arith.constant 0 : index
    %c0_153 = arith.constant 0 : index
    %138 = vector.load %arg6[%c0_152, %c0_153] : memref<1x8xf32, #tpu.memory_space<vmem>>, vector<1x8xf32>
    %139 = vector.broadcast %138 : vector<1x8xf32> to vector<256x8xf32>
    %140 = arith.mulf %137, %139 : vector<256x8xf32>
    %c0_154 = arith.constant 0 : index
    %c0_155 = arith.constant 0 : index
    %141 = vector.load %arg7[%c0_154, %c0_155] : memref<1x8xf32, #tpu.memory_space<vmem>>, vector<1x8xf32>
    %142 = vector.broadcast %141 : vector<1x8xf32> to vector<256x8xf32>
    %143 = arith.addf %140, %142 : vector<256x8xf32>
    %cst_156 = arith.constant 0.000000e+00 : f32
    %144 = vector.broadcast %cst_156 : f32 to vector<256x8xf32>
    %145 = arith.maximumf %143, %144 : vector<256x8xf32>
    %146 = arith.addf %145, %17 : vector<256x8xf32>
    %147 = vector.shape_cast %146 : vector<256x8xf32> to vector<16x16x8xf32>
    %c0_157 = arith.constant 0 : index
    %c0_158 = arith.constant 0 : index
    %c0_159 = arith.constant 0 : index
    %c0_160 = arith.constant 0 : index
    %148 = vector.load %arg11[%c0_157, %c0_158, %c0_159, %c0_160] : memref<1x16x16x8xf32, #tpu.memory_space<vmem>>, vector<1x16x16x8xf32>
    %149 = vector.shape_cast %148 : vector<1x16x16x8xf32> to vector<16x16x8xf32>
    %150 = vector.shape_cast %147 : vector<16x16x8xf32> to vector<1x16x16x8xf32>
    tpu.vector_store %arg11[%c0_157, %c0_158, %c0_159, %c0_160], %150 {strides = array<i32>} : memref<1x16x16x8xf32, #tpu.memory_space<vmem>>, vector<1x16x16x8xf32>,
    return
  }
  func.func @transform_0(%arg0: i32) -> (i32, i32, i32, i32) {
    %c0_i32 = arith.constant 0 : i32
    %c0_i32_0 = arith.constant 0 : i32
    %c0_i32_1 = arith.constant 0 : i32
    %c0_i32_2 = arith.constant 0 : i32
    return %arg0, %c0_i32, %c0_i32_0, %c0_i32_1 : i32, i32, i32, i32
  }
  func.func @transform_1(%arg0: i32) -> (i32, i32, i32) {
    %c0_i32 = arith.constant 0 : i32
    %c0_i32_0 = arith.constant 0 : i32
    %c0_i32_1 = arith.constant 0 : i32
    %c0_i32_2 = arith.constant 0 : i32
    return %c0_i32, %c0_i32_0, %c0_i32_1 : i32, i32, i32
  }
  func.func @transform_2(%arg0: i32) -> (i32, i32) {
    %c0_i32 = arith.constant 0 : i32
    %c0_i32_0 = arith.constant 0 : i32
    %c0_i32_1 = arith.constant 0 : i32
    return %c0_i32, %c0_i32_0 : i32, i32
  }
  func.func @transform_3(%arg0: i32) -> (i32, i32) {
    %c0_i32 = arith.constant 0 : i32
    %c0_i32_0 = arith.constant 0 : i32
    %c0_i32_1 = arith.constant 0 : i32
    return %c0_i32, %c0_i32_0 : i32, i32
  }
  func.func @transform_4(%arg0: i32) -> (i32, i32, i32) {
    %c0_i32 = arith.constant 0 : i32
    %c0_i32_0 = arith.constant 0 : i32
    %c0_i32_1 = arith.constant 0 : i32
    %c0_i32_2 = arith.constant 0 : i32
    return %c0_i32, %c0_i32_0, %c0_i32_1 : i32, i32, i32
  }
  func.func @transform_5(%arg0: i32) -> (i32, i32) {
    %c0_i32 = arith.constant 0 : i32
    %c0_i32_0 = arith.constant 0 : i32
    %c0_i32_1 = arith.constant 0 : i32
    return %c0_i32, %c0_i32_0 : i32, i32
  }
  func.func @transform_6(%arg0: i32) -> (i32, i32) {
    %c0_i32 = arith.constant 0 : i32
    %c0_i32_0 = arith.constant 0 : i32
    %c0_i32_1 = arith.constant 0 : i32
    return %c0_i32, %c0_i32_0 : i32, i32
  }
  func.func @transform_7(%arg0: i32) -> (i32, i32) {
    %c0_i32 = arith.constant 0 : i32
    %c0_i32_0 = arith.constant 0 : i32
    %c0_i32_1 = arith.constant 0 : i32
    return %c0_i32, %c0_i32_0 : i32, i32
  }
  func.func @transform_8(%arg0: i32) -> (i32, i32) {
    %c0_i32 = arith.constant 0 : i32
    %c0_i32_0 = arith.constant 0 : i32
    %c0_i32_1 = arith.constant 0 : i32
    return %c0_i32, %c0_i32_0 : i32, i32
  }
  func.func @transform_9(%arg0: i32) -> (i32, i32) {
    %c0_i32 = arith.constant 0 : i32
    %c0_i32_0 = arith.constant 0 : i32
    %c0_i32_1 = arith.constant 0 : i32
    return %c0_i32, %c0_i32_0 : i32, i32
  }
  func.func @transform_10(%arg0: i32) -> (i32, i32, i32, i32) {
    %c0_i32 = arith.constant 0 : i32
    %c0_i32_0 = arith.constant 0 : i32
    %c0_i32_1 = arith.constant 0 : i32
    %c0_i32_2 = arith.constant 0 : i32
    return %arg0, %c0_i32, %c0_i32_0, %c0_i32_1 : i32, i32, i32, i32
  }
}

</mosaic_0001>

<bundles_post_ra>
// kernel: tpu_custom_call.1
= control target key start
LH: loop header
LB: loop body
LE: loop exit
PB: predicated region body
PF: predicated region fallthrough
CT: control target
= control target key end

     0   :  { %s10516_s13 = smov 0   ;;  %s14151_s0 = inlined_call_operand.vmem [shape: f32[2,16,16,4], index: 0, kind: input, shape index: {}]   ;;  %s14152_s1 = inlined_call_operand.vmem [shape: f32[9,4,8], index: 1, kind: input, shape index: {}]   ;;  %s14153_s2 = inlined_call_operand.vmem [shape: f32[1,8], index: 2, kind: input, shape index: {}]   ;;  %s14154_s3 = inlined_call_operand.vmem [shape: f32[1,8], index: 3, kind: input, shape index: {}]   ;;  %s14155_s4 = inlined_call_operand.vmem [shape: f32[9,8,8], index: 4, kind: input, shape index: {}]   ;;  %s14156_s5 = inlined_call_operand.vmem [shape: f32[1,8], index: 5, kind: input, shape index: {}]   ;;  %s14157_s6 = inlined_call_operand.vmem [shape: f32[1,8], index: 6, kind: input, shape index: {}]   ;;  %s14158_s7 = inlined_call_operand.vmem [shape: f32[4,8], index: 7, kind: input, shape index: {}]   ;;  %s14159_s8 = inlined_call_operand.vmem [shape: f32[1,8], index: 8, kind: input, shape index: {}]   ;;  %s14160_s9 = inlined_call_operand.vmem [shape: f32[1,8], index: 9, kind: input, shape index: {}]   ;;  %s14161_s10 = inlined_call_operand.vmem [shape: f32[2,16,16,8], index: 10, kind: output, shape index: {}]  }
   0x1 LB: > { %s8210_s14 = sadd.s32 4294967295, %s10458_s13   ;;  %p8214_p0 = scmp.ge.s32.totalorder %s10458_s13, 1  ;;  %s10458_s13 = sphi %s10516_s13, %s20_s13  }
   0x2   : > { %p312_p1 = scmp.lt.s32.totalorder %s10458_s13, 3 }
   0x4   : > { %p313_p2 = pnand %p8214_p0, %p312_p1 }
   0x6   : > { %316 = sbr.rel (%p313_p2) target bundleno = 1050 (0x41a), region = 60 }
   0xb   : > { %v569_v0 = vld [vmem:[%s14158_s7] sm:$0xf]  ;;  %vm666_vm0 = vcmask 1043456   ;;  %p10529_p3 = scmp.lt.s32.totalorder %s8210_s14, 1  ;;  %vm360_vm1 = vcmask 31744   ;;  %v14162_v3 = vmov 0.0  }
   0xc   : > { %10440 = vmatprep.subr.msk.mxu1 %vm666_vm0, %v569_v0  ;;  %9490 = vmatprep.subr.msk.mxu0 %vm666_vm0, %v569_v0  ;;  %v10538_v1 = vld [vmem:[%s14152_s1 + $0x4] sm:$0xf]  ;;  %v10543_v2 = vld [vmem:[%s14152_s1] sm:$0xf]  ;;  %361 = vst.msk [vmem:[#allocation2] sm:$0xff] %vm360_vm1, %v14162_v3  ;;  %362 = vst.msk [vmem:[#allocation2 + $0x8] sm:$0xff] %vm360_vm1, %v14162_v3 }
   0xd   : > { %365 = vst.msk [vmem:[#allocation2 + $0x18] sm:$0xff] %vm360_vm1, %v14162_v3  ;;  %366 = vst.msk [vmem:[#allocation2 + $0x20] sm:$0xff] %vm360_vm1, %v14162_v3  ;;  %10441 = vmatpush3.msk.msra.mxu1 %vm666_vm0, %v569_v0  ;;  %9491 = vmatpush3.msk.msra.mxu0 %vm666_vm0, %v569_v0  ;;  %s14684_s14 = smov (!%p10529_p3, %s8210_s14), 1  ;;  %vm363_vm2 = vcmask 25600   ;;  %v10679_v7 = vld [vmem:[%s14152_s1 + $0x8] sm:$0xf] }
   0xe   : > { %368 = vst.msk [vmem:[#allocation2 + $0x30] sm:$0xff] %vm360_vm1, %v14162_v3  ;;  %369 = vst.msk [vmem:[#allocation2 + $0x38] sm:$0xff] %vm360_vm1, %v14162_v3  ;;  %9540 = vmatprep.subr.msk.mxu1 %vm666_vm0, %v10538_v1  ;;  %9590 = vmatprep.subr.msk.mxu0 %vm666_vm0, %v10543_v2  ;;  %s8861_s22 = sshll.u32 %s14684_s14, 8  ;;  %v10684_v8 = vld [vmem:[%s14152_s1 + $0xc] sm:$0xf]  ;;  %vm416_vm3 = vcmask 64512  }
   0xf   : > { %371 = vst.msk [vmem:[#allocation2 + $0x48] sm:$0xff] %vm360_vm1, %v14162_v3  ;;  %372 = vst.msk [vmem:[#allocation2 + $0x50] sm:$0xff] %vm360_vm1, %v14162_v3  ;;  %s10671_s25 = scalar_lea.vmem %s14151_s0, %s8861_s22  ;;  %v10798_v44 = vld [vmem:[%s14152_s1 + $0x10] sm:$0xf]  ;;  %v10849_v55 = vld [vmem:[%s14152_s1 + $0x14] sm:$0xf]  ;;  %s13876_s23 = scalar_lea.vmem %s14161_s10, %s8861_s22 }
  0x10   : > { %374 = vst.msk [vmem:[#allocation2 + $0x60] sm:$0xff] %vm360_vm1, %v14162_v3  ;;  %375 = vst.msk [vmem:[#allocation2 + $0x68] sm:$0xff] %vm360_vm1, %v14162_v3  ;;  %v537_v4 = vld [vmem:[%s10671_s25] sm:$0xff]  ;;  %v538_v6 = vld [vmem:[%s10671_s25 + $0x8] sm:$0xff]  ;;  %vm419_vm4 = vcmask 58368  }
  0x11   : > { %377 = vst.msk [vmem:[#allocation2 + $0x78] sm:$0xff] %vm360_vm1, %v14162_v3  ;;  %378 = vst.msk [vmem:[#allocation2 + $0x80] sm:$0xff] %vm360_vm1, %v14162_v3  ;;  %v553_v5 = vld [vmem:[%s10671_s25 + $0x80] sm:$0xff]  ;;  %9492 = vmatprep.mubr.msk.f32.mxu0 %vm360_vm1, %v537_v4  ;;  %v554_v9 = vld [vmem:[%s10671_s25 + $0x88] sm:$0xff] }
  0x12   : > { %380 = vst.msk [vmem:[#allocation2 + $0x90] sm:$0xff] %vm360_vm1, %v14162_v3  ;;  %381 = vst.msk [vmem:[#allocation2 + $0x98] sm:$0xff] %vm360_vm1, %v14162_v3  ;;  %9516 = vmatprep.mubr.msk.f32.mxu1 %vm360_vm1, %v553_v5  ;;  %v539_v10 = vld [vmem:[%s10671_s25 + $0x10] sm:$0xff]  ;;  %9493 = vmatmul.mubr.msk.f32.vlgmr.msra.gmra.mxu0 %vm360_vm1, %v538_v6  ;;  %v540_v12 = vld [vmem:[%s10671_s25 + $0x18] sm:$0xff] }
  0x13   : > { %383 = vst.msk [vmem:[#allocation2 + $0xa8] sm:$0xff] %vm360_vm1, %v14162_v3  ;;  %384 = vst.msk [vmem:[#allocation2 + $0xb0] sm:$0xff] %vm360_vm1, %v14162_v3  ;;  %v555_v11 = vld [vmem:[%s10671_s25 + $0x90] sm:$0xff]  ;;  %9517 = vmatmul.mubr.msk.f32.vlgmr.msra.gmra.mxu1 %vm360_vm1, %v554_v9  ;;  %v556_v13 = vld [vmem:[%s10671_s25 + $0x98] sm:$0xff]  ;;  %9495 = vmatprep.mubr.msk.f32.mxu0 %vm360_vm1, %v539_v10 }
  0x14   : > { %386 = vst.msk [vmem:[#allocation2 + $0xc0] sm:$0xff] %vm360_vm1, %v14162_v3  ;;  %387 = vst.msk [vmem:[#allocation2 + $0xc8] sm:$0xff] %vm360_vm1, %v14162_v3  ;;  %v541_v14 = vld [vmem:[%s10671_s25 + $0x20] sm:$0xff]  ;;  %9541 = vmatpush3.msk.msra.mxu1 %vm666_vm0, %v10538_v1  ;;  %v542_v16 = vld [vmem:[%s10671_s25 + $0x28] sm:$0xff]  ;;  %9519 = vmatprep.mubr.msk.f32.mxu1 %vm360_vm1, %v555_v11 }
  0x15   : > { %389 = vst.msk [vmem:[#allocation2 + $0xd8] sm:$0xff] %vm360_vm1, %v14162_v3  ;;  %390 = vst.msk [vmem:[#allocation2 + $0xe0] sm:$0xff] %vm360_vm1, %v14162_v3  ;;  %v557_v15 = vld [vmem:[%s10671_s25 + $0xa0] sm:$0xff]  ;;  %v558_v17 = vld [vmem:[%s10671_s25 + $0xa8] sm:$0xff]  ;;  %9591 = vmatpush3.msk.msra.mxu0 %vm666_vm0, %v10543_v2  ;;  %9640 = vmatprep.subr.msk.mxu1 %vm666_vm0, %v10679_v7 }
  0x16   : > { %392 = vst.msk [vmem:[#allocation2 + $0xf0] sm:$0xff] %vm360_vm1, %v14162_v3  ;;  %393 = vst.msk [vmem:[#allocation2 + $0xf8] sm:$0xff] %vm360_vm1, %v14162_v3  ;;  %v543_v18 = vld [vmem:[%s10671_s25 + $0x30] sm:$0xff]  ;;  %v544_v20 = vld [vmem:[%s10671_s25 + $0x38] sm:$0xff]  ;;  %9690 = vmatprep.subr.msk.mxu0 %vm666_vm0, %v10684_v8  ;;  %9496 = vmatmul.mubr.msk.f32.gmra.mxu0 %vm360_vm1, %v540_v12 }
  0x17   : > { %395 = vst.msk [vmem:[#allocation2 + $0x108] sm:$0xff] %vm360_vm1, %v14162_v3  ;;  %396 = vst.msk [vmem:[#allocation2 + $0x110] sm:$0xff] %vm360_vm1, %v14162_v3  ;;  %v559_v19 = vld [vmem:[%s10671_s25 + $0xb0] sm:$0xff]  ;;  %v560_v21 = vld [vmem:[%s10671_s25 + $0xb8] sm:$0xff]  ;;  %9520 = vmatmul.mubr.msk.f32.gmra.mxu1 %vm360_vm1, %v556_v13  ;;  %9498 = vmatprep.mubr.msk.f32.mxu0 %vm360_vm1, %v541_v14 }
  0x18   : > { %398 = vst.msk [vmem:[#allocation2 + $0x120] sm:$0xff] %vm360_vm1, %v14162_v3  ;;  %399 = vst.msk [vmem:[#allocation2 + $0x128] sm:$0xff] %vm360_vm1, %v14162_v3  ;;  %v545_v22 = vld [vmem:[%s10671_s25 + $0x40] sm:$0xff]  ;;  %v546_v24 = vld [vmem:[%s10671_s25 + $0x48] sm:$0xff]  ;;  %9522 = vmatprep.mubr.msk.f32.mxu1 %vm360_vm1, %v557_v15 }
  0x19   : > { %401 = vst.msk [vmem:[#allocation2 + $0x138] sm:$0xff] %vm360_vm1, %v14162_v3  ;;  %402 = vst.msk [vmem:[#allocation2 + $0x140] sm:$0xff] %vm360_vm1, %v14162_v3  ;;  %v561_v23 = vld [vmem:[%s10671_s25 + $0xc0] sm:$0xff]  ;;  %v562_v25 = vld [vmem:[%s10671_s25 + $0xc8] sm:$0xff] }
  0x1a   : > { %404 = vst.msk [vmem:[#allocation2 + $0x150] sm:$0xff] %vm360_vm1, %v14162_v3  ;;  %405 = vst.msk [vmem:[#allocation2 + $0x158] sm:$0xff] %vm360_vm1, %v14162_v3  ;;  %v547_v26 = vld [vmem:[%s10671_s25 + $0x50] sm:$0xff]  ;;  %v548_v28 = vld [vmem:[%s10671_s25 + $0x58] sm:$0xff]  ;;  %9499 = vmatmul.mubr.msk.f32.gmra.mxu0 %vm360_vm1, %v542_v16 }
  0x1b   : > { %407 = vst.msk [vmem:[#allocation2 + $0x168] sm:$0xff] %vm360_vm1, %v14162_v3  ;;  %408 = vst.msk [vmem:[#allocation2 + $0x170] sm:$0xff] %vm360_vm1, %v14162_v3  ;;  %v563_v27 = vld [vmem:[%s10671_s25 + $0xd0] sm:$0xff]  ;;  %v564_v29 = vld [vmem:[%s10671_s25 + $0xd8] sm:$0xff]  ;;  %9523 = vmatmul.mubr.msk.f32.gmra.mxu1 %vm360_vm1, %v558_v17  ;;  %9501 = vmatprep.mubr.msk.f32.mxu0 %vm360_vm1, %v543_v18 }
  0x1c   : > { %410 = vst.msk [vmem:[#allocation2 + $0x180] sm:$0xff] %vm360_vm1, %v14162_v3  ;;  %411 = vst.msk [vmem:[#allocation2 + $0x188] sm:$0xff] %vm360_vm1, %v14162_v3  ;;  %v549_v30 = vld [vmem:[%s10671_s25 + $0x60] sm:$0xff]  ;;  %v550_v32 = vld [vmem:[%s10671_s25 + $0x68] sm:$0xff]  ;;  %9525 = vmatprep.mubr.msk.f32.mxu1 %vm360_vm1, %v559_v19 }
  0x1d   : > { %413 = vst.msk [vmem:[#allocation2 + $0x198] sm:$0xff] %vm360_vm1, %v14162_v3  ;;  %414 = vst.msk [vmem:[#allocation2 + $0x1a0] sm:$0xff] %vm360_vm1, %v14162_v3  ;;  %v565_v31 = vld [vmem:[%s10671_s25 + $0xe0] sm:$0xff]  ;;  %v566_v33 = vld [vmem:[%s10671_s25 + $0xe8] sm:$0xff] }
  0x1e   : > { %364 = vst.msk [vmem:[#allocation2 + $0x10] sm:$0x3] %vm363_vm2, %v14162_v3  ;;  %367 = vst.msk [vmem:[#allocation2 + $0x28] sm:$0x3] %vm363_vm2, %v14162_v3  ;;  %v551_v34 = vld [vmem:[%s10671_s25 + $0x70] sm:$0xff]  ;;  %v552_v36 = vld [vmem:[%s10671_s25 + $0x78] sm:$0xff]  ;;  %9502 = vmatmul.mubr.msk.f32.gmra.mxu0 %vm360_vm1, %v544_v20 }
  0x1f   : > { %370 = vst.msk [vmem:[#allocation2 + $0x40] sm:$0x3] %vm363_vm2, %v14162_v3  ;;  %373 = vst.msk [vmem:[#allocation2 + $0x58] sm:$0x3] %vm363_vm2, %v14162_v3  ;;  %v567_v35 = vld [vmem:[%s10671_s25 + $0xf0] sm:$0xff]  ;;  %v568_v37 = vld [vmem:[%s10671_s25 + $0xf8] sm:$0xff]  ;;  %9526 = vmatmul.mubr.msk.f32.gmra.mxu1 %vm360_vm1, %v560_v21  ;;  %9504 = vmatprep.mubr.msk.f32.mxu0 %vm360_vm1, %v545_v22 }
  0x20   : > { %376 = vst.msk [vmem:[#allocation2 + $0x70] sm:$0x3] %vm363_vm2, %v14162_v3  ;;  %379 = vst.msk [vmem:[#allocation2 + $0x88] sm:$0x3] %vm363_vm2, %v14162_v3  ;;  %9528 = vmatprep.mubr.msk.f32.mxu1 %vm360_vm1, %v561_v23  ;;  %v1006_v38 = vld [vmem:[#allocation2 + $0x1] sm:$0xff] }
  0x21   : > { %382 = vst.msk [vmem:[#allocation2 + $0xa0] sm:$0x3] %vm363_vm2, %v14162_v3  ;;  %385 = vst.msk [vmem:[#allocation2 + $0xb8] sm:$0x3] %vm363_vm2, %v14162_v3  ;;  %v973_v39 = vld [vmem:[#allocation2] sm:$0xff]  ;;  %v974_v41 = vld [vmem:[#allocation2 + $0x8] sm:$0xff] }
  0x22   : > { %388 = vst.msk [vmem:[#allocation2 + $0xd0] sm:$0x3] %vm363_vm2, %v14162_v3  ;;  %391 = vst.msk [vmem:[#allocation2 + $0xe8] sm:$0x3] %vm363_vm2, %v14162_v3  ;;  %9505 = vmatmul.mubr.msk.f32.gmra.mxu0 %vm360_vm1, %v546_v24 }
  0x23   : > { %394 = vst.msk [vmem:[#allocation2 + $0x100] sm:$0x3] %vm363_vm2, %v14162_v3  ;;  %397 = vst.msk [vmem:[#allocation2 + $0x118] sm:$0x3] %vm363_vm2, %v14162_v3  ;;  %9529 = vmatmul.mubr.msk.f32.gmra.mxu1 %vm360_vm1, %v562_v25  ;;  %9507 = vmatprep.mubr.msk.f32.mxu0 %vm360_vm1, %v547_v26 }
  0x24   : > { %400 = vst.msk [vmem:[#allocation2 + $0x130] sm:$0x3] %vm363_vm2, %v14162_v3  ;;  %403 = vst.msk [vmem:[#allocation2 + $0x148] sm:$0x3] %vm363_vm2, %v14162_v3  ;;  %9531 = vmatprep.mubr.msk.f32.mxu1 %vm360_vm1, %v563_v27 }
  0x25   : > { %406 = vst.msk [vmem:[#allocation2 + $0x160] sm:$0x3] %vm363_vm2, %v14162_v3  ;;  %409 = vst.msk [vmem:[#allocation2 + $0x178] sm:$0x3] %vm363_vm2, %v14162_v3  ;;  %v1007_v40 = vld [vmem:[#allocation2 + $0x9] sm:$0xff] }
  0x26   : > { %412 = vst.msk [vmem:[#allocation2 + $0x190] sm:$0x3] %vm363_vm2, %v14162_v3  ;;  %415 = vst.msk [vmem:[#allocation2 + $0x1a8] sm:$0x3] %vm363_vm2, %v14162_v3  ;;  %9508 = vmatmul.mubr.msk.f32.gmra.mxu0 %vm360_vm1, %v548_v28  ;;  %v1689_v3 = vld [vmem:[#allocation2 + $0xa] sm:$0xff] }
  0x27   : > { %505 = vst.msk [vmem:[#allocation2 + $0x19] sm:$0xff] %vm360_vm1, %v537_v4  ;;  %506 = vst.msk [vmem:[#allocation2 + $0x21] sm:$0xff] %vm360_vm1, %v538_v6  ;;  %9532 = vmatmul.mubr.msk.f32.gmra.mxu1 %vm360_vm1, %v564_v29  ;;  %9510 = vmatprep.mubr.msk.f32.mxu0 %vm360_vm1, %v549_v30 }
  0x28   : > { %521 = vst.msk [vmem:[#allocation2 + $0xd9] sm:$0xff] %vm360_vm1, %v553_v5  ;;  %507 = vst.msk [vmem:[#allocation2 + $0x31] sm:$0xff] %vm360_vm1, %v539_v10  ;;  %9534 = vmatprep.mubr.msk.f32.mxu1 %vm360_vm1, %v565_v31 }
  0x29   : > { %522 = vst.msk [vmem:[#allocation2 + $0xe1] sm:$0xff] %vm360_vm1, %v554_v9  ;;  %523 = vst.msk [vmem:[#allocation2 + $0xf1] sm:$0xff] %vm360_vm1, %v555_v11 }
  0x2a   : > { %508 = vst.msk [vmem:[#allocation2 + $0x39] sm:$0xff] %vm360_vm1, %v540_v12  ;;  %509 = vst.msk [vmem:[#allocation2 + $0x49] sm:$0xff] %vm360_vm1, %v541_v14  ;;  %9511 = vmatmul.mubr.msk.f32.gmra.mxu0 %vm360_vm1, %v550_v32 }
  0x2b   : > { %524 = vst.msk [vmem:[#allocation2 + $0xf9] sm:$0xff] %vm360_vm1, %v556_v13  ;;  %510 = vst.msk [vmem:[#allocation2 + $0x51] sm:$0xff] %vm360_vm1, %v542_v16  ;;  %9535 = vmatmul.mubr.msk.f32.gmra.mxu1 %vm360_vm1, %v566_v33  ;;  %9513 = vmatprep.mubr.msk.f32.mxu0 %vm360_vm1, %v551_v34 }
  0x2c   : > { %525 = vst.msk [vmem:[#allocation2 + $0x109] sm:$0xff] %vm360_vm1, %v557_v15  ;;  %526 = vst.msk [vmem:[#allocation2 + $0x111] sm:$0xff] %vm360_vm1, %v558_v17  ;;  %9537 = vmatprep.mubr.msk.f32.mxu1 %vm360_vm1, %v567_v35 }
  0x2d   : > { %511 = vst.msk [vmem:[#allocation2 + $0x61] sm:$0xff] %vm360_vm1, %v543_v18  ;;  %512 = vst.msk [vmem:[#allocation2 + $0x69] sm:$0xff] %vm360_vm1, %v544_v20 }
  0x2e   : > { %527 = vst.msk [vmem:[#allocation2 + $0x121] sm:$0xff] %vm360_vm1, %v559_v19  ;;  %513 = vst.msk [vmem:[#allocation2 + $0x79] sm:$0xff] %vm360_vm1, %v545_v22  ;;  %9514 = vmatmul.mubr.msk.f32.gmra.mxu0 %vm360_vm1, %v552_v36  ;;  %v10789_v42 = vld [vmem:[#allocation2 + $0x19] sm:$0xff]  ;;  %v10804_v45 = vld [vmem:[#allocation2 + $0x21] sm:$0xff] }
  0x2f   : > { %528 = vst.msk [vmem:[#allocation2 + $0x129] sm:$0xff] %vm360_vm1, %v560_v21  ;;  %529 = vst.msk [vmem:[#allocation2 + $0x139] sm:$0xff] %vm360_vm1, %v561_v23  ;;  %9538 = vmatmul.mubr.msk.f32.gmra.mxu1 %vm360_vm1, %v568_v37  ;;  %9592 = vmatprep.mubr.msk.f32.mxu0 %vm360_vm1, %v973_v39  ;;  %v10791_v43 = vld [vmem:[#allocation2 + $0x18] sm:$0xff]  ;;  %v10806_v46 = vld [vmem:[#allocation2 + $0x20] sm:$0xff] }
  0x30   : > { %514 = vst.msk [vmem:[#allocation2 + $0x81] sm:$0xff] %vm360_vm1, %v546_v24  ;;  %515 = vst.msk [vmem:[#allocation2 + $0x91] sm:$0xff] %vm360_vm1, %v547_v26  ;;  %9542 = vmatprep.mubr.msk.f32.mxu1 %vm360_vm1, %v1006_v38  ;;  %v10810_v47 = vld [vmem:[#allocation2 + $0x31] sm:$0xff]  ;;  %v10933_v13 = vld [vmem:[#allocation2 + $0xd9] sm:$0xff] }
  0x31   : > { %530 = vst.msk [vmem:[#allocation2 + $0x141] sm:$0xff] %vm360_vm1, %v562_v25  ;;  %516 = vst.msk [vmem:[#allocation2 + $0x99] sm:$0xff] %vm360_vm1, %v548_v28  ;;  %v10812_v48 = vld [vmem:[#allocation2 + $0x30] sm:$0xff]  ;;  %v10826_v49 = vld [vmem:[#allocation2 + $0x39] sm:$0xff] }
  0x32   : > { %531 = vst.msk [vmem:[#allocation2 + $0x151] sm:$0xff] %vm360_vm1, %v563_v27  ;;  %532 = vst.msk [vmem:[#allocation2 + $0x159] sm:$0xff] %vm360_vm1, %v564_v29  ;;  %9593 = vmatmul.mubr.msk.f32.vlgmr.msra.gmra.mxu0 %vm360_vm1, %v974_v41  ;;  %v10828_v50 = vld [vmem:[#allocation2 + $0x38] sm:$0xff]  ;;  %v10830_v51 = vld [vmem:[#allocation2 + $0x49] sm:$0xff] }
  0x33   : > { %517 = vst.msk [vmem:[#allocation2 + $0xa9] sm:$0xff] %vm360_vm1, %v549_v30  ;;  %518 = vst.msk [vmem:[#allocation2 + $0xb1] sm:$0xff] %vm360_vm1, %v550_v32  ;;  %9543 = vmatmul.mubr.msk.f32.vlgmr.msra.gmra.mxu1 %vm360_vm1, %v1007_v40  ;;  %9595 = vmatprep.mubr.msk.f32.mxu0 %vm360_vm1, %v10791_v43  ;;  %v10832_v52 = vld [vmem:[#allocation2 + $0x48] sm:$0xff]  ;;  %v10842_v53 = vld [vmem:[#allocation2 + $0x51] sm:$0xff] }
  0x34   : > { %533 = vst.msk [vmem:[#allocation2 + $0x169] sm:$0xff] %vm360_vm1, %v565_v31  ;;  %519 = vst.msk [vmem:[#allocation2 + $0xc1] sm:$0xff] %vm360_vm1, %v551_v34  ;;  %9641 = vmatpush3.msk.msra.mxu1 %vm666_vm0, %v10679_v7  ;;  %9545 = vmatprep.mubr.msk.f32.mxu1 %vm360_vm1, %v10789_v42  ;;  %v10844_v54 = vld [vmem:[#allocation2 + $0x50] sm:$0xff]  ;;  %v10851_v56 = vld [vmem:[#allocation2 + $0x61] sm:$0xff] }
  0x35   : > { %534 = vst.msk [vmem:[#allocation2 + $0x171] sm:$0xff] %vm360_vm1, %v566_v33  ;;  %535 = vst.msk [vmem:[#allocation2 + $0x181] sm:$0xff] %vm360_vm1, %v567_v35  ;;  %9691 = vmatpush3.msk.msra.mxu0 %vm666_vm0, %v10684_v8  ;;  %9740 = vmatprep.subr.msk.mxu1 %vm666_vm0, %v10798_v44  ;;  %v10853_v57 = vld [vmem:[#allocation2 + $0x60] sm:$0xff]  ;;  %v10865_v58 = vld [vmem:[#allocation2 + $0x69] sm:$0xff] }
  0x36   : > { %520 = vst.msk [vmem:[#allocation2 + $0xc9] sm:$0xff] %vm360_vm1, %v552_v36  ;;  %536 = vst.msk [vmem:[#allocation2 + $0x189] sm:$0xff] %vm360_vm1, %v568_v37  ;;  %9596 = vmatmul.mubr.msk.f32.gmra.mxu0 %vm360_vm1, %v10806_v46  ;;  %9790 = vmatprep.subr.msk.mxu0 %vm666_vm0, %v10849_v55  ;;  %v10867_v59 = vld [vmem:[#allocation2 + $0x68] sm:$0xff]  ;;  %v10869_v60 = vld [vmem:[#allocation2 + $0x79] sm:$0xff] }
  0x37   : > { %9546 = vmatmul.mubr.msk.f32.gmra.mxu1 %vm360_vm1, %v10804_v45  ;;  %9598 = vmatprep.mubr.msk.f32.mxu0 %vm360_vm1, %v10812_v48  ;;  %v10871_v61 = vld [vmem:[#allocation2 + $0x78] sm:$0xff]  ;;  %v10881_v62 = vld [vmem:[#allocation2 + $0x81] sm:$0xff]  ;;  %v10887_v1 = vld [vmem:[#allocation2 + $0x90] sm:$0xff] }
  0x38   : > { %9548 = vmatprep.mubr.msk.f32.mxu1 %vm360_vm1, %v10810_v47  ;;  %v10883_v63 = vld [vmem:[#allocation2 + $0x80] sm:$0xff]  ;;  %v10885_v0 = vld [vmem:[#allocation2 + $0x91] sm:$0xff]  ;;  %v10965_v21 = vld [vmem:[#allocation2 + $0x109] sm:$0xff] }
  0x39   : > { %v10897_v2 = vld [vmem:[#allocation2 + $0x99] sm:$0xff]  ;;  %v10945_v15 = vld [vmem:[#allocation2 + $0xe1] sm:$0xff]  ;;  %v10949_v17 = vld [vmem:[#allocation2 + $0xf1] sm:$0xff] }
  0x3a   : > { %9599 = vmatmul.mubr.msk.f32.gmra.mxu0 %vm360_vm1, %v10828_v50  ;;  %v10899_v4 = vld [vmem:[#allocation2 + $0x98] sm:$0xff]  ;;  %v10901_v5 = vld [vmem:[#allocation2 + $0xa9] sm:$0xff]  ;;  %v10947_v16 = vld [vmem:[#allocation2 + $0xe0] sm:$0xff] }
  0x3b   : > { %9549 = vmatmul.mubr.msk.f32.gmra.mxu1 %vm360_vm1, %v10826_v49  ;;  %9601 = vmatprep.mubr.msk.f32.mxu0 %vm360_vm1, %v10832_v52  ;;  %v10903_v6 = vld [vmem:[#allocation2 + $0xa8] sm:$0xff]  ;;  %v10913_v7 = vld [vmem:[#allocation2 + $0xb1] sm:$0xff]  ;;  %v10919_v10 = vld [vmem:[#allocation2 + $0xc0] sm:$0xff] }
  0x3c   : > { %9551 = vmatprep.mubr.msk.f32.mxu1 %vm360_vm1, %v10830_v51  ;;  %v10915_v8 = vld [vmem:[#allocation2 + $0xb0] sm:$0xff]  ;;  %v10917_v9 = vld [vmem:[#allocation2 + $0xc1] sm:$0xff]  ;;  %v10935_v14 = vld [vmem:[#allocation2 + $0xd8] sm:$0xff] }
  0x3d   : > { %v10929_v11 = vld [vmem:[#allocation2 + $0xc9] sm:$0xff]  ;;  %v10961_v19 = vld [vmem:[#allocation2 + $0xf9] sm:$0xff]  ;;  %v10977_v23 = vld [vmem:[#allocation2 + $0x111] sm:$0xff] }
  0x3e   : > { %9602 = vmatmul.mubr.msk.f32.gmra.mxu0 %vm360_vm1, %v10844_v54  ;;  %v10931_v12 = vld [vmem:[#allocation2 + $0xc8] sm:$0xff]  ;;  %v10951_v18 = vld [vmem:[#allocation2 + $0xf0] sm:$0xff]  ;;  %v10963_v20 = vld [vmem:[#allocation2 + $0xf8] sm:$0xff] }
  0x3f   : > { %9552 = vmatmul.mubr.msk.f32.gmra.mxu1 %vm360_vm1, %v10842_v53  ;;  %9604 = vmatprep.mubr.msk.f32.mxu0 %vm360_vm1, %v10853_v57  ;;  %v10967_v22 = vld [vmem:[#allocation2 + $0x108] sm:$0xff]  ;;  %v10979_v24 = vld [vmem:[#allocation2 + $0x110] sm:$0xff]  ;;  %v10983_v26 = vld [vmem:[#allocation2 + $0x120] sm:$0xff] }
  0x40   : > { %9554 = vmatprep.mubr.msk.f32.mxu1 %vm360_vm1, %v10851_v56  ;;  %v10981_v25 = vld [vmem:[#allocation2 + $0x121] sm:$0xff]  ;;  %v10993_v27 = vld [vmem:[#allocation2 + $0x129] sm:$0xff]  ;;  %v10997_v29 = vld [vmem:[#allocation2 + $0x139] sm:$0xff] }
  0x41   : > { %v10995_v28 = vld [vmem:[#allocation2 + $0x128] sm:$0xff]  ;;  %v10999_v30 = vld [vmem:[#allocation2 + $0x138] sm:$0xff]  ;;  %v11011_v32 = vld [vmem:[#allocation2 + $0x140] sm:$0xff] }
  0x42   : > { %9605 = vmatmul.mubr.msk.f32.gmra.mxu0 %vm360_vm1, %v10867_v59  ;;  %v11009_v31 = vld [vmem:[#allocation2 + $0x141] sm:$0xff]  ;;  %v11013_v33 = vld [vmem:[#allocation2 + $0x151] sm:$0xff]  ;;  %v11025_v35 = vld [vmem:[#allocation2 + $0x159] sm:$0xff] }
  0x43   : > { %9555 = vmatmul.mubr.msk.f32.gmra.mxu1 %vm360_vm1, %v10865_v58  ;;  %9607 = vmatprep.mubr.msk.f32.mxu0 %vm360_vm1, %v10871_v61  ;;  %v11015_v34 = vld [vmem:[#allocation2 + $0x150] sm:$0xff]  ;;  %v11027_v36 = vld [vmem:[#allocation2 + $0x158] sm:$0xff]  ;;  %v11031_v38 = vld [vmem:[#allocation2 + $0x168] sm:$0xff] }
  0x44   : > { %9557 = vmatprep.mubr.msk.f32.mxu1 %vm360_vm1, %v10869_v60  ;;  %v11029_v37 = vld [vmem:[#allocation2 + $0x169] sm:$0xff]  ;;  %v11041_v39 = vld [vmem:[#allocation2 + $0x171] sm:$0xff] }
  0x45   : > { %14200 = vst [vmem:[#allocation4_spill] sm:$0xff] %v11029_v37  ;;  %14201 = vst [vmem:[#allocation5_spill] sm:$0xff] %v11041_v39  ;;  %v11043_v40 = vld [vmem:[#allocation2 + $0x170] sm:$0xff]  ;;  %v1688_v41 = vld [vmem:[#allocation2 + $0x2] sm:$0xff] }
  0x46   : > { %9608 = vmatmul.mubr.msk.f32.gmra.mxu0 %vm360_vm1, %v10883_v63 }
  0x47   : > { %9558 = vmatmul.mubr.msk.f32.gmra.mxu1 %vm360_vm1, %v10881_v62  ;;  %9610 = vmatprep.mubr.msk.f32.mxu0 %vm360_vm1, %v10887_v1 }
  0x48   : > { %9560 = vmatprep.mubr.msk.f32.mxu1 %vm360_vm1, %v10885_v0 }
  0x4a   : > { %9611 = vmatmul.mubr.msk.f32.gmra.mxu0 %vm360_vm1, %v10899_v4 }
  0x4b   : > { %9561 = vmatmul.mubr.msk.f32.gmra.mxu1 %vm360_vm1, %v10897_v2  ;;  %9613 = vmatprep.mubr.msk.f32.mxu0 %vm360_vm1, %v10903_v6 }
  0x4c   : > { %9563 = vmatprep.mubr.msk.f32.mxu1 %vm360_vm1, %v10901_v5 }
  0x4e   : > { %9614 = vmatmul.mubr.msk.f32.gmra.mxu0 %vm360_vm1, %v10915_v8 }
  0x4f   : > { %9564 = vmatmul.mubr.msk.f32.gmra.mxu1 %vm360_vm1, %v10913_v7  ;;  %9616 = vmatprep.mubr.msk.f32.mxu0 %vm360_vm1, %v10919_v10 }
  0x50   : > { %9566 = vmatprep.mubr.msk.f32.mxu1 %vm360_vm1, %v10917_v9 }
  0x52   : > { %9617 = vmatmul.mubr.msk.f32.gmra.mxu0 %vm360_vm1, %v10931_v12 }
  0x53   : > { %9567 = vmatmul.mubr.msk.f32.gmra.mxu1 %vm360_vm1, %v10929_v11  ;;  %9619 = vmatprep.mubr.msk.f32.mxu0 %vm360_vm1, %v10935_v14 }
  0x54   : > { %9569 = vmatprep.mubr.msk.f32.mxu1 %vm360_vm1, %v10933_v13 }
  0x56   : > { %9620 = vmatmul.mubr.msk.f32.gmra.mxu0 %vm360_vm1, %v10947_v16 }
  0x57   : > { %9570 = vmatmul.mubr.msk.f32.gmra.mxu1 %vm360_vm1, %v10945_v15  ;;  %9622 = vmatprep.mubr.msk.f32.mxu0 %vm360_vm1, %v10951_v18 }
  0x58   : > { %9572 = vmatprep.mubr.msk.f32.mxu1 %vm360_vm1, %v10949_v17 }
  0x5a   : > { %9623 = vmatmul.mubr.msk.f32.gmra.mxu0 %vm360_vm1, %v10963_v20 }
  0x5b   : > { %9573 = vmatmul.mubr.msk.f32.gmra.mxu1 %vm360_vm1, %v10961_v19  ;;  %9625 = vmatprep.mubr.msk.f32.mxu0 %vm360_vm1, %v10967_v22 }
  0x5c   : > { %9575 = vmatprep.mubr.msk.f32.mxu1 %vm360_vm1, %v10965_v21 }
  0x5e   : > { %9626 = vmatmul.mubr.msk.f32.gmra.mxu0 %vm360_vm1, %v10979_v24 }
  0x5f   : > { %9576 = vmatmul.mubr.msk.f32.gmra.mxu1 %vm360_vm1, %v10977_v23  ;;  %9628 = vmatprep.mubr.msk.f32.mxu0 %vm360_vm1, %v10983_v26 }
  0x60   : > { %9578 = vmatprep.mubr.msk.f32.mxu1 %vm360_vm1, %v10981_v25 }
  0x62   : > { %9629 = vmatmul.mubr.msk.f32.gmra.mxu0 %vm360_vm1, %v10995_v28 }
  0x63   : > { %9579 = vmatmul.mubr.msk.f32.gmra.mxu1 %vm360_vm1, %v10993_v27  ;;  %9631 = vmatprep.mubr.msk.f32.mxu0 %vm360_vm1, %v10999_v30 }
  0x64   : > { %9581 = vmatprep.mubr.msk.f32.mxu1 %vm360_vm1, %v10997_v29 }
  0x66   : > { %9632 = vmatmul.mubr.msk.f32.gmra.mxu0 %vm360_vm1, %v11011_v32 }
  0x67   : > { %9582 = vmatmul.mubr.msk.f32.gmra.mxu1 %vm360_vm1, %v11009_v31  ;;  %9634 = vmatprep.mubr.msk.f32.mxu0 %vm360_vm1, %v11015_v34 }
  0x68   : > { %9584 = vmatprep.mubr.msk.f32.mxu1 %vm360_vm1, %v11013_v33 }
  0x6a   : > { %9635 = vmatmul.mubr.msk.f32.gmra.mxu0 %vm360_vm1, %v11027_v36 }
  0x6b   : > { %9585 = vmatmul.mubr.msk.f32.gmra.mxu1 %vm360_vm1, %v11025_v35  ;;  %9637 = vmatprep.mubr.msk.f32.mxu0 %vm360_vm1, %v11031_v38 }
  0x6c   : > { %9587 = vmatprep.mubr.msk.f32.mxu1 %vm360_vm1, %v11029_v37  ;;  %v11052_v37 = vld [vmem:[#allocation2 + $0x1a] sm:$0xff] }
  0x6e   : > { %9638 = vmatmul.mubr.msk.f32.gmra.mxu0 %vm360_vm1, %v11043_v40 }
  0x6f   : > { %9588 = vmatmul.mubr.msk.f32.gmra.mxu1 %vm360_vm1, %v11041_v39  ;;  %9692 = vmatprep.mubr.msk.f32.mxu0 %vm360_vm1, %v10791_v43  ;;  %v11060_v39 = vld [vmem:[%s14152_s1 + $0x18] sm:$0xf] }
  0x70   : > { %9642 = vmatprep.mubr.msk.f32.mxu1 %vm360_vm1, %v1688_v41  ;;  %v11065_v41 = vld [vmem:[%s14152_s1 + $0x1c] sm:$0xf]  ;;  %v11075_v43 = vld [vmem:[#allocation2 + $0x32] sm:$0xff] }
  0x72   : > { %9693 = vmatmul.mubr.msk.f32.vlgmr.msra.gmra.mxu0 %vm360_vm1, %v10806_v46  ;;  %v11093_v46 = vld [vmem:[#allocation2 + $0x4a] sm:$0xff] }
  0x73   : > { %9643 = vmatmul.mubr.msk.f32.vlgmr.msra.gmra.mxu1 %vm360_vm1, %v1689_v3  ;;  %v11071_v3 = vld [vmem:[#allocation2 + $0x22] sm:$0xff]  ;;  %9695 = vmatprep.mubr.msk.f32.mxu0 %vm360_vm1, %v10812_v48  ;;  %v11101_v48 = vld [vmem:[#allocation2 + $0x52] sm:$0xff] }
  0x74   : > { %9741 = vmatpush3.msk.msra.mxu1 %vm666_vm0, %v10798_v44  ;;  %9645 = vmatprep.mubr.msk.f32.mxu1 %vm360_vm1, %v11052_v37  ;;  %v11089_v44 = vld [vmem:[#allocation2 + $0x3a] sm:$0xff] }
  0x75   : > { %9791 = vmatpush3.msk.msra.mxu0 %vm666_vm0, %v10849_v55  ;;  %9840 = vmatprep.subr.msk.mxu1 %vm666_vm0, %v11060_v39  ;;  %v11125_v55 = vld [vmem:[#allocation2 + $0x82] sm:$0xff] }
  0x76   : > { %9890 = vmatprep.subr.msk.mxu0 %vm666_vm0, %v11065_v41  ;;  %9696 = vmatmul.mubr.msk.f32.gmra.mxu0 %vm360_vm1, %v10828_v50  ;;  %v11105_v50 = vld [vmem:[#allocation2 + $0x62] sm:$0xff] }
  0x77   : > { %9646 = vmatmul.mubr.msk.f32.gmra.mxu1 %vm360_vm1, %v11071_v3  ;;  %9698 = vmatprep.mubr.msk.f32.mxu0 %vm360_vm1, %v10832_v52  ;;  %v11113_v52 = vld [vmem:[#allocation2 + $0x6a] sm:$0xff] }
  0x78   : > { %9648 = vmatprep.mubr.msk.f32.mxu1 %vm360_vm1, %v11075_v43 }
  0x7a   : > { %9699 = vmatmul.mubr.msk.f32.gmra.mxu0 %vm360_vm1, %v10844_v54  ;;  %v11117_v54 = vld [vmem:[#allocation2 + $0x7a] sm:$0xff] }
  0x7b   : > { %9649 = vmatmul.mubr.msk.f32.gmra.mxu1 %vm360_vm1, %v11089_v44  ;;  %9701 = vmatprep.mubr.msk.f32.mxu0 %vm360_vm1, %v10853_v57  ;;  %v11129_v57 = vld [vmem:[#allocation2 + $0x92] sm:$0xff] }
  0x7c   : > { %9651 = vmatprep.mubr.msk.f32.mxu1 %vm360_vm1, %v11093_v46 }
  0x7e   : > { %9702 = vmatmul.mubr.msk.f32.gmra.mxu0 %vm360_vm1, %v10867_v59  ;;  %v11137_v59 = vld [vmem:[#allocation2 + $0x9a] sm:$0xff] }
  0x7f   : > { %9652 = vmatmul.mubr.msk.f32.gmra.mxu1 %vm360_vm1, %v11101_v48  ;;  %9704 = vmatprep.mubr.msk.f32.mxu0 %vm360_vm1, %v10871_v61  ;;  %v11141_v61 = vld [vmem:[#allocation2 + $0xaa] sm:$0xff] }
  0x80   : > { %9654 = vmatprep.mubr.msk.f32.mxu1 %vm360_vm1, %v11105_v50 }
  0x82   : > { %9705 = vmatmul.mubr.msk.f32.gmra.mxu0 %vm360_vm1, %v10883_v63  ;;  %v11149_v63 = vld [vmem:[#allocation2 + $0xb2] sm:$0xff] }
  0x83   : > { %9655 = vmatmul.mubr.msk.f32.gmra.mxu1 %vm360_vm1, %v11113_v52  ;;  %9707 = vmatprep.mubr.msk.f32.mxu0 %vm360_vm1, %v10887_v1  ;;  %v11153_v1 = vld [vmem:[#allocation2 + $0xc2] sm:$0xff] }
  0x84   : > { %9657 = vmatprep.mubr.msk.f32.mxu1 %vm360_vm1, %v11117_v54 }
  0x86   : > { %9708 = vmatmul.mubr.msk.f32.gmra.mxu0 %vm360_vm1, %v10899_v4  ;;  %v11161_v4 = vld [vmem:[#allocation2 + $0xca] sm:$0xff] }
  0x87   : > { %9658 = vmatmul.mubr.msk.f32.gmra.mxu1 %vm360_vm1, %v11125_v55  ;;  %9710 = vmatprep.mubr.msk.f32.mxu0 %vm360_vm1, %v10903_v6  ;;  %v11165_v6 = vld [vmem:[#allocation2 + $0xda] sm:$0xff] }
  0x88   : > { %9660 = vmatprep.mubr.msk.f32.mxu1 %vm360_vm1, %v11129_v57 }
  0x8a   : > { %9711 = vmatmul.mubr.msk.f32.gmra.mxu0 %vm360_vm1, %v10915_v8  ;;  %v11173_v8 = vld [vmem:[#allocation2 + $0xe2] sm:$0xff] }
  0x8b   : > { %9661 = vmatmul.mubr.msk.f32.gmra.mxu1 %vm360_vm1, %v11137_v59  ;;  %9713 = vmatprep.mubr.msk.f32.mxu0 %vm360_vm1, %v10919_v10  ;;  %v11177_v10 = vld [vmem:[#allocation2 + $0xf2] sm:$0xff] }
  0x8c   : > { %9663 = vmatprep.mubr.msk.f32.mxu1 %vm360_vm1, %v11141_v61 }
  0x8e   : > { %9714 = vmatmul.mubr.msk.f32.gmra.mxu0 %vm360_vm1, %v10931_v12  ;;  %v11185_v12 = vld [vmem:[#allocation2 + $0xfa] sm:$0xff] }
  0x8f   : > { %9664 = vmatmul.mubr.msk.f32.gmra.mxu1 %vm360_vm1, %v11149_v63  ;;  %9716 = vmatprep.mubr.msk.f32.mxu0 %vm360_vm1, %v10935_v14  ;;  %v11189_v14 = vld [vmem:[#allocation2 + $0x10a] sm:$0xff] }
  0x90   : > { %9666 = vmatprep.mubr.msk.f32.mxu1 %vm360_vm1, %v11153_v1 }
  0x92   : > { %9717 = vmatmul.mubr.msk.f32.gmra.mxu0 %vm360_vm1, %v10947_v16  ;;  %v11197_v16 = vld [vmem:[#allocation2 + $0x112] sm:$0xff] }
  0x93   : > { %9667 = vmatmul.mubr.msk.f32.gmra.mxu1 %vm360_vm1, %v11161_v4  ;;  %9719 = vmatprep.mubr.msk.f32.mxu0 %vm360_vm1, %v10951_v18  ;;  %v11201_v18 = vld [vmem:[#allocation2 + $0x122] sm:$0xff] }
  0x94   : > { %9669 = vmatprep.mubr.msk.f32.mxu1 %vm360_vm1, %v11165_v6 }
  0x96   : > { %9720 = vmatmul.mubr.msk.f32.gmra.mxu0 %vm360_vm1, %v10963_v20  ;;  %v11209_v20 = vld [vmem:[#allocation2 + $0x12a] sm:$0xff] }
  0x97   : > { %9670 = vmatmul.mubr.msk.f32.gmra.mxu1 %vm360_vm1, %v11173_v8  ;;  %9722 = vmatprep.mubr.msk.f32.mxu0 %vm360_vm1, %v10967_v22  ;;  %v11213_v22 = vld [vmem:[#allocation2 + $0x13a] sm:$0xff] }
  0x98   : > { %9672 = vmatprep.mubr.msk.f32.mxu1 %vm360_vm1, %v11177_v10 }
  0x9a   : > { %9723 = vmatmul.mubr.msk.f32.gmra.mxu0 %vm360_vm1, %v10979_v24  ;;  %v11221_v24 = vld [vmem:[#allocation2 + $0x142] sm:$0xff] }
  0x9b   : > { %9673 = vmatmul.mubr.msk.f32.gmra.mxu1 %vm360_vm1, %v11185_v12  ;;  %9725 = vmatprep.mubr.msk.f32.mxu0 %vm360_vm1, %v10983_v26  ;;  %v11225_v26 = vld [vmem:[#allocation2 + $0x152] sm:$0xff] }
  0x9c   : > { %9675 = vmatprep.mubr.msk.f32.mxu1 %vm360_vm1, %v11189_v14 }
  0x9e   : > { %9726 = vmatmul.mubr.msk.f32.gmra.mxu0 %vm360_vm1, %v10995_v28  ;;  %v11233_v28 = vld [vmem:[#allocation2 + $0x15a] sm:$0xff] }
  0x9f   : > { %9676 = vmatmul.mubr.msk.f32.gmra.mxu1 %vm360_vm1, %v11197_v16  ;;  %9728 = vmatprep.mubr.msk.f32.mxu0 %vm360_vm1, %v10999_v30  ;;  %v11237_v30 = vld [vmem:[#allocation2 + $0x16a] sm:$0xff] }
  0xa0   : > { %9678 = vmatprep.mubr.msk.f32.mxu1 %vm360_vm1, %v11201_v18 }
  0xa2   : > { %9729 = vmatmul.mubr.msk.f32.gmra.mxu0 %vm360_vm1, %v11011_v32  ;;  %v11239_v32 = vld [vmem:[#allocation2 + $0x180] sm:$0xff] }
  0xa3   : > { %9679 = vmatmul.mubr.msk.f32.gmra.mxu1 %vm360_vm1, %v11209_v20  ;;  %9731 = vmatprep.mubr.msk.f32.mxu0 %vm360_vm1, %v11015_v34  ;;  %v11247_v34 = vld [vmem:[#allocation2 + $0x172] sm:$0xff] }
  0xa4   : > { %9681 = vmatprep.mubr.msk.f32.mxu1 %vm360_vm1, %v11213_v22 }
  0xa6   : > { %9732 = vmatmul.mubr.msk.f32.gmra.mxu0 %vm360_vm1, %v11027_v36  ;;  %v11251_v36 = vld [vmem:[#allocation2 + $0x188] sm:$0xff] }
  0xa7   : > { %9682 = vmatmul.mubr.msk.f32.gmra.mxu1 %vm360_vm1, %v11221_v24  ;;  %9734 = vmatprep.mubr.msk.f32.mxu0 %vm360_vm1, %v11031_v38  ;;  %v11268_v38 = vld [vmem:[%s14152_s1 + $0x20] sm:$0xf] }
  0xa8   : > { %9684 = vmatprep.mubr.msk.f32.mxu1 %vm360_vm1, %v11225_v26 }
  0xaa   : > { %9735 = vmatmul.mubr.msk.f32.gmra.mxu0 %vm360_vm1, %v11043_v40  ;;  %v11446_v40 = vld [vmem:[#allocation2 + $0x189] sm:$0xff] }
  0xab   : > { %9685 = vmatmul.mubr.msk.f32.gmra.mxu1 %vm360_vm1, %v11233_v28  ;;  %9737 = vmatprep.mubr.msk.f32.mxu0 %vm360_vm1, %v11239_v32 }
  0xac   : > { %9687 = vmatprep.mubr.msk.f32.mxu1 %vm360_vm1, %v11237_v30 }
  0xae   : > { %9738 = vmatmul.mubr.msk.f32.gmra.mxu0 %vm360_vm1, %v11251_v36 }
  0xaf   : > { %9688 = vmatmul.mubr.msk.f32.gmra.mxu1 %vm360_vm1, %v11247_v34  ;;  %9792 = vmatprep.mubr.msk.f32.mxu0 %vm360_vm1, %v11052_v37 }
  0xb0   : > { %9742 = vmatprep.mubr.msk.f32.mxu1 %vm360_vm1, %v10789_v42 }
  0xb2   : > { %9793 = vmatmul.mubr.msk.f32.vlgmr.msra.gmra.mxu0 %vm360_vm1, %v11071_v3 }
  0xb3   : > { %9743 = vmatmul.mubr.msk.f32.vlgmr.msra.gmra.mxu1 %vm360_vm1, %v10804_v45  ;;  %9795 = vmatprep.mubr.msk.f32.mxu0 %vm360_vm1, %v11075_v43 }
  0xb4   : > { %9841 = vmatpush3.msk.msra.mxu1 %vm666_vm0, %v11060_v39  ;;  %9745 = vmatprep.mubr.msk.f32.mxu1 %vm360_vm1, %v10810_v47  ;;  %v14229_v39 = vld [vmem:[#allocation5_spill] sm:$0xff] }
  0xb5   : > { %9891 = vmatpush3.msk.msra.mxu0 %vm666_vm0, %v11065_v41  ;;  %9940 = vmatprep.subr.msk.mxu1 %vm666_vm0, %v11268_v38  ;;  %v11448_v41 = vld [vmem:[#allocation2 + $0x18a] sm:$0xff] }
  0xb6   : > { %9796 = vmatmul.mubr.msk.f32.gmra.mxu0 %vm360_vm1, %v11089_v44  ;;  %v3249_v44 = vld [vmem:[#allocation2 + $0x30] sm:$0xff] }
  0xb7   : > { %9746 = vmatmul.mubr.msk.f32.gmra.mxu1 %vm360_vm1, %v10826_v49  ;;  %9798 = vmatprep.mubr.msk.f32.mxu0 %vm360_vm1, %v11093_v46  ;;  %v3639_v46 = vld [vmem:[#allocation2 + $0x31] sm:$0xff] }
  0xb8   : > { %9748 = vmatprep.mubr.msk.f32.mxu1 %vm360_vm1, %v10830_v51 }
  0xba   : > { %9799 = vmatmul.mubr.msk.f32.gmra.mxu0 %vm360_vm1, %v11101_v48 }
  0xbb   : > { %9749 = vmatmul.mubr.msk.f32.gmra.mxu1 %vm360_vm1, %v10842_v53  ;;  %9801 = vmatprep.mubr.msk.f32.mxu0 %vm360_vm1, %v11105_v50 }
  0xbc   : > { %9751 = vmatprep.mubr.msk.f32.mxu1 %vm360_vm1, %v10851_v56 }
  0xbe   : > { %9802 = vmatmul.mubr.msk.f32.gmra.mxu0 %vm360_vm1, %v11113_v52  ;;  %v3250_v52 = vld [vmem:[#allocation2 + $0x38] sm:$0xff] }
  0xbf   : > { %9752 = vmatmul.mubr.msk.f32.gmra.mxu1 %vm360_vm1, %v10865_v58  ;;  %9804 = vmatprep.mubr.msk.f32.mxu0 %vm360_vm1, %v11117_v54  ;;  %v3640_v54 = vld [vmem:[#allocation2 + $0x39] sm:$0xff] }
  0xc0   : > { %9754 = vmatprep.mubr.msk.f32.mxu1 %vm360_vm1, %v10869_v60 }
  0xc2   : > { %9805 = vmatmul.mubr.msk.f32.gmra.mxu0 %vm360_vm1, %v11125_v55 }
  0xc3   : > { %9755 = vmatmul.mubr.msk.f32.gmra.mxu1 %vm360_vm1, %v10881_v62  ;;  %9807 = vmatprep.mubr.msk.f32.mxu0 %vm360_vm1, %v11129_v57 }
  0xc4   : > { %9757 = vmatprep.mubr.msk.f32.mxu1 %vm360_vm1, %v10885_v0 }
  0xc6   : > { %9808 = vmatmul.mubr.msk.f32.gmra.mxu0 %vm360_vm1, %v11137_v59  ;;  %v3251_v59 = vld [vmem:[#allocation2 + $0x48] sm:$0xff] }
  0xc7   : > { %9758 = vmatmul.mubr.msk.f32.gmra.mxu1 %vm360_vm1, %v10897_v2  ;;  %9810 = vmatprep.mubr.msk.f32.mxu0 %vm360_vm1, %v11141_v61  ;;  %v3641_v61 = vld [vmem:[#allocation2 + $0x49] sm:$0xff] }
  0xc8   : > { %9760 = vmatprep.mubr.msk.f32.mxu1 %vm360_vm1, %v10901_v5 }
  0xca   : > { %9811 = vmatmul.mubr.msk.f32.gmra.mxu0 %vm360_vm1, %v11149_v63 }
  0xcb   : > { %9761 = vmatmul.mubr.msk.f32.gmra.mxu1 %vm360_vm1, %v10913_v7  ;;  %9813 = vmatprep.mubr.msk.f32.mxu0 %vm360_vm1, %v11153_v1 }
  0xcc   : > { %9763 = vmatprep.mubr.msk.f32.mxu1 %vm360_vm1, %v10917_v9 }
  0xce   : > { %9814 = vmatmul.mubr.msk.f32.gmra.mxu0 %vm360_vm1, %v11161_v4 }
  0xcf   : > { %9764 = vmatmul.mubr.msk.f32.gmra.mxu1 %vm360_vm1, %v10929_v11  ;;  %9816 = vmatprep.mubr.msk.f32.mxu0 %vm360_vm1, %v11165_v6  ;;  %v3252_v6 = vld [vmem:[#allocation2 + $0x50] sm:$0xff] }
  0xd0   : > { %9766 = vmatprep.mubr.msk.f32.mxu1 %vm360_vm1, %v10933_v13 }
  0xd2   : > { %v11336_v42 = vpop.f32.mrf.mxu0  ;;  %9817 = vmatmul.mubr.msk.f32.gmra.mxu0 %vm360_vm1, %v11173_v8  ;;  %v3642_v8 = vld [vmem:[#allocation2 + $0x51] sm:$0xff] }
  0xd3   : > { %14202 = vst [vmem:[#allocation6_spill] sm:$0xff] %v11336_v42  ;;  %v11338_v45 = vpop.f32.mrf.mxu1  ;;  %9767 = vmatmul.mubr.msk.f32.gmra.mxu1 %vm360_vm1, %v10945_v15  ;;  %9819 = vmatprep.mubr.msk.f32.mxu0 %vm360_vm1, %v11177_v10  ;;  %v4049_v42 = vld [vmem:[#allocation2 + $0x122] sm:$0xff] }
  0xd4   : > { %14203 = vst [vmem:[#allocation7_spill] sm:$0xff] %v11338_v45  ;;  %9769 = vmatprep.mubr.msk.f32.mxu1 %vm360_vm1, %v10949_v17  ;;  %v11348_v47 = vpop.f32.mrf.mxu0 }
  0xd5   : > { %14204 = vst [vmem:[#allocation8_spill] sm:$0xff] %v11348_v47  ;;  %v11350_v49 = vpop.f32.mrf.mxu1 }
  0xd6   : > { %14205 = vst [vmem:[#allocation9_spill] sm:$0xff] %v11350_v49  ;;  %v11352_v51 = vpop.f32.mrf.mxu0  ;;  %9820 = vmatmul.mubr.msk.f32.gmra.mxu0 %vm360_vm1, %v11185_v12 }
  0xd7   : > { %14206 = vst [vmem:[#allocation10_spill] sm:$0xff] %v11352_v51  ;;  %v11354_v53 = vpop.f32.mrf.mxu1  ;;  %9770 = vmatmul.mubr.msk.f32.gmra.mxu1 %vm360_vm1, %v10961_v19  ;;  %9822 = vmatprep.mubr.msk.f32.mxu0 %vm360_vm1, %v11189_v14  ;;  %v3253_v14 = vld [vmem:[#allocation2 + $0x60] sm:$0xff] }
  0xd8   : > { %14207 = vst [vmem:[#allocation11_spill] sm:$0xff] %v11354_v53  ;;  %9772 = vmatprep.mubr.msk.f32.mxu1 %vm360_vm1, %v10965_v21  ;;  %v11362_v56 = vpop.f32.mrf.mxu0 }
  0xd9   : > { %14208 = vst [vmem:[#allocation12_spill] sm:$0xff] %v11362_v56  ;;  %v11364_v58 = vpop.f32.mrf.mxu1 }
  0xda   : > { %14209 = vst [vmem:[#allocation13_spill] sm:$0xff] %v11364_v58  ;;  %v11368_v60 = vpop.f32.mrf.mxu0  ;;  %9823 = vmatmul.mubr.msk.f32.gmra.mxu0 %vm360_vm1, %v11197_v16  ;;  %v3643_v16 = vld [vmem:[#allocation2 + $0x61] sm:$0xff] }
  0xdb   : > { %14210 = vst [vmem:[#allocation14_spill] sm:$0xff] %v11368_v60  ;;  %v11370_v62 = vpop.f32.mrf.mxu1  ;;  %9773 = vmatmul.mubr.msk.f32.gmra.mxu1 %vm360_vm1, %v10977_v23  ;;  %9825 = vmatprep.mubr.msk.f32.mxu0 %vm360_vm1, %v11201_v18  ;;  %v4035_v60 = vld [vmem:[#allocation2 + $0x7a] sm:$0xff] }
  0xdc   : > { %14211 = vst [vmem:[#allocation15_spill] sm:$0xff] %v11370_v62  ;;  %9775 = vmatprep.mubr.msk.f32.mxu1 %vm360_vm1, %v10981_v25  ;;  %v11378_v0 = vpop.f32.mrf.mxu0  ;;  %v14224_v25 = vld [vmem:[#allocation4_spill] sm:$0xff] }
  0xdd   : > { %14212 = vst [vmem:[#allocation16_spill] sm:$0xff] %v11378_v0  ;;  %v11380_v2 = vpop.f32.mrf.mxu1 }
  0xde   : > { %14213 = vst [vmem:[#allocation17_spill] sm:$0xff] %v11380_v2  ;;  %v11384_v5 = vpop.f32.mrf.mxu0  ;;  %9826 = vmatmul.mubr.msk.f32.gmra.mxu0 %vm360_vm1, %v11209_v20 }
  0xdf   : > { %14214 = vst [vmem:[#allocation18_spill] sm:$0xff] %v11384_v5  ;;  %v11386_v7 = vpop.f32.mrf.mxu1  ;;  %9776 = vmatmul.mubr.msk.f32.gmra.mxu1 %vm360_vm1, %v10993_v27  ;;  %9828 = vmatprep.mubr.msk.f32.mxu0 %vm360_vm1, %v11213_v22 }
  0xe0   : > { %14215 = vst [vmem:[#allocation19_spill] sm:$0xff] %v11386_v7  ;;  %9778 = vmatprep.mubr.msk.f32.mxu1 %vm360_vm1, %v10997_v29  ;;  %v11394_v9 = vpop.f32.mrf.mxu0 }
  0xe1   : > { %14216 = vst [vmem:[#allocation20_spill] sm:$0xff] %v11394_v9  ;;  %v11396_v11 = vpop.f32.mrf.mxu1 }
  0xe2   : > { %14217 = vst [vmem:[#allocation21_spill] sm:$0xff] %v11396_v11  ;;  %v11400_v13 = vpop.f32.mrf.mxu0  ;;  %9829 = vmatmul.mubr.msk.f32.gmra.mxu0 %vm360_vm1, %v11221_v24 }
  0xe3   : > { %14218 = vst [vmem:[#allocation22_spill] sm:$0xff] %v11400_v13  ;;  %v11402_v15 = vpop.f32.mrf.mxu1  ;;  %9779 = vmatmul.mubr.msk.f32.gmra.mxu1 %vm360_vm1, %v11009_v31  ;;  %9831 = vmatprep.mubr.msk.f32.mxu0 %vm360_vm1, %v11225_v26  ;;  %v11432_v31 = vld [vmem:[#allocation2 + $0x181] sm:$0xff] }
  0xe4   : > { %14219 = vst [vmem:[#allocation23_spill] sm:$0xff] %v11402_v15  ;;  %9781 = vmatprep.mubr.msk.f32.mxu1 %vm360_vm1, %v11013_v33  ;;  %v11410_v17 = vpop.f32.mrf.mxu0  ;;  %v11434_v33 = vld [vmem:[#allocation2 + $0x182] sm:$0xff] }
  0xe5   : > { %14220 = vst [vmem:[#allocation24_spill] sm:$0xff] %v11410_v17  ;;  %v11412_v19 = vpop.f32.mrf.mxu1  ;;  %v3254_v26 = vld [vmem:[#allocation2 + $0x68] sm:$0xff] }
  0xe6   : > { %14221 = vst [vmem:[#allocation25_spill] sm:$0xff] %v11412_v19  ;;  %v11416_v21 = vpop.f32.mrf.mxu0  ;;  %9832 = vmatmul.mubr.msk.f32.gmra.mxu0 %vm360_vm1, %v11233_v28  ;;  %v3644_v28 = vld [vmem:[#allocation2 + $0x69] sm:$0xff] }
  0xe7   : > { %14222 = vst [vmem:[#allocation26_spill] sm:$0xff] %v11416_v21  ;;  %v11418_v23 = vpop.f32.mrf.mxu1  ;;  %9782 = vmatmul.mubr.msk.f32.gmra.mxu1 %vm360_vm1, %v11025_v35  ;;  %9834 = vmatprep.mubr.msk.f32.mxu0 %vm360_vm1, %v11237_v30  ;;  %v3665_v21 = vld [vmem:[#allocation2 + $0x169] sm:$0xff] }
  0xe8   : > { %14223 = vst [vmem:[#allocation27_spill] sm:$0xff] %v11418_v23  ;;  %9784 = vmatprep.mubr.msk.f32.mxu1 %vm360_vm1, %v14224_v25  ;;  %v11426_v27 = vpop.f32.mrf.mxu0  ;;  %v3645_v25 = vld [vmem:[#allocation2 + $0x79] sm:$0xff]  ;;  %v3663_v23 = vld [vmem:[#allocation2 + $0x151] sm:$0xff] }
  0xe9   : > { %14225 = vst [vmem:[#allocation4_spill] sm:$0xff] %v11426_v27  ;;  %v11428_v29 = vpop.f32.mrf.mxu1 }
  0xea   : > { %14226 = vst [vmem:[#allocation28_spill] sm:$0xff] %v11428_v29  ;;  %v11436_v37 = vpop.f32.mrf.mxu0  ;;  %9835 = vmatmul.mubr.msk.f32.gmra.mxu0 %vm360_vm1, %v11247_v34 }
  0xeb   : > { %14227 = vst [vmem:[#allocation29_spill] sm:$0xff] %v11436_v37  ;;  %v11438_v35 = vpop.f32.mrf.mxu1  ;;  %9785 = vmatmul.mubr.msk.f32.gmra.mxu1 %vm360_vm1, %v14229_v39  ;;  %9837 = vmatprep.mubr.msk.f32.mxu0 %vm360_vm1, %v11434_v33 }
  0xec   : > { %14228 = vst [vmem:[#allocation30_spill] sm:$0xff] %v11438_v35  ;;  %9787 = vmatprep.mubr.msk.f32.mxu1 %vm360_vm1, %v11432_v31  ;;  %v11450_v3 = vpop.f32.mrf.mxu0 }
  0xed   : > { %14230 = vst [vmem:[#allocation5_spill] sm:$0xff] %v11450_v3  ;;  %v11452_v43 = vpop.f32.mrf.mxu1 }
  0xee   : > { %14231 = vst [vmem:[#allocation31_spill] sm:$0xff] %v11452_v43  ;;  %v11456_v48 = vpop.f32.mrf.mxu0  ;;  %9838 = vmatmul.mubr.msk.f32.gmra.mxu0 %vm360_vm1, %v11448_v41  ;;  %v3657_v43 = vld [vmem:[#allocation2 + $0x109] sm:$0xff] }
  0xef   : > { %14232 = vst [vmem:[#allocation32_spill] sm:$0xff] %v11456_v48  ;;  %v11458_v50 = vpop.f32.mrf.mxu1  ;;  %9788 = vmatmul.mubr.msk.f32.gmra.mxu1 %vm360_vm1, %v11446_v40  ;;  %9892 = vmatprep.mubr.msk.f32.mxu0 %vm360_vm1, %v3639_v46 }
  0xf0   : > { %14233 = vst [vmem:[#allocation33_spill] sm:$0xff] %v11458_v50  ;;  %9842 = vmatprep.mubr.msk.f32.mxu1 %vm360_vm1, %v3249_v44  ;;  %v11465_v55 = vpop.f32.mrf.mxu0 }
  0xf1   : > { %14234 = vst [vmem:[#allocation34_spill] sm:$0xff] %v11465_v55  ;;  %v11467_v57 = vpop.f32.mrf.mxu1  ;;  %v3661_v55 = vld [vmem:[#allocation2 + $0x139] sm:$0xff] }
  0xf2   : > { %14235 = vst [vmem:[#allocation35_spill] sm:$0xff] %v11467_v57  ;;  %v9594_v1 = vpop.f32.mrf.mxu0  ;;  %9893 = vmatmul.mubr.msk.f32.vlgmr.msra.gmra.mxu0 %vm360_vm1, %v3640_v54  ;;  %v3256_v54 = vld [vmem:[#allocation2 + $0x80] sm:$0xff]  ;;  %v3655_v57 = vld [vmem:[#allocation2 + $0xf1] sm:$0xff] }
  0xf3   : > { %v9544_v63 = vpop.f32.mrf.mxu1  ;;  %9843 = vmatmul.mubr.msk.f32.vlgmr.msra.gmra.mxu1 %vm360_vm1, %v3250_v52  ;;  %9895 = vmatprep.mubr.msk.f32.mxu0 %vm360_vm1, %v3641_v61 }
  0xf4   : > { %v11472_v4 = vadd.f32 %v9594_v1, %v9544_v63  ;;  %9941 = vmatpush3.msk.msra.mxu1 %vm666_vm0, %v11268_v38  ;;  %9845 = vmatprep.mubr.msk.f32.mxu1 %vm360_vm1, %v3251_v59  ;;  %v1529_v12 = vpop.f32.mrf.mxu0  ;;  %v3255_v38 = vld [vmem:[#allocation2 + $0x78] sm:$0xff]  ;;  %v3646_v59 = vld [vmem:[#allocation2 + $0x81] sm:$0xff]  ;;  %v3257_v1 = vld [vmem:[#allocation2 + $0x90] sm:$0xff] }
  0xf5   : > { %v1205_v10 = vpop.f32.mrf.mxu1 }
  0xf6   : > { %v11478_v18 = vadd.f32 %v1529_v12, %v1205_v10  ;;  %v9597_v22 = vpop.f32.mrf.mxu0  ;;  %9896 = vmatmul.mubr.msk.f32.gmra.mxu0 %vm360_vm1, %v3642_v8 }
  0xf7   : > { %v9547_v20 = vpop.f32.mrf.mxu1  ;;  %9846 = vmatmul.mubr.msk.f32.gmra.mxu1 %vm360_vm1, %v3252_v6  ;;  %9898 = vmatprep.mubr.msk.f32.mxu0 %vm360_vm1, %v3643_v16  ;;  %v3647_v6 = vld [vmem:[#allocation2 + $0x91] sm:$0xff] }
  0xf8   : > { %v11482_v24 = vadd.f32 %v9597_v22, %v9547_v20  ;;  %9848 = vmatprep.mubr.msk.f32.mxu1 %vm360_vm1, %v3253_v14  ;;  %v1539_v34 = vpop.f32.mrf.mxu0  ;;  %v3258_v16 = vld [vmem:[#allocation2 + $0x98] sm:$0xff] }
  0xf9   : > { %v1215_v30 = vpop.f32.mrf.mxu1  ;;  %v3648_v20 = vld [vmem:[#allocation2 + $0x99] sm:$0xff] }
  0xfa   : > { %v11486_v39 = vadd.f32 %v1539_v34, %v1215_v30  ;;  %v9600_v46 = vpop.f32.mrf.mxu0  ;;  %9899 = vmatmul.mubr.msk.f32.gmra.mxu0 %vm360_vm1, %v3644_v28  ;;  %v3259_v28 = vld [vmem:[#allocation2 + $0xa8] sm:$0xff] }
  0xfb   : > { %v9550_v44 = vpop.f32.mrf.mxu1  ;;  %9849 = vmatmul.mubr.msk.f32.gmra.mxu1 %vm360_vm1, %v3254_v26  ;;  %9901 = vmatprep.mubr.msk.f32.mxu0 %vm360_vm1, %v3645_v25  ;;  %v3649_v30 = vld [vmem:[#allocation2 + $0xa9] sm:$0xff] }
  0xfc   : > { %v11490_v52 = vadd.f32 %v9600_v46, %v9550_v44  ;;  %9851 = vmatprep.mubr.msk.f32.mxu1 %vm360_vm1, %v3255_v38  ;;  %v1549_v63 = vpop.f32.mrf.mxu0  ;;  %v3260_v46 = vld [vmem:[#allocation2 + $0xb0] sm:$0xff] }
  0xfd   : > { %v1225_v61 = vpop.f32.mrf.mxu1 }
  0xfe   : > { %v11494_v8 = vadd.f32 %v1549_v63, %v1225_v61  ;;  %v9603_v12 = vpop.f32.mrf.mxu0  ;;  %9902 = vmatmul.mubr.msk.f32.gmra.mxu0 %vm360_vm1, %v3646_v59  ;;  %v3261_v63 = vld [vmem:[#allocation2 + $0xc0] sm:$0xff] }
  0xff   : > { %v9553_v10 = vpop.f32.mrf.mxu1  ;;  %9852 = vmatmul.mubr.msk.f32.gmra.mxu1 %vm360_vm1, %v3256_v54  ;;  %9904 = vmatprep.mubr.msk.f32.mxu0 %vm360_vm1, %v3647_v6  ;;  %v3650_v54 = vld [vmem:[#allocation2 + $0xb1] sm:$0xff] }
 0x100   : > { %v11498_v14 = vadd.f32 %v9603_v12, %v9553_v10  ;;  %9854 = vmatprep.mubr.msk.f32.mxu1 %vm360_vm1, %v3257_v1  ;;  %v1559_v26 = vpop.f32.mrf.mxu0  ;;  %v3651_v1 = vld [vmem:[#allocation2 + $0xc1] sm:$0xff] }
 0x101   : > { %v1235_v22 = vpop.f32.mrf.mxu1 }
 0x102   : > { %v11502_v34 = vadd.f32 %v1559_v26, %v1235_v22  ;;  %v9606_v25 = vpop.f32.mrf.mxu0  ;;  %9905 = vmatmul.mubr.msk.f32.gmra.mxu0 %vm360_vm1, %v3648_v20  ;;  %v3262_v20 = vld [vmem:[#allocation2 + $0xc8] sm:$0xff] }
 0x103   : > { %v9556_v38 = vpop.f32.mrf.mxu1  ;;  %9855 = vmatmul.mubr.msk.f32.gmra.mxu1 %vm360_vm1, %v3258_v16  ;;  %9907 = vmatprep.mubr.msk.f32.mxu0 %vm360_vm1, %v3649_v30  ;;  %v3652_v22 = vld [vmem:[#allocation2 + $0xc9] sm:$0xff]  ;;  %v3263_v30 = vld [vmem:[#allocation2 + $0xd8] sm:$0xff] }
 0x104   : > { %v11506_v44 = vadd.f32 %v9606_v25, %v9556_v38  ;;  %9857 = vmatprep.mubr.msk.f32.mxu1 %vm360_vm1, %v3259_v28  ;;  %v1569_v61 = vpop.f32.mrf.mxu0  ;;  %v3653_v38 = vld [vmem:[#allocation2 + $0xd9] sm:$0xff] }
 0x105   : > { %v1245_v59 = vpop.f32.mrf.mxu1 }
 0x106   : > { %v11510_v6 = vadd.f32 %v1569_v61, %v1245_v59  ;;  %v9609_v12 = vpop.f32.mrf.mxu0  ;;  %9908 = vmatmul.mubr.msk.f32.gmra.mxu0 %vm360_vm1, %v3650_v54  ;;  %v3264_v54 = vld [vmem:[#allocation2 + $0xe0] sm:$0xff] }
 0x107   : > { %v9559_v10 = vpop.f32.mrf.mxu1  ;;  %9858 = vmatmul.mubr.msk.f32.gmra.mxu1 %vm360_vm1, %v3260_v46  ;;  %9910 = vmatprep.mubr.msk.f32.mxu0 %vm360_vm1, %v3651_v1 }
 0x108   : > { %v11514_v16 = vadd.f32 %v9609_v12, %v9559_v10  ;;  %9860 = vmatprep.mubr.msk.f32.mxu1 %vm360_vm1, %v3261_v63  ;;  %v1579_v28 = vpop.f32.mrf.mxu0  ;;  %v3654_v63 = vld [vmem:[#allocation2 + $0xe1] sm:$0xff]  ;;  %v3265_v12 = vld [vmem:[#allocation2 + $0xf0] sm:$0xff] }
 0x109   : > { %v1255_v26 = vpop.f32.mrf.mxu1 }
 0x10a   : > { %v11518_v25 = vadd.f32 %v1579_v28, %v1255_v26  ;;  %v9612_v61 = vpop.f32.mrf.mxu0  ;;  %9911 = vmatmul.mubr.msk.f32.gmra.mxu0 %vm360_vm1, %v3652_v22  ;;  %v3266_v22 = vld [vmem:[#allocation2 + $0xf8] sm:$0xff] }
 0x10b   : > { %v9562_v59 = vpop.f32.mrf.mxu1  ;;  %9861 = vmatmul.mubr.msk.f32.gmra.mxu1 %vm360_vm1, %v3262_v20  ;;  %9913 = vmatprep.mubr.msk.f32.mxu0 %vm360_vm1, %v3653_v38 }
 0x10c   : > { %v11522_v46 = vadd.f32 %v9612_v61, %v9562_v59  ;;  %9863 = vmatprep.mubr.msk.f32.mxu1 %vm360_vm1, %v3263_v30  ;;  %v1589_v10 = vpop.f32.mrf.mxu0  ;;  %v3656_v30 = vld [vmem:[#allocation2 + $0xf9] sm:$0xff]  ;;  %v3267_v61 = vld [vmem:[#allocation2 + $0x108] sm:$0xff] }
 0x10d   : > { %v1265_v1 = vpop.f32.mrf.mxu1 }
 0x10e   : > { %v11526_v26 = vadd.f32 %v1589_v10, %v1265_v1  ;;  %v9615_v50 = vpop.f32.mrf.mxu0  ;;  %9914 = vmatmul.mubr.msk.f32.gmra.mxu0 %vm360_vm1, %v3654_v63 }
 0x10f   : > { %v9565_v28 = vpop.f32.mrf.mxu1  ;;  %9864 = vmatmul.mubr.msk.f32.gmra.mxu1 %vm360_vm1, %v3264_v54  ;;  %9916 = vmatprep.mubr.msk.f32.mxu0 %vm360_vm1, %v3655_v57  ;;  %v3268_v54 = vld [vmem:[#allocation2 + $0x110] sm:$0xff] }
 0x110   : > { %v11530_v20 = vadd.f32 %v9615_v50, %v9565_v28  ;;  %9866 = vmatprep.mubr.msk.f32.mxu1 %vm360_vm1, %v3265_v12  ;;  %v1599_v59 = vpop.f32.mrf.mxu0  ;;  %v3658_v57 = vld [vmem:[#allocation2 + $0x111] sm:$0xff]  ;;  %v3269_v28 = vld [vmem:[#allocation2 + $0x120] sm:$0xff] }
 0x111   : > { %v1275_v38 = vpop.f32.mrf.mxu1 }
 0x112   : > { %v11534_v1 = vadd.f32 %v1599_v59, %v1275_v38  ;;  %v9618_v35 = vpop.f32.mrf.mxu0  ;;  %9917 = vmatmul.mubr.msk.f32.gmra.mxu0 %vm360_vm1, %v3656_v30  ;;  %v3659_v38 = vld [vmem:[#allocation2 + $0x121] sm:$0xff] }
 0x113   : > { %v9568_v10 = vpop.f32.mrf.mxu1  ;;  %9867 = vmatmul.mubr.msk.f32.gmra.mxu1 %vm360_vm1, %v3266_v22  ;;  %9919 = vmatprep.mubr.msk.f32.mxu0 %vm360_vm1, %v3657_v43  ;;  %v3270_v22 = vld [vmem:[#allocation2 + $0x128] sm:$0xff] }
 0x114   : > { %v11538_v50 = vadd.f32 %v9618_v35, %v9568_v10  ;;  %9869 = vmatprep.mubr.msk.f32.mxu1 %vm360_vm1, %v3267_v61  ;;  %v11544_v12 = vpop.f32.mrf.mxu0  ;;  %v3660_v43 = vld [vmem:[#allocation2 + $0x129] sm:$0xff]  ;;  %v3271_v10 = vld [vmem:[#allocation2 + $0x138] sm:$0xff] }
 0x115   : > { %v11542_v63 = vpop.f32.mrf.mxu1 }
 0x116   : > { %v9621_v29 = vpop.f32.mrf.mxu0  ;;  %9920 = vmatmul.mubr.msk.f32.gmra.mxu0 %vm360_vm1, %v3658_v57  ;;  %v3662_v57 = vld [vmem:[#allocation2 + $0x141] sm:$0xff] }
 0x117   : > { %v9571_v59 = vpop.f32.mrf.mxu1  ;;  %9870 = vmatmul.mubr.msk.f32.gmra.mxu1 %vm360_vm1, %v3268_v54  ;;  %9922 = vmatprep.mubr.msk.f32.mxu0 %vm360_vm1, %v3659_v38  ;;  %v3272_v54 = vld [vmem:[#allocation2 + $0x140] sm:$0xff] }
 0x118   : > { %v11548_v35 = vadd.f32 %v9621_v29, %v9571_v59  ;;  %9872 = vmatprep.mubr.msk.f32.mxu1 %vm360_vm1, %v3269_v28  ;;  %v11554_v61 = vpop.f32.mrf.mxu0  ;;  %v3273_v59 = vld [vmem:[#allocation2 + $0x150] sm:$0xff] }
 0x119   : > { %v11552_v30 = vpop.f32.mrf.mxu1 }
 0x11a   : > { %v9624_v3 = vpop.f32.mrf.mxu0  ;;  %9923 = vmatmul.mubr.msk.f32.gmra.mxu0 %vm360_vm1, %v3660_v43 }
 0x11b   : > { %v9574_v48 = vpop.f32.mrf.mxu1  ;;  %9873 = vmatmul.mubr.msk.f32.gmra.mxu1 %vm360_vm1, %v3270_v22  ;;  %9925 = vmatprep.mubr.msk.f32.mxu0 %vm360_vm1, %v3661_v55  ;;  %v3664_v55 = vld [vmem:[#allocation2 + $0x159] sm:$0xff] }
 0x11c   : > { %v11558_v29 = vadd.f32 %v9624_v3, %v9574_v48  ;;  %9875 = vmatprep.mubr.msk.f32.mxu1 %vm360_vm1, %v3271_v10  ;;  %v11564_v38 = vpop.f32.mrf.mxu0  ;;  %v3274_v48 = vld [vmem:[#allocation2 + $0x158] sm:$0xff]  ;;  %v3275_v10 = vld [vmem:[#allocation2 + $0x168] sm:$0xff] }
 0x11d   : > { %v11562_v28 = vpop.f32.mrf.mxu1 }
 0x11e   : > { %v9627_v27 = vpop.f32.mrf.mxu0  ;;  %9926 = vmatmul.mubr.msk.f32.gmra.mxu0 %vm360_vm1, %v3662_v57 }
 0x11f   : > { %v9577_v37 = vpop.f32.mrf.mxu1  ;;  %9876 = vmatmul.mubr.msk.f32.gmra.mxu1 %vm360_vm1, %v3272_v54  ;;  %9928 = vmatprep.mubr.msk.f32.mxu0 %vm360_vm1, %v3663_v23  ;;  %v3666_v23 = vld [vmem:[#allocation2 + $0x171] sm:$0xff] }
 0x120   : > { %v11568_v3 = vadd.f32 %v9627_v27, %v9577_v37  ;;  %9878 = vmatprep.mubr.msk.f32.mxu1 %vm360_vm1, %v3273_v59  ;;  %v11574_v43 = vpop.f32.mrf.mxu0  ;;  %v3276_v37 = vld [vmem:[#allocation2 + $0x170] sm:$0xff] }
 0x121   : > { %v11572_v22 = vpop.f32.mrf.mxu1 }
 0x122   : > { %v9630_v17 = vpop.f32.mrf.mxu0  ;;  %9929 = vmatmul.mubr.msk.f32.gmra.mxu0 %vm360_vm1, %v3664_v55  ;;  %v3669_v55 = vld [vmem:[#allocation2 + $0x199] sm:$0xff] }
 0x123   : > { %v9580_v19 = vpop.f32.mrf.mxu1  ;;  %9879 = vmatmul.mubr.msk.f32.gmra.mxu1 %vm360_vm1, %v3274_v48  ;;  %9931 = vmatprep.mubr.msk.f32.mxu0 %vm360_vm1, %v3665_v21  ;;  %v3279_v21 = vld [vmem:[#allocation2 + $0x198] sm:$0xff] }
 0x124   : > { %v11578_v27 = vadd.f32 %v9630_v17, %v9580_v19  ;;  %9881 = vmatprep.mubr.msk.f32.mxu1 %vm360_vm1, %v3275_v10  ;;  %v11584_v57 = vpop.f32.mrf.mxu0 }
 0x125   : > { %v11582_v54 = vpop.f32.mrf.mxu1 }
 0x126   : > { %v9633_v15 = vpop.f32.mrf.mxu0  ;;  %9932 = vmatmul.mubr.msk.f32.gmra.mxu0 %vm360_vm1, %v3666_v23 }
 0x127   : > { %v9583_v59 = vpop.f32.mrf.mxu1  ;;  %9882 = vmatmul.mubr.msk.f32.gmra.mxu1 %vm360_vm1, %v3276_v37  ;;  %9934 = vmatprep.mubr.msk.f32.mxu0 %vm360_vm1, %v11432_v31  ;;  %v3670_v31 = vld [vmem:[#allocation2 + $0x1a1] sm:$0xff] }
 0x128   : > { %v11588_v48 = vadd.f32 %v9633_v15, %v9583_v59  ;;  %9884 = vmatprep.mubr.msk.f32.mxu1 %vm360_vm1, %v11239_v32  ;;  %v11596_v19 = vpop.f32.mrf.mxu0  ;;  %v3280_v32 = vld [vmem:[#allocation2 + $0x1a0] sm:$0xff]  ;;  %v4029_v59 = vld [vmem:[#allocation2 + $0x32] sm:$0xff] }
 0x129   : > { %v11594_v17 = vpop.f32.mrf.mxu1 }
 0x12a   : > { %v9636_v13 = vpop.f32.mrf.mxu0  ;;  %9935 = vmatmul.mubr.msk.f32.gmra.mxu0 %vm360_vm1, %v11446_v40 }
 0x12b   : > { %v9586_v10 = vpop.f32.mrf.mxu1  ;;  %9885 = vmatmul.mubr.msk.f32.gmra.mxu1 %vm360_vm1, %v11251_v36  ;;  %9937 = vmatprep.mubr.msk.f32.mxu0 %vm360_vm1, %v3669_v55  ;;  %v4031_v55 = vld [vmem:[#allocation2 + $0x4a] sm:$0xff] }
 0x12c   : > { %v11602_v15 = vadd.f32 %v9636_v13, %v9586_v10  ;;  %9887 = vmatprep.mubr.msk.f32.mxu1 %vm360_vm1, %v3279_v21  ;;  %v11608_v23 = vpop.f32.mrf.mxu0  ;;  %v4030_v13 = vld [vmem:[#allocation2 + $0x3a] sm:$0xff] }
 0x12d   : > { %v11606_v37 = vpop.f32.mrf.mxu1 }
 0x12e   : > { %v9639_v9 = vpop.f32.mrf.mxu0  ;;  %9938 = vmatmul.mubr.msk.f32.gmra.mxu0 %vm360_vm1, %v3670_v31 }
 0x12f   : > { %v9589_v11 = vpop.f32.mrf.mxu1  ;;  %9888 = vmatmul.mubr.msk.f32.gmra.mxu1 %vm360_vm1, %v3280_v32  ;;  %v4032_v32 = vld [vmem:[#allocation2 + $0x52] sm:$0xff] }
 0x130   : > { %v11612_v36 = vadd.f32 %v9639_v9, %v9589_v11  ;;  %9942 = vmatprep.mubr.msk.f32.mxu1 %vm360_vm1, %v4029_v59  ;;  %v11617_v21 = vpop.f32.mrf.mxu0  ;;  %v4033_v11 = vld [vmem:[#allocation2 + $0x62] sm:$0xff] }
 0x131   : > { %v11615_v40 = vpop.f32.mrf.mxu1 }
 0x132   : > { %v9694_v7 = vpop.f32.mrf.mxu0 }
 0x133   : > { %v9644_v10 = vpop.f32.mrf.mxu1  ;;  %9943 = vmatmul.mubr.msk.f32.vlgmr.msra.gmra.mxu1 %vm360_vm1, %v4030_v13 }
 0x134   : > { %v2047_v5 = vadd.f32 %v9644_v10, %v11472_v4  ;;  %9945 = vmatprep.mubr.msk.f32.mxu1 %vm360_vm1, %v4031_v55  ;;  %v11622_v9 = vpop.f32.mrf.mxu0  ;;  %v4034_v4 = vld [vmem:[#allocation2 + $0x6a] sm:$0xff] }
 0x135   : > { %v1887_v31 = vpop.f32.mrf.mxu1 }
 0x136   : > { %v11625_v59 = vadd.f32 %v1887_v31, %v11478_v18  ;;  %v11627_v2 = vadd.f32 %v9694_v7, %v2047_v5  ;;  %v9697_v62 = vpop.f32.mrf.mxu0 }
 0x137   : > { %v9647_v0 = vpop.f32.mrf.mxu1  ;;  %9946 = vmatmul.mubr.msk.f32.gmra.mxu1 %vm360_vm1, %v4032_v32 }
 0x138   : > { %v2049_v13 = vadd.f32 %v9647_v0, %v11482_v24  ;;  %9948 = vmatprep.mubr.msk.f32.mxu1 %vm360_vm1, %v4033_v11  ;;  %v11632_v10 = vpop.f32.mrf.mxu0  ;;  %v4036_v0 = vld [vmem:[#allocation2 + $0x82] sm:$0xff]  ;;  %v4037_v11 = vld [vmem:[#allocation2 + $0x92] sm:$0xff] }
 0x139   : > { %v1897_v55 = vpop.f32.mrf.mxu1 }
 0x13a   : > { %v11635_v58 = vadd.f32 %v1897_v55, %v11486_v39  ;;  %v11637_v18 = vadd.f32 %v9697_v62, %v2049_v13  ;;  %v9700_v7 = vpop.f32.mrf.mxu0 }
 0x13b   : > { %v9650_v5 = vpop.f32.mrf.mxu1  ;;  %9949 = vmatmul.mubr.msk.f32.gmra.mxu1 %vm360_vm1, %v4034_v4 }
 0x13c   : > { %v2051_v32 = vadd.f32 %v9650_v5, %v11490_v52  ;;  %9951 = vmatprep.mubr.msk.f32.mxu1 %vm360_vm1, %v4035_v60  ;;  %v11642_v31 = vpop.f32.mrf.mxu0  ;;  %v4038_v52 = vld [vmem:[#allocation2 + $0x9a] sm:$0xff]  ;;  %v4039_v5 = vld [vmem:[#allocation2 + $0xaa] sm:$0xff] }
 0x13d   : > { %v1907_v24 = vpop.f32.mrf.mxu1 }
 0x13e   : > { %v11645_v56 = vadd.f32 %v1907_v24, %v11494_v8  ;;  %v11647_v39 = vadd.f32 %v9700_v7, %v2051_v32  ;;  %v9703_v13 = vpop.f32.mrf.mxu0  ;;  %v8561_v7 = vld [vmem:[%s14155_s4 + $0x8] sm:$0xff]  ;;  %v4040_v24 = vld [vmem:[#allocation2 + $0xb2] sm:$0xff] }
 0x13f   : > { %v9653_v62 = vpop.f32.mrf.mxu1  ;;  %9952 = vmatmul.mubr.msk.f32.gmra.mxu1 %vm360_vm1, %v4036_v0  ;;  %9990 = vmatprep.subr.mxu0 %v8561_v7 }
 0x140   : > { %v2053_v4 = vadd.f32 %v9653_v62, %v11498_v14  ;;  %9954 = vmatprep.mubr.msk.f32.mxu1 %vm360_vm1, %v4037_v11  ;;  %v11652_v55 = vpop.f32.mrf.mxu0  ;;  %9991 = vmatpush3.msra.mxu0 %v8561_v7  ;;  %v4041_v62 = vld [vmem:[#allocation2 + $0xc2] sm:$0xff] }
 0x141   : > { %v1917_v60 = vpop.f32.mrf.mxu1 }
 0x142   : > { %v11655_v53 = vadd.f32 %v1917_v60, %v11502_v34  ;;  %v11657_v8 = vadd.f32 %v9703_v13, %v2053_v4  ;;  %v9706_v14 = vpop.f32.mrf.mxu0 }
 0x143   : > { %v9656_v32 = vpop.f32.mrf.mxu1  ;;  %9955 = vmatmul.mubr.msk.f32.gmra.mxu1 %vm360_vm1, %v4038_v52 }
 0x144   : > { %v2055_v0 = vadd.f32 %v9656_v32, %v11506_v44  ;;  %9957 = vmatprep.mubr.msk.f32.mxu1 %vm360_vm1, %v4039_v5  ;;  %v11665_v34 = vpop.f32.mrf.mxu0  ;;  %v4042_v44 = vld [vmem:[#allocation2 + $0xca] sm:$0xff]  ;;  %v4043_v32 = vld [vmem:[#allocation2 + $0xda] sm:$0xff] }
 0x145   : > { %v1927_v11 = vpop.f32.mrf.mxu1 }
 0x146   : > { %v11668_v13 = vadd.f32 %v1927_v11, %v11510_v6  ;;  %v11670_v4 = vadd.f32 %v9706_v14, %v2055_v0  ;;  %v9709_v52 = vpop.f32.mrf.mxu0 }
 0x147   : > { %v9659_v60 = vpop.f32.mrf.mxu1  ;;  %9958 = vmatmul.mubr.msk.f32.gmra.mxu1 %vm360_vm1, %v4040_v24 }
 0x148   : > { %v2057_v51 = vadd.f32 %v9659_v60, %v11514_v16  ;;  %9960 = vmatprep.mubr.msk.f32.mxu1 %vm360_vm1, %v4041_v62  ;;  %v11675_v7 = vpop.f32.mrf.mxu0  ;;  %v4044_v16 = vld [vmem:[#allocation2 + $0xe2] sm:$0xff]  ;;  %v4045_v60 = vld [vmem:[#allocation2 + $0xf2] sm:$0xff] }
 0x149   : > { %v1937_v5 = vpop.f32.mrf.mxu1 }
 0x14a   : > { %v11678_v49 = vadd.f32 %v1937_v5, %v11518_v25  ;;  %v11680_v6 = vadd.f32 %v9709_v52, %v2057_v51  ;;  %v9712_v0 = vpop.f32.mrf.mxu0 }
 0x14b   : > { %v9662_v14 = vpop.f32.mrf.mxu1  ;;  %9961 = vmatmul.mubr.msk.f32.gmra.mxu1 %vm360_vm1, %v4042_v44 }
 0x14c   : > { %v2059_v24 = vadd.f32 %v9662_v14, %v11522_v46  ;;  %9963 = vmatprep.mubr.msk.f32.mxu1 %vm360_vm1, %v4043_v32  ;;  %v11685_v62 = vpop.f32.mrf.mxu0  ;;  %v4046_v46 = vld [vmem:[#allocation2 + $0xfa] sm:$0xff]  ;;  %v4047_v14 = vld [vmem:[#allocation2 + $0x10a] sm:$0xff] }
 0x14d   : > { %v1947_v11 = vpop.f32.mrf.mxu1 }
 0x14e   : > { %v11688_v47 = vadd.f32 %v1947_v11, %v11526_v26  ;;  %v11690_v25 = vadd.f32 %v9712_v0, %v2059_v24  ;;  %v9715_v52 = vpop.f32.mrf.mxu0  ;;  %v4048_v11 = vld [vmem:[#allocation2 + $0x112] sm:$0xff] }
 0x14f   : > { %v9665_v51 = vpop.f32.mrf.mxu1  ;;  %9964 = vmatmul.mubr.msk.f32.gmra.mxu1 %vm360_vm1, %v4044_v16  ;;  %v1610_v16 = vadd.f32 %v11544_v12, %v11542_v63 }
 0x150   : > { %v2061_v44 = vadd.f32 %v9665_v51, %v11530_v20  ;;  %9966 = vmatprep.mubr.msk.f32.mxu1 %vm360_vm1, %v4045_v60  ;;  %v11695_v32 = vpop.f32.mrf.mxu0 }
 0x151   : > { %v1957_v5 = vpop.f32.mrf.mxu1 }
 0x152   : > { %v11698_v45 = vadd.f32 %v1957_v5, %v11534_v1  ;;  %v11700_v26 = vadd.f32 %v9715_v52, %v2061_v44  ;;  %v9718_v24 = vpop.f32.mrf.mxu0 }
 0x153   : > { %v9668_v0 = vpop.f32.mrf.mxu1  ;;  %9967 = vmatmul.mubr.msk.f32.gmra.mxu1 %vm360_vm1, %v4046_v46 }
 0x154   : > { %v2063_v20 = vadd.f32 %v9668_v0, %v11538_v50  ;;  %9969 = vmatprep.mubr.msk.f32.mxu1 %vm360_vm1, %v4047_v14  ;;  %v11707_v51 = vpop.f32.mrf.mxu0  ;;  %v4050_v50 = vld [vmem:[#allocation2 + $0x12a] sm:$0xff]  ;;  %v4051_v14 = vld [vmem:[#allocation2 + $0x13a] sm:$0xff] }
 0x155   : > { %v1967_v60 = vpop.f32.mrf.mxu1  ;;  %14236 = vst [vmem:[#allocation36_spill] sm:$0xff] %v11707_v51 }
 0x156   : > { %v11709_v1 = vadd.f32 %v1967_v60, %v1610_v16  ;;  %v11711_v52 = vadd.f32 %v9718_v24, %v2063_v20  ;;  %v9721_v46 = vpop.f32.mrf.mxu0  ;;  %v4053_v60 = vld [vmem:[#allocation2 + $0x152] sm:$0xff] }
 0x157   : > { %v9671_v44 = vpop.f32.mrf.mxu1  ;;  %9970 = vmatmul.mubr.msk.f32.gmra.mxu1 %vm360_vm1, %v4048_v11  ;;  %v4052_v11 = vld [vmem:[#allocation2 + $0x142] sm:$0xff] }
 0x158   : > { %14237 = vst [vmem:[#allocation37_spill] sm:$0xff] %v11709_v1  ;;  %v2065_v5 = vadd.f32 %v9671_v44, %v11548_v35  ;;  %9972 = vmatprep.mubr.msk.f32.mxu1 %vm360_vm1, %v4049_v42  ;;  %v11718_v12 = vpop.f32.mrf.mxu0 }
 0x159   : > { %v11716_v63 = vpop.f32.mrf.mxu1  ;;  %14238 = vst [vmem:[#allocation38_spill] sm:$0xff] %v11718_v12 }
 0x15a   : > { %v11720_v0 = vadd.f32 %v9721_v46, %v2065_v5  ;;  %v9724_v24 = vpop.f32.mrf.mxu0 }
 0x15b   : > { %v9674_v16 = vpop.f32.mrf.mxu1  ;;  %9973 = vmatmul.mubr.msk.f32.gmra.mxu1 %vm360_vm1, %v4050_v50  ;;  %v4054_v50 = vld [vmem:[#allocation2 + $0x15a] sm:$0xff] }
 0x15c   : > { %v2067_v20 = vadd.f32 %v9674_v16, %v11558_v29  ;;  %9975 = vmatprep.mubr.msk.f32.mxu1 %vm360_vm1, %v4051_v14  ;;  %v11727_v42 = vpop.f32.mrf.mxu0  ;;  %v4055_v16 = vld [vmem:[#allocation2 + $0x16a] sm:$0xff] }
 0x15d   : > { %v11725_v35 = vpop.f32.mrf.mxu1  ;;  %14239 = vst [vmem:[#allocation39_spill] sm:$0xff] %v11727_v42 }
 0x15e   : > { %v11729_v44 = vadd.f32 %v9724_v24, %v2067_v20  ;;  %v9727_v46 = vpop.f32.mrf.mxu0 }
 0x15f   : > { %v9677_v12 = vpop.f32.mrf.mxu1  ;;  %9976 = vmatmul.mubr.msk.f32.gmra.mxu1 %vm360_vm1, %v4052_v11  ;;  %v4056_v11 = vld [vmem:[#allocation2 + $0x172] sm:$0xff] }
 0x160   : > { %v2069_v5 = vadd.f32 %v9677_v12, %v11568_v3  ;;  %9978 = vmatprep.mubr.msk.f32.mxu1 %vm360_vm1, %v4053_v60  ;;  %v11736_v14 = vpop.f32.mrf.mxu0 }
 0x161   : > { %v11734_v29 = vpop.f32.mrf.mxu1  ;;  %14241 = vst [vmem:[#allocation41_spill] sm:$0xff] %v11736_v14 }
 0x162   : > { %14240 = vst [vmem:[#allocation40_spill] sm:$0xff] %v11734_v29  ;;  %v11738_v51 = vadd.f32 %v9727_v46, %v2069_v5  ;;  %v9730_v24 = vpop.f32.mrf.mxu0 }
 0x163   : > { %v9680_v42 = vpop.f32.mrf.mxu1  ;;  %9979 = vmatmul.mubr.msk.f32.gmra.mxu1 %vm360_vm1, %v4054_v50 }
 0x164   : > { %v2071_v20 = vadd.f32 %v9680_v42, %v11578_v27  ;;  %9981 = vmatprep.mubr.msk.f32.mxu1 %vm360_vm1, %v4055_v16  ;;  %v11745_v12 = vpop.f32.mrf.mxu0  ;;  %v4059_v42 = vld [vmem:[#allocation2 + $0x19a] sm:$0xff] }
 0x165   : > { %v11743_v3 = vpop.f32.mrf.mxu1  ;;  %14243 = vst [vmem:[#allocation43_spill] sm:$0xff] %v11745_v12 }
 0x166   : > { %14242 = vst [vmem:[#allocation42_spill] sm:$0xff] %v11743_v3  ;;  %v11747_v60 = vadd.f32 %v9730_v24, %v2071_v20  ;;  %v9733_v46 = vpop.f32.mrf.mxu0 }
 0x167   : > { %v9683_v1 = vpop.f32.mrf.mxu1  ;;  %9982 = vmatmul.mubr.msk.f32.gmra.mxu1 %vm360_vm1, %v4056_v11 }
 0x168   : > { %v2073_v5 = vadd.f32 %v9683_v1, %v11588_v48  ;;  %9984 = vmatprep.mubr.msk.f32.mxu1 %vm360_vm1, %v11434_v33  ;;  %v11755_v27 = vpop.f32.mrf.mxu0  ;;  %v4060_v48 = vld [vmem:[#allocation2 + $0x1a2] sm:$0xff] }
 0x169   : > { %v11753_v50 = vpop.f32.mrf.mxu1  ;;  %14245 = vst [vmem:[#allocation45_spill] sm:$0xff] %v11755_v27 }
 0x16a   : > { %14244 = vst [vmem:[#allocation44_spill] sm:$0xff] %v11753_v50  ;;  %v11757_v16 = vadd.f32 %v9733_v46, %v2073_v5  ;;  %v9736_v24 = vpop.f32.mrf.mxu0 }
 0x16b   : > { %v9686_v14 = vpop.f32.mrf.mxu1  ;;  %9985 = vmatmul.mubr.msk.f32.gmra.mxu1 %vm360_vm1, %v11448_v41 }
 0x16c   : > { %v2075_v20 = vadd.f32 %v9686_v14, %v11602_v15  ;;  %9987 = vmatprep.mubr.msk.f32.mxu1 %vm360_vm1, %v4059_v42  ;;  %v11765_v33 = vpop.f32.mrf.mxu0 }
 0x16d   : > { %v11763_v1 = vpop.f32.mrf.mxu1  ;;  %14247 = vst [vmem:[#allocation47_spill] sm:$0xff] %v11765_v33 }
 0x16e   : > { %14246 = vst [vmem:[#allocation46_spill] sm:$0xff] %v11763_v1  ;;  %v11767_v11 = vadd.f32 %v9736_v24, %v2075_v20  ;;  %v9739_v46 = vpop.f32.mrf.mxu0 }
 0x16f   : > { %v9689_v27 = vpop.f32.mrf.mxu1  ;;  %9988 = vmatmul.mubr.msk.f32.gmra.mxu1 %vm360_vm1, %v4060_v48  ;;  %v14250_v48 = vmov 0.0  }
 0x170   : > { %v2077_v5 = vadd.f32 %v9689_v27, %v11612_v36  ;;  %v11773_v41 = vpop.f32.mrf.mxu0  ;;  %422 = vst.msk [vmem:[#allocation3 + $0x20] sm:$0xff] %vm416_vm3, %v14250_v48  ;;  %417 = vst.msk [vmem:[#allocation3] sm:$0xff] %vm416_vm3, %v14250_v48 }
 0x171   : > { %v11771_v12 = vpop.f32.mrf.mxu1  ;;  %14249 = vst [vmem:[#allocation49_spill] sm:$0xff] %v11773_v41  ;;  %423 = vst.msk [vmem:[#allocation3 + $0x28] sm:$0x3] %vm419_vm4, %v14250_v48 }
 0x172   : > { %14248 = vst [vmem:[#allocation48_spill] sm:$0xff] %v11771_v12  ;;  %v11775_v15 = vadd.f32 %v9739_v46, %v2077_v5  ;;  %v11777_v42 = vpop.f32.mrf.mxu0  ;;  %418 = vst.msk [vmem:[#allocation3 + $0x8] sm:$0xff] %vm416_vm3, %v14250_v48 }
 0x173   : > { %v9744_v14 = vpop.f32.mrf.mxu1  ;;  %420 = vst.msk [vmem:[#allocation3 + $0x10] sm:$0x3] %vm419_vm4, %v14250_v48  ;;  %426 = vst.msk [vmem:[#allocation3 + $0x40] sm:$0x3] %vm419_vm4, %v14250_v48 }
 0x174   : > { %v11780_v1 = vadd.f32 %v9744_v14, %v11627_v2  ;;  %v11784_v20 = vpop.f32.mrf.mxu0  ;;  %421 = vst.msk [vmem:[#allocation3 + $0x18] sm:$0xff] %vm416_vm3, %v14250_v48  ;;  %424 = vst.msk [vmem:[#allocation3 + $0x30] sm:$0xff] %vm416_vm3, %v14250_v48 }
 0x175   : > { %v11782_v24 = vpop.f32.mrf.mxu1  ;;  %425 = vst.msk [vmem:[#allocation3 + $0x38] sm:$0xff] %vm416_vm3, %v14250_v48  ;;  %427 = vst.msk [vmem:[#allocation3 + $0x48] sm:$0xff] %vm416_vm3, %v14250_v48 }
 0x176   : > { %428 = vst.msk [vmem:[#allocation3 + $0x50] sm:$0xff] %vm416_vm3, %v14250_v48  ;;  %430 = vst.msk [vmem:[#allocation3 + $0x60] sm:$0xff] %vm416_vm3, %v14250_v48  ;;  %v11894_v36 = vpop.f32.mrf.mxu0 }
 0x177   : > { %429 = vst.msk [vmem:[#allocation3 + $0x58] sm:$0x3] %vm419_vm4, %v14250_v48  ;;  %432 = vst.msk [vmem:[#allocation3 + $0x70] sm:$0x3] %vm419_vm4, %v14250_v48  ;;  %v9747_v2 = vpop.f32.mrf.mxu1 }
 0x178   : > { %431 = vst.msk [vmem:[#allocation3 + $0x68] sm:$0xff] %vm416_vm3, %v14250_v48  ;;  %433 = vst.msk [vmem:[#allocation3 + $0x78] sm:$0xff] %vm416_vm3, %v14250_v48  ;;  %v11897_v27 = vadd.f32 %v9747_v2, %v11637_v18  ;;  %v11901_v5 = vpop.f32.mrf.mxu0 }
 0x179   : > { %434 = vst.msk [vmem:[#allocation3 + $0x80] sm:$0xff] %vm416_vm3, %v14250_v48  ;;  %436 = vst.msk [vmem:[#allocation3 + $0x90] sm:$0xff] %vm416_vm3, %v14250_v48  ;;  %v11899_v46 = vpop.f32.mrf.mxu1  ;;  %v4595_v3 = vld [vmem:[#allocation3 + $0x1] sm:$0xff] }
 0x17a   : > { %435 = vst.msk [vmem:[#allocation3 + $0x88] sm:$0x3] %vm419_vm4, %v14250_v48  ;;  %438 = vst.msk [vmem:[#allocation3 + $0xa0] sm:$0x3] %vm419_vm4, %v14250_v48  ;;  %v11903_v41 = vpop.f32.mrf.mxu0  ;;  %9992 = vmatprep.mubr.msk.f32.mxu0 %vm416_vm3, %v4595_v3 }
 0x17b   : > { %437 = vst.msk [vmem:[#allocation3 + $0x98] sm:$0xff] %vm416_vm3, %v14250_v48  ;;  %439 = vst.msk [vmem:[#allocation3 + $0xa8] sm:$0xff] %vm416_vm3, %v14250_v48  ;;  %v9750_v14 = vpop.f32.mrf.mxu1 }
 0x17c   : > { %440 = vst.msk [vmem:[#allocation3 + $0xb0] sm:$0xff] %vm416_vm3, %v14250_v48  ;;  %442 = vst.msk [vmem:[#allocation3 + $0xc0] sm:$0xff] %vm416_vm3, %v14250_v48  ;;  %v11906_v12 = vadd.f32 %v9750_v14, %v11647_v39  ;;  %v11910_v50 = vpop.f32.mrf.mxu0  ;;  %v4596_v39 = vld [vmem:[#allocation3 + $0x9] sm:$0xff] }
 0x17d   : > { %441 = vst.msk [vmem:[#allocation3 + $0xb8] sm:$0x3] %vm419_vm4, %v14250_v48  ;;  %444 = vst.msk [vmem:[#allocation3 + $0xd0] sm:$0x3] %vm419_vm4, %v14250_v48  ;;  %v11908_v33 = vpop.f32.mrf.mxu1  ;;  %v4563_v14 = vld [vmem:[#allocation3 + $0x8] sm:$0xff]  ;;  %9993 = vmatmul.mubr.msk.f32.vlgmr.msra.gmra.mxu0 %vm416_vm3, %v4596_v39 }
 0x17e   : > { %443 = vst.msk [vmem:[#allocation3 + $0xc8] sm:$0xff] %vm416_vm3, %v14250_v48  ;;  %445 = vst.msk [vmem:[#allocation3 + $0xd8] sm:$0xff] %vm416_vm3, %v14250_v48  ;;  %v11915_v2 = vpop.f32.mrf.mxu0 }
 0x17f   : > { %446 = vst.msk [vmem:[#allocation3 + $0xe0] sm:$0xff] %vm416_vm3, %v14250_v48  ;;  %448 = vst.msk [vmem:[#allocation3 + $0xf0] sm:$0xff] %vm416_vm3, %v14250_v48  ;;  %v9753_v18 = vpop.f32.mrf.mxu1 }
 0x180   : > { %447 = vst.msk [vmem:[#allocation3 + $0xe8] sm:$0x3] %vm419_vm4, %v14250_v48  ;;  %450 = vst.msk [vmem:[#allocation3 + $0x100] sm:$0x3] %vm419_vm4, %v14250_v48  ;;  %v11918_v29 = vadd.f32 %v9753_v18, %v11657_v8 }
 0x181   : > { %449 = vst.msk [vmem:[#allocation3 + $0xf8] sm:$0xff] %vm416_vm3, %v14250_v48  ;;  %451 = vst.msk [vmem:[#allocation3 + $0x108] sm:$0xff] %vm416_vm3, %v14250_v48 }
 0x182   : > { %452 = vst.msk [vmem:[#allocation3 + $0x110] sm:$0xff] %vm416_vm3, %v14250_v48  ;;  %454 = vst.msk [vmem:[#allocation3 + $0x120] sm:$0xff] %vm416_vm3, %v14250_v48 }
 0x183   : > { %453 = vst.msk [vmem:[#allocation3 + $0x118] sm:$0x3] %vm419_vm4, %v14250_v48  ;;  %456 = vst.msk [vmem:[#allocation3 + $0x130] sm:$0x3] %vm419_vm4, %v14250_v48 }
 0x184   : > { %455 = vst.msk [vmem:[#allocation3 + $0x128] sm:$0xff] %vm416_vm3, %v14250_v48  ;;  %457 = vst.msk [vmem:[#allocation3 + $0x138] sm:$0xff] %vm416_vm3, %v14250_v48 }
 0x185   : > { %458 = vst.msk [vmem:[#allocation3 + $0x140] sm:$0xff] %vm416_vm3, %v14250_v48  ;;  %460 = vst.msk [vmem:[#allocation3 + $0x150] sm:$0xff] %vm416_vm3, %v14250_v48 }
 0x186   : > { %459 = vst.msk [vmem:[#allocation3 + $0x148] sm:$0x3] %vm419_vm4, %v14250_v48  ;;  %462 = vst.msk [vmem:[#allocation3 + $0x160] sm:$0x3] %vm419_vm4, %v14250_v48 }
 0x187   : > { %461 = vst.msk [vmem:[#allocation3 + $0x158] sm:$0xff] %vm416_vm3, %v14250_v48  ;;  %463 = vst.msk [vmem:[#allocation3 + $0x168] sm:$0xff] %vm416_vm3, %v14250_v48 }
 0x188   : > { %464 = vst.msk [vmem:[#allocation3 + $0x170] sm:$0xff] %vm416_vm3, %v14250_v48  ;;  %466 = vst.msk [vmem:[#allocation3 + $0x180] sm:$0xff] %vm416_vm3, %v14250_v48 }
 0x189   : > { %465 = vst.msk [vmem:[#allocation3 + $0x178] sm:$0x3] %vm419_vm4, %v14250_v48  ;;  %468 = vst.msk [vmem:[#allocation3 + $0x190] sm:$0x3] %vm419_vm4, %v14250_v48 }
 0x18a   : > { %467 = vst.msk [vmem:[#allocation3 + $0x188] sm:$0xff] %vm416_vm3, %v14250_v48  ;;  %469 = vst.msk [vmem:[#allocation3 + $0x198] sm:$0xff] %vm416_vm3, %v14250_v48 }
 0x18b   : > { %470 = vst.msk [vmem:[#allocation3 + $0x1a0] sm:$0xff] %vm416_vm3, %v14250_v48  ;;  %14251 = vst [vmem:[#allocation50_spill] sm:$0xff] %v11901_v5  ;;  %v4562_v5 = vld [vmem:[#allocation3] sm:$0xff] }
 0x18c   : > { %471 = vst.msk [vmem:[#allocation3 + $0x1a8] sm:$0x3] %vm419_vm4, %v14250_v48  ;;  %14252 = vst [vmem:[#allocation51_spill] sm:$0xff] %v11903_v41  ;;  %v4594_v48 = vld [vmem:[%s14155_s4] sm:$0xff]  ;;  %v11921_v41 = vpop.f32.mrf.mxu1  ;;  %10042 = vmatprep.mubr.msk.f32.mxu1 %vm416_vm3, %v4562_v5 }
 0x18d   : > { %14253 = vst [vmem:[#allocation52_spill] sm:$0xff] %v11906_v12  ;;  %14254 = vst [vmem:[#allocation53_spill] sm:$0xff] %v11910_v50  ;;  %10040 = vmatprep.subr.mxu1 %v4594_v48  ;;  %v11923_v50 = vpop.f32.mrf.mxu0 }
 0x18e   : > { %14255 = vst [vmem:[#allocation54_spill] sm:$0xff] %v11915_v2  ;;  %14256 = vst [vmem:[#allocation55_spill] sm:$0xff] %v11918_v29  ;;  %10041 = vmatpush3.msra.mxu1 %v4594_v48  ;;  %v9756_v2 = vpop.f32.mrf.mxu1 }
 0x18f   : > { %14257 = vst [vmem:[#allocation56_spill] sm:$0xff] %v11923_v50  ;;  %10043 = vmatmul.mubr.msk.f32.vlgmr.msra.gmra.mxu1 %vm416_vm3, %v4563_v14  ;;  %v11928_v12 = vpop.f32.mrf.mxu0  ;;  %v11931_v8 = vadd.f32 %v9756_v2, %v11670_v4  ;;  %v8626_v14 = vld [vmem:[%s14155_s4 + $0x10] sm:$0xff] }
 0x190   : > { %14258 = vst [vmem:[#allocation57_spill] sm:$0xff] %v11928_v12  ;;  %v11933_v3 = vpop.f32.mrf.mxu1  ;;  %10090 = vmatprep.subr.mxu0 %v8626_v14 }
 0x191   : > { %14259 = vst [vmem:[#allocation58_spill] sm:$0xff] %v11931_v8  ;;  %v11935_v48 = vpop.f32.mrf.mxu0  ;;  %10091 = vmatpush3.msra.mxu0 %v8626_v14 }
 0x192   : > { %14260 = vst [vmem:[#allocation59_spill] sm:$0xff] %v11935_v48  ;;  %v9759_v18 = vpop.f32.mrf.mxu1 }
 0x193   : > { %v11937_v29 = vpop.f32.mrf.mxu0  ;;  %v11940_v50 = vadd.f32 %v9759_v18, %v11680_v6 }
 0x194   : > { %14261 = vst [vmem:[#allocation60_spill] sm:$0xff] %v11937_v29  ;;  %v11942_v5 = vpop.f32.mrf.mxu1 }
 0x195   : > { %14262 = vst [vmem:[#allocation61_spill] sm:$0xff] %v11940_v50  ;;  %14263 = vst [vmem:[#allocation62_spill] sm:$0xff] %v11942_v5  ;;  %v11944_v39 = vpop.f32.mrf.mxu0 }
 0x196   : > { %14264 = vst [vmem:[#allocation63_spill] sm:$0xff] %v11944_v39  ;;  %v9762_v4 = vpop.f32.mrf.mxu1 }
 0x197   : > { %v11949_v2 = vpop.f32.mrf.mxu0  ;;  %v11952_v48 = vadd.f32 %v9762_v4, %v11690_v25 }
 0x198   : > { %14265 = vst [vmem:[#allocation64_spill] sm:$0xff] %v11949_v2  ;;  %v11954_v29 = vpop.f32.mrf.mxu1 }
 0x199   : > { %14266 = vst [vmem:[#allocation65_spill] sm:$0xff] %v11952_v48  ;;  %14267 = vst [vmem:[#allocation66_spill] sm:$0xff] %v11954_v29  ;;  %v11956_v6 = vpop.f32.mrf.mxu0 }
 0x19a   : > { %14268 = vst [vmem:[#allocation67_spill] sm:$0xff] %v11956_v6  ;;  %v9765_v18 = vpop.f32.mrf.mxu1 }
 0x19b   : > { %v11958_v50 = vpop.f32.mrf.mxu0  ;;  %v11961_v39 = vadd.f32 %v9765_v18, %v11700_v26 }
 0x19c   : > { %14269 = vst [vmem:[#allocation68_spill] sm:$0xff] %v11958_v50  ;;  %v11963_v5 = vpop.f32.mrf.mxu1 }
 0x19d   : > { %14270 = vst [vmem:[#allocation69_spill] sm:$0xff] %v11961_v39  ;;  %14271 = vst [vmem:[#allocation70_spill] sm:$0xff] %v11963_v5  ;;  %v11965_v12 = vpop.f32.mrf.mxu0 }
 0x19e   : > { %14272 = vst [vmem:[#allocation71_spill] sm:$0xff] %v11965_v12  ;;  %v9768_v2 = vpop.f32.mrf.mxu1 }
 0x19f   : > { %v11967_v8 = vpop.f32.mrf.mxu0  ;;  %v11970_v25 = vadd.f32 %v9768_v2, %v11711_v52 }
 0x1a0   : > { %14273 = vst [vmem:[#allocation72_spill] sm:$0xff] %v11967_v8  ;;  %v11972_v14 = vpop.f32.mrf.mxu1 }
 0x1a1   : > { %14274 = vst [vmem:[#allocation73_spill] sm:$0xff] %v11970_v25  ;;  %14275 = vst [vmem:[#allocation74_spill] sm:$0xff] %v11972_v14  ;;  %v11974_v4 = vpop.f32.mrf.mxu0 }
 0x1a2   : > { %14276 = vst [vmem:[#allocation75_spill] sm:$0xff] %v11974_v4  ;;  %v9771_v6 = vpop.f32.mrf.mxu1 }
 0x1a3   : > { %v11976_v48 = vpop.f32.mrf.mxu0  ;;  %v11979_v26 = vadd.f32 %v9771_v6, %v11720_v0 }
 0x1a4   : > { %14277 = vst [vmem:[#allocation76_spill] sm:$0xff] %v11976_v48  ;;  %v11981_v18 = vpop.f32.mrf.mxu1 }
 0x1a5   : > { %14278 = vst [vmem:[#allocation77_spill] sm:$0xff] %v11979_v26  ;;  %14279 = vst [vmem:[#allocation78_spill] sm:$0xff] %v11981_v18  ;;  %v11983_v50 = vpop.f32.mrf.mxu0 }
 0x1a6   : > { %14280 = vst [vmem:[#allocation79_spill] sm:$0xff] %v11983_v50  ;;  %v9774_v12 = vpop.f32.mrf.mxu1 }
 0x1a7   : > { %v11985_v39 = vpop.f32.mrf.mxu0  ;;  %v11988_v52 = vadd.f32 %v9774_v12, %v11729_v44 }
 0x1a8   : > { %14281 = vst [vmem:[#allocation80_spill] sm:$0xff] %v11985_v39  ;;  %v11990_v2 = vpop.f32.mrf.mxu1 }
 0x1a9   : > { %14282 = vst [vmem:[#allocation81_spill] sm:$0xff] %v11988_v52  ;;  %14283 = vst [vmem:[#allocation82_spill] sm:$0xff] %v11990_v2  ;;  %v11992_v8 = vpop.f32.mrf.mxu0 }
 0x1aa   : > { %14284 = vst [vmem:[#allocation83_spill] sm:$0xff] %v11992_v8  ;;  %v9777_v4 = vpop.f32.mrf.mxu1 }
 0x1ab   : > { %v11994_v25 = vpop.f32.mrf.mxu0  ;;  %v11997_v0 = vadd.f32 %v9777_v4, %v11738_v51 }
 0x1ac   : > { %14285 = vst [vmem:[#allocation84_spill] sm:$0xff] %v11994_v25  ;;  %v11999_v6 = vpop.f32.mrf.mxu1 }
 0x1ad   : > { %14286 = vst [vmem:[#allocation85_spill] sm:$0xff] %v11997_v0  ;;  %14287 = vst [vmem:[#allocation86_spill] sm:$0xff] %v11999_v6  ;;  %v12001_v48 = vpop.f32.mrf.mxu0 }
 0x1ae   : > { %14288 = vst [vmem:[#allocation87_spill] sm:$0xff] %v12001_v48  ;;  %v9780_v50 = vpop.f32.mrf.mxu1 }
 0x1af   : > { %v12003_v26 = vpop.f32.mrf.mxu0  ;;  %v12006_v44 = vadd.f32 %v9780_v50, %v11747_v60 }
 0x1b0   : > { %14289 = vst [vmem:[#allocation88_spill] sm:$0xff] %v12003_v26  ;;  %v12008_v12 = vpop.f32.mrf.mxu1 }
 0x1b1   : > { %14290 = vst [vmem:[#allocation89_spill] sm:$0xff] %v12006_v44  ;;  %14291 = vst [vmem:[#allocation90_spill] sm:$0xff] %v12008_v12  ;;  %v12010_v39 = vpop.f32.mrf.mxu0 }
 0x1b2   : > { %14292 = vst [vmem:[#allocation91_spill] sm:$0xff] %v12010_v39  ;;  %v9783_v8 = vpop.f32.mrf.mxu1 }
 0x1b3   : > { %v12012_v52 = vpop.f32.mrf.mxu0  ;;  %v12015_v51 = vadd.f32 %v9783_v8, %v11757_v16 }
 0x1b4   : > { %14293 = vst [vmem:[#allocation92_spill] sm:$0xff] %v12012_v52  ;;  %v12017_v4 = vpop.f32.mrf.mxu1 }
 0x1b5   : > { %14294 = vst [vmem:[#allocation93_spill] sm:$0xff] %v12015_v51  ;;  %14295 = vst [vmem:[#allocation94_spill] sm:$0xff] %v12017_v4  ;;  %v12019_v25 = vpop.f32.mrf.mxu0  ;;  %v8692_v51 = vld [vmem:[%s14155_s4 + $0x20] sm:$0xff] }
 0x1b6   : > { %14296 = vst [vmem:[#allocation95_spill] sm:$0xff] %v12019_v25  ;;  %v9786_v48 = vpop.f32.mrf.mxu1  ;;  %10190 = vmatprep.subr.mxu0 %v8692_v51 }
 0x1b7   : > { %v12021_v0 = vpop.f32.mrf.mxu0  ;;  %v12024_v60 = vadd.f32 %v9786_v48, %v11767_v11 }
 0x1b8   : > { %14297 = vst [vmem:[#allocation96_spill] sm:$0xff] %v12021_v0  ;;  %v12026_v50 = vpop.f32.mrf.mxu1 }
 0x1b9   : > { %14298 = vst [vmem:[#allocation97_spill] sm:$0xff] %v12024_v60  ;;  %14299 = vst [vmem:[#allocation98_spill] sm:$0xff] %v12026_v50  ;;  %v12028_v26 = vpop.f32.mrf.mxu0 }
 0x1ba   : > { %14300 = vst [vmem:[#allocation99_spill] sm:$0xff] %v12028_v26  ;;  %v9789_v39 = vpop.f32.mrf.mxu1 }
 0x1bb   : > { %v12030_v44 = vpop.f32.mrf.mxu0  ;;  %v12033_v16 = vadd.f32 %v9789_v39, %v11775_v15 }
 0x1bc   : > { %14301 = vst [vmem:[#allocation100_spill] sm:$0xff] %v12030_v44  ;;  %v12035_v8 = vpop.f32.mrf.mxu1 }
 0x1bd   : > { %14302 = vst [vmem:[#allocation101_spill] sm:$0xff] %v12033_v16  ;;  %14303 = vst [vmem:[#allocation102_spill] sm:$0xff] %v12035_v8  ;;  %v12037_v52 = vpop.f32.mrf.mxu0  ;;  %v8659_v8 = vld [vmem:[%s14155_s4 + $0x18] sm:$0xff] }
 0x1be   : > { %14304 = vst [vmem:[#allocation103_spill] sm:$0xff] %v12037_v52  ;;  %v12039_v25 = vpop.f32.mrf.mxu1  ;;  %10140 = vmatprep.subr.mxu1 %v8659_v8 }
 0x1bf   : > { %v12041_v0 = vpop.f32.mrf.mxu0  ;;  %10141 = vmatpush3.msra.mxu1 %v8659_v8 }
 0x1c0   : > { %v12043_v11 = vpop.f32.mrf.mxu1 }
 0x1c1   : > { %v12045_v48 = vpop.f32.mrf.mxu0 }
 0x1c2   : > { %v12047_v60 = vpop.f32.mrf.mxu1 }
 0x1c3   : > { %v12049_v26 = vpop.f32.mrf.mxu0 }
 0x1c4   : > { %v12051_v44 = vpop.f32.mrf.mxu1 }
 0x1c5   : > { %v12055_v39 = vpop.f32.mrf.mxu0 }
 0x1c6   : > { %v12053_v15 = vpop.f32.mrf.mxu1 }
 0x1c7   : > { %v12064_v50 = vpop.f32.mrf.mxu0 }
 0x1c8   : > { %v12057_v16 = vpop.f32.mrf.mxu1  ;;  %14306 = vst [vmem:[#allocation105_spill] sm:$0xff] %v12064_v50 }
 0x1c9   : > { %v12073_v6 = vpop.f32.mrf.mxu0 }
 0x1ca   : > { %v12059_v52 = vpop.f32.mrf.mxu1 }
 0x1cb   : > { %14305 = vst [vmem:[#allocation104_spill] sm:$0xff] %v12059_v52  ;;  %v12079_v14 = vpop.f32.mrf.mxu0 }
 0x1cc   : > { %v12069_v4 = vpop.f32.mrf.mxu1  ;;  %14311 = vst [vmem:[#allocation110_spill] sm:$0xff] %v12079_v14 }
 0x1cd   : > { %14307 = vst [vmem:[#allocation106_spill] sm:$0xff] %v12069_v4  ;;  %v12085_v52 = vpop.f32.mrf.mxu0 }
 0x1ce   : > { %v12071_v12 = vpop.f32.mrf.mxu1  ;;  %14314 = vst [vmem:[#allocation113_spill] sm:$0xff] %v12085_v52 }
 0x1cf   : > { %14308 = vst [vmem:[#allocation107_spill] sm:$0xff] %v12071_v12  ;;  %v12091_v51 = vpop.f32.mrf.mxu0 }
 0x1d0   : > { %v12075_v2 = vpop.f32.mrf.mxu1  ;;  %14317 = vst [vmem:[#allocation116_spill] sm:$0xff] %v12091_v51 }
 0x1d1   : > { %14309 = vst [vmem:[#allocation108_spill] sm:$0xff] %v12075_v2  ;;  %v12097_v2 = vpop.f32.mrf.mxu0 }
 0x1d2   : > { %v12077_v18 = vpop.f32.mrf.mxu1  ;;  %14320 = vst [vmem:[#allocation119_spill] sm:$0xff] %v12097_v2 }
 0x1d3   : > { %14310 = vst [vmem:[#allocation109_spill] sm:$0xff] %v12077_v18 }
 0x1d4   : > { %v12081_v5 = vpop.f32.mrf.mxu1 }
 0x1d5   : > { %14312 = vst [vmem:[#allocation111_spill] sm:$0xff] %v12081_v5  ;;  %v12103_v5 = vpop.f32.mrf.mxu0 }
 0x1d6   : > { %v12083_v29 = vpop.f32.mrf.mxu1  ;;  %14323 = vst [vmem:[#allocation122_spill] sm:$0xff] %v12103_v5 }
 0x1d7   : > { %14313 = vst [vmem:[#allocation112_spill] sm:$0xff] %v12083_v29 }
 0x1d8   : > { %v12087_v50 = vpop.f32.mrf.mxu1 }
 0x1d9   : > { %14315 = vst [vmem:[#allocation114_spill] sm:$0xff] %v12087_v50  ;;  %v12109_v50 = vpop.f32.mrf.mxu0 }
 0x1da   : > { %v12089_v8 = vpop.f32.mrf.mxu1 }
 0x1db   : > { %14316 = vst [vmem:[#allocation115_spill] sm:$0xff] %v12089_v8 }
 0x1dc   : > { %v12093_v12 = vpop.f32.mrf.mxu1 }
 0x1dd   : > { %14318 = vst [vmem:[#allocation117_spill] sm:$0xff] %v12093_v12  ;;  %v12115_v12 = vpop.f32.mrf.mxu0 }
 0x1de   : > { %v12095_v4 = vpop.f32.mrf.mxu1  ;;  %14328 = vst [vmem:[#allocation127_spill] sm:$0xff] %v12115_v12 }
 0x1df   : > { %14319 = vst [vmem:[#allocation118_spill] sm:$0xff] %v12095_v4 }
 0x1e0   : > { %v12099_v18 = vpop.f32.mrf.mxu1 }
 0x1e1   : > { %14321 = vst [vmem:[#allocation120_spill] sm:$0xff] %v12099_v18  ;;  %v12121_v18 = vpop.f32.mrf.mxu0 }
 0x1e2   : > { %v12101_v14 = vpop.f32.mrf.mxu1 }
 0x1e3   : > { %14322 = vst [vmem:[#allocation121_spill] sm:$0xff] %v12101_v14 }
 0x1e4   : > { %v12105_v29 = vpop.f32.mrf.mxu1 }
 0x1e5   : > { %14324 = vst [vmem:[#allocation123_spill] sm:$0xff] %v12105_v29  ;;  %v12129_v29 = vpop.f32.mrf.mxu0 }
 0x1e6   : > { %v12107_v52 = vpop.f32.mrf.mxu1 }
 0x1e7   : > { %14325 = vst [vmem:[#allocation124_spill] sm:$0xff] %v12107_v52  ;;  %v2436_v52 = vadd.f32 %v11622_v9, %v11625_v59  ;;  %v3217_v9 = vadd.f32 %v11777_v42, %v11780_v1  ;;  %v12144_v59 = vpop.f32.mrf.mxu0 }
 0x1e8   : > { %v12111_v8 = vpop.f32.mrf.mxu1 }
 0x1e9   : > { %14326 = vst [vmem:[#allocation125_spill] sm:$0xff] %v12111_v8 }
 0x1ea   : > { %v12113_v51 = vpop.f32.mrf.mxu1 }
 0x1eb   : > { %14327 = vst [vmem:[#allocation126_spill] sm:$0xff] %v12113_v51  ;;  %v2826_v51 = vadd.f32 %v11782_v24, %v2436_v52  ;;  %v1650_v24 = vadd.f32 %v11584_v57, %v11582_v54  ;;  %v2442_v54 = vadd.f32 %v11652_v55, %v11655_v53  ;;  %v2444_v57 = vadd.f32 %v11665_v34, %v11668_v13  ;;  %v14333_v55 = vld [vmem:[#allocation40_spill] sm:$0xff] }
 0x1ec   : > { %v12117_v4 = vpop.f32.mrf.mxu1  ;;  %v12184_v53 = vadd.f32 %v11685_v62, %v11688_v47  ;;  %v14336_v47 = vld [vmem:[#allocation37_spill] sm:$0xff]  ;;  %v14337_v62 = vld [vmem:[#allocation36_spill] sm:$0xff] }
 0x1ed   : > { %14329 = vst [vmem:[#allocation128_spill] sm:$0xff] %v12117_v4  ;;  %v1630_v4 = vadd.f32 %v11564_v38, %v11562_v28  ;;  %v3216_v38 = vadd.f32 %v11784_v20, %v2826_v51 }
 0x1ee   : > { %v12119_v2 = vpop.f32.mrf.mxu1 }
 0x1ef   : > { %14330 = vst [vmem:[#allocation129_spill] sm:$0xff] %v12119_v2  ;;  %v1620_v2 = vadd.f32 %v11554_v61, %v11552_v30  ;;  %v1660_v30 = vadd.f32 %v11596_v19, %v11594_v17  ;;  %v1670_v61 = vadd.f32 %v11608_v23, %v11606_v37  ;;  %v12174_v37 = vadd.f32 %v11675_v7, %v11678_v49  ;;  %v14334_v7 = vld [vmem:[#allocation42_spill] sm:$0xff] }
 0x1f0   : > { %v12123_v14 = vpop.f32.mrf.mxu1  ;;  %v2066_v23 = vadd.f32 %v11725_v35, %v1630_v4  ;;  %v14335_v35 = vld [vmem:[#allocation50_spill] sm:$0xff] }
 0x1f1   : > { %v2064_v17 = vadd.f32 %v11716_v63, %v1620_v2  ;;  %v2070_v63 = vadd.f32 %v14334_v7, %v1650_v24  ;;  %v12211_v2 = vld [vmem:[%s14153_s2] ss:$0 sm:$0xff] }
 0x1f2   : > { %v12125_v5 = vpop.f32.mrf.mxu1 }
 0x1f3   : > { %14331 = vst [vmem:[#allocation130_spill] sm:$0xff] %v12125_v5  ;;  %v2438_v5 = vadd.f32 %v11632_v10, %v11635_v58  ;;  %v12158_v58 = vadd.f32 %v11617_v21, %v11615_v40  ;;  %v3219_v40 = vadd.f32 %v11894_v36, %v11897_v27  ;;  %v12180_v21 = vpop.f32.mrf.mxu0  ;;  %v12200_v36 = vadd.f32 %v14337_v62, %v14336_v47  ;;  %v14339_v27 = vld [vmem:[#allocation44_spill] sm:$0xff] }
 0x1f4   : > { %v12131_v8 = vpop.f32.mrf.mxu1  ;;  %v14350_v62 = vld [vmem:[#allocation56_spill] sm:$0xff] }
 0x1f5   : > { %14332 = vst [vmem:[#allocation131_spill] sm:$0xff] %v12131_v8  ;;  %v1640_v8 = vadd.f32 %v11574_v43, %v11572_v22  ;;  %v2828_v10 = vadd.f32 %v11899_v46, %v2438_v5  ;;  %v3608_v22 = vadd.f32 %v12039_v25, %v3217_v9  ;;  %v2440_v43 = vadd.f32 %v11642_v31, %v11645_v56  ;;  %v14341_v5 = vld [vmem:[#allocation51_spill] sm:$0xff]  ;;  %v14343_v9 = vld [vmem:[#allocation41_spill] sm:$0xff] }
 0x1f6   : > { %v12134_v12 = vpop.f32.mrf.mxu1  ;;  %v3607_v56 = vadd.f32 %v12043_v11, %v3216_v38  ;;  %v12188_v31 = vadd.f32 %v11695_v32, %v11698_v45  ;;  %v3610_v20 = vadd.f32 %v12047_v60, %v3219_v40  ;;  %v14338_v45 = vld [vmem:[#allocation38_spill] sm:$0xff]  ;;  %v2072_v46 = vadd.f32 %v14339_v27, %v1660_v30  ;;  %v14344_v30 = vld [vmem:[#allocation53_spill] sm:$0xff] }
 0x1f7   : > { %v2068_v49 = vadd.f32 %v14333_v55, %v1640_v8  ;;  %v2830_v34 = vadd.f32 %v11908_v33, %v2440_v43  ;;  %v3218_v1 = vadd.f32 %v14335_v35, %v2828_v10  ;;  %v3998_v42 = vadd.f32 %v12041_v0, %v3608_v22  ;;  %v14340_v33 = vld [vmem:[#allocation52_spill] sm:$0xff]  ;;  %v14342_v0 = vld [vmem:[#allocation39_spill] sm:$0xff]  ;;  %v12218_v8 = vpop.f32.mrf.mxu0  ;;  %v14346_v55 = vld [vmem:[#allocation45_spill] sm:$0xff] }
 0x1f8   : > { %v12154_v28 = vpop.f32.mrf.mxu1  ;;  %v12203_v32 = vadd.f32 %v14338_v45, %v2064_v17  ;;  %v3221_v25 = vadd.f32 %v14341_v5, %v14340_v33  ;;  %v12214_v4 = vadd.f32 %v14342_v0, %v2066_v23  ;;  %v3997_v60 = vadd.f32 %v12045_v48, %v3607_v56  ;;  %v12229_v43 = vld [vmem:[%s14154_s3] ss:$0 sm:$0xff]  ;;  %v14345_v17 = vld [vmem:[#allocation43_spill] sm:$0xff] }
 0x1f9   : > { %v3609_v11 = vadd.f32 %v12051_v44, %v3218_v1  ;;  %v12221_v24 = vadd.f32 %v14343_v9, %v2068_v49  ;;  %v3220_v38 = vadd.f32 %v14344_v30, %v2830_v34  ;;  %v2832_v10 = vadd.f32 %v11921_v41, %v2442_v54  ;;  %v14347_v41 = vld [vmem:[#allocation46_spill] sm:$0xff]  ;;  %v14352_v33 = vld [vmem:[#allocation104_spill] sm:$0xff]  ;;  %v14355_v9 = vld [vmem:[#allocation57_spill] sm:$0xff] }
 0x1fa   : > { %v12170_v19 = vpop.f32.mrf.mxu1  ;;  %v3612_v22 = vadd.f32 %v12053_v15, %v3221_v25  ;;  %v12232_v44 = vadd.f32 %v14345_v17, %v2070_v63  ;;  %v4000_v23 = vadd.f32 %v12049_v26, %v3610_v20  ;;  %v12237_v49 = vadd.f32 %v14346_v55, %v2072_v46  ;;  %v14348_v15 = vld [vmem:[#allocation55_spill] sm:$0xff]  ;;  %v14349_v34 = vld [vmem:[#allocation54_spill] sm:$0xff]  ;;  %v12244_v63 = vpop.f32.mrf.mxu0 }
 0x1fb   : > { %v2074_v54 = vadd.f32 %v14347_v41, %v1670_v61  ;;  %v3223_v7 = vadd.f32 %v14349_v34, %v14348_v15  ;;  %v3611_v35 = vadd.f32 %v12057_v16, %v3220_v38  ;;  %v3222_v45 = vadd.f32 %v14350_v62, %v2832_v10  ;;  %v14351_v61 = vld [vmem:[#allocation105_spill] sm:$0xff]  ;;  %v14358_v41 = vld [vmem:[#allocation62_spill] sm:$0xff]  ;;  %v14360_v34 = vld [vmem:[#allocation107_spill] sm:$0xff] }
 0x1fc   : > { %v12192_v13 = vpop.f32.mrf.mxu1  ;;  %v2834_v27 = vadd.f32 %v11933_v3, %v2444_v57  ;;  %v4002_v46 = vadd.f32 %v14351_v61, %v3612_v22  ;;  %v14356_v3 = vld [vmem:[#allocation106_spill] sm:$0xff]  ;;  %v12261_v22 = vpop.f32.mrf.mxu0 }
 0x1fd   : > { %v3614_v5 = vadd.f32 %v14352_v33, %v3223_v7  ;;  %v4001_v38 = vadd.f32 %v12073_v6, %v3611_v35  ;;  %v3613_v57 = vadd.f32 %v14356_v3, %v3222_v45  ;;  %v14359_v15 = vld [vmem:[#allocation110_spill] sm:$0xff]  ;;  %v14362_v45 = vld [vmem:[#allocation61_spill] sm:$0xff]  ;;  %v14365_v33 = vld [vmem:[#allocation108_spill] sm:$0xff] }
 0x1fe   : > { %v9944_v52 = vpop.f32.mrf.mxu1  ;;  %v14368_v3 = vld [vmem:[#allocation116_spill] sm:$0xff] }
 0x1ff   : > { %v4388_v51 = vadd.f32 %v9944_v52, %v3998_v42  ;;  %v3999_v42 = vadd.f32 %v12055_v39, %v3609_v11  ;;  %v4004_v6 = vadd.f32 %v14359_v15, %v3614_v5  ;;  %v14371_v15 = vld [vmem:[#allocation65_spill] sm:$0xff] }
 0x200   : > { %v4228_v48 = vpop.f32.mrf.mxu1 }
 0x201   : > { %v4427_v40 = vmul.f32 %v12211_v2, %v4388_v51  ;;  %v4387_v56 = vadd.f32 %v4228_v48, %v3997_v60  ;;  %v14353_v60 = vld [vmem:[#allocation47_spill] sm:$0xff]  ;;  %v14354_v51 = vld [vmem:[#allocation58_spill] sm:$0xff] }
 0x202   : > { %v9947_v1 = vpop.f32.mrf.mxu1  ;;  %v12255_v11 = vadd.f32 %v14353_v60, %v2074_v54  ;;  %v3225_v30 = vadd.f32 %v14355_v9, %v14354_v51  ;;  %v2836_v54 = vadd.f32 %v14358_v41, %v12174_v37  ;;  %v14364_v37 = vld [vmem:[#allocation113_spill] sm:$0xff]  ;;  %v14366_v51 = vld [vmem:[#allocation63_spill] sm:$0xff] }
 0x203   : > { %v4466_v26 = vadd.f32 %v12229_v43, %v4427_v40  ;;  %v4426_v20 = vmul.f32 %v12211_v2, %v4387_v56  ;;  %v4390_v47 = vadd.f32 %v9947_v1, %v4000_v23  ;;  %v14357_v56 = vld [vmem:[#allocation59_spill] sm:$0xff]  ;;  %v14370_v41 = vld [vmem:[#allocation49_spill] sm:$0xff] }
 0x204   : > { %v4238_v25 = vpop.f32.mrf.mxu1  ;;  %v3224_v55 = vadd.f32 %v14357_v56, %v2834_v27  ;;  %v3616_v7 = vadd.f32 %v14360_v34, %v3225_v30  ;;  %v14363_v27 = vld [vmem:[#allocation60_spill] sm:$0xff]  ;;  %v3226_v9 = vadd.f32 %v14366_v51, %v2836_v54  ;;  %v14367_v30 = vld [vmem:[#allocation66_spill] sm:$0xff]  ;;  %v14373_v34 = vld [vmem:[#allocation119_spill] sm:$0xff] }
 0x205   : > { %v4498_v16 = vmax.f32 %v4466_v26, 0.0  ;;  %v4465_v52 = vadd.f32 %v12229_v43, %v4426_v20  ;;  %v4429_v39 = vmul.f32 %v12211_v2, %v4390_v47  ;;  %v4389_v0 = vadd.f32 %v4238_v25, %v3999_v42  ;;  %v14361_v47 = vld [vmem:[#allocation48_spill] sm:$0xff] }
 0x206   : > { %v9950_v10 = vpop.f32.mrf.mxu1  ;;  %v2076_v62 = vadd.f32 %v14361_v47, %v12158_v58  ;;  %v3227_v61 = vadd.f32 %v14363_v27, %v14362_v45  ;;  %v3615_v5 = vadd.f32 %v14365_v33, %v3224_v55  ;;  %v12288_v58 = vld [vmem:[%s14155_s4 + $0x28] sm:$0xff]  ;;  %v14377_v33 = vld [vmem:[#allocation122_spill] sm:$0xff] }
 0x207   : > { %4531 = vst.msk [vmem:[#allocation3 + $0x21] sm:$0xff] %vm416_vm3, %v4498_v16  ;;  %v4497_v48 = vmax.f32 %v4465_v52, 0.0  ;;  %v4468_v17 = vadd.f32 %v12229_v43, %v4429_v39  ;;  %v4428_v23 = vmul.f32 %v12211_v2, %v4389_v0  ;;  %v4392_v40 = vadd.f32 %v9950_v10, %v4002_v46  ;;  %v12280_v16 = vpop.f32.mrf.mxu0  ;;  %v14369_v10 = vld [vmem:[#allocation109_spill] sm:$0xff]  ;;  %10240 = vmatprep.subr.mxu1 %v12288_v58 }
 0x208   : > { %v4248_v35 = vpop.f32.mrf.mxu1  ;;  %v4003_v46 = vadd.f32 %v14364_v37, %v3613_v57  ;;  %v4006_v57 = vadd.f32 %v14368_v3, %v3616_v7  ;;  %v12300_v54 = vadd.f32 %v14370_v41, %v2076_v62  ;;  %v4005_v7 = vadd.f32 %v14373_v34, %v3615_v5  ;;  %v14375_v62 = vld [vmem:[#allocation67_spill] sm:$0xff]  ;;  %v14376_v37 = vld [vmem:[#allocation70_spill] sm:$0xff] }
 0x209   : > { %4530 = vst.msk [vmem:[#allocation3 + $0x19] sm:$0xff] %vm416_vm3, %v4497_v48  ;;  %v4500_v1 = vmax.f32 %v4468_v17, 0.0  ;;  %v4467_v42 = vadd.f32 %v12229_v43, %v4428_v23  ;;  %v4431_v26 = vmul.f32 %v12211_v2, %v4392_v40  ;;  %v4391_v20 = vadd.f32 %v4248_v35, %v4001_v38  ;;  %v14374_v35 = vld [vmem:[#allocation111_spill] sm:$0xff] }
 0x20a   : > { %v9953_v25 = vpop.f32.mrf.mxu1  ;;  %v2838_v38 = vadd.f32 %v14367_v30, %v12184_v53  ;;  %v3618_v48 = vadd.f32 %v14369_v10, %v3227_v61  ;;  %v14372_v53 = vld [vmem:[#allocation64_spill] sm:$0xff] }
 0x20b   : > { %4533 = vst.msk [vmem:[#allocation3 + $0x39] sm:$0xff] %vm416_vm3, %v4500_v1  ;;  %v4499_v52 = vmax.f32 %v4467_v42, 0.0  ;;  %v4470_v39 = vadd.f32 %v12229_v43, %v4431_v26  ;;  %v4430_v0 = vmul.f32 %v12211_v2, %v4391_v20  ;;  %v4394_v60 = vadd.f32 %v9953_v25, %v4004_v6  ;;  %v12306_v26 = vpop.f32.mrf.mxu0  ;;  %v14378_v25 = vld [vmem:[#allocation112_spill] sm:$0xff] }
 0x20c   : > { %v4258_v17 = vpop.f32.mrf.mxu1  ;;  %v3229_v6 = vadd.f32 %v14372_v53, %v14371_v15  ;;  %v3617_v1 = vadd.f32 %v14374_v35, %v3226_v9  ;;  %v3228_v61 = vadd.f32 %v14375_v62, %v2838_v38  ;;  %v4008_v5 = vadd.f32 %v14377_v33, %v3618_v48  ;;  %v14380_v10 = vld [vmem:[#allocation68_spill] sm:$0xff] }
 0x20d   : > { %4532 = vst.msk [vmem:[#allocation3 + $0x31] sm:$0xff] %vm416_vm3, %v4499_v52  ;;  %v4502_v23 = vmax.f32 %v4470_v39, 0.0  ;;  %v4469_v40 = vadd.f32 %v12229_v43, %v4430_v0  ;;  %v4433_v56 = vmul.f32 %v12211_v2, %v4394_v60  ;;  %v4393_v55 = vadd.f32 %v4258_v17, %v4003_v46 }
 0x20e   : > { %v9956_v42 = vpop.f32.mrf.mxu1  ;;  %v2840_v46 = vadd.f32 %v14376_v37, %v12188_v31  ;;  %v3620_v52 = vadd.f32 %v14378_v25, %v3229_v6  ;;  %v12329_v31 = vld [vmem:[#allocation3 + $0x21] sm:$0xff]  ;;  %v4007_v17 = vadd.f32 %v12109_v50, %v3617_v1  ;;  %v14386_v25 = vld [vmem:[#allocation73_spill] sm:$0xff] }
 0x20f   : > { %4535 = vst.msk [vmem:[#allocation3 + $0x51] sm:$0xff] %vm416_vm3, %v4502_v23  ;;  %v4501_v20 = vmax.f32 %v4469_v40, 0.0  ;;  %v4472_v47 = vadd.f32 %v12229_v43, %v4433_v56  ;;  %v4432_v45 = vmul.f32 %v12211_v2, %v4393_v55  ;;  %v4396_v27 = vadd.f32 %v9956_v42, %v4006_v57  ;;  %v14379_v57 = vld [vmem:[#allocation69_spill] sm:$0xff]  ;;  %v14381_v23 = vld [vmem:[#allocation114_spill] sm:$0xff]  ;;  %v12339_v55 = vpop.f32.mrf.mxu0  ;;  %v14382_v50 = vld [vmem:[#allocation71_spill] sm:$0xff] }
 0x210   : > { %v4268_v39 = vpop.f32.mrf.mxu1  ;;  %v12316_v0 = vld [vmem:[#allocation3 + $0x19] sm:$0xff]  ;;  %v3231_v48 = vadd.f32 %v14380_v10, %v14379_v57  ;;  %v3619_v40 = vadd.f32 %v14381_v23, %v3228_v61  ;;  %v3230_v34 = vadd.f32 %v14382_v50, %v2840_v46  ;;  %v14384_v1 = vld [vmem:[#allocation127_spill] sm:$0xff] }
 0x211   : > { %v12318_v60 = vld [vmem:[#allocation3 + $0x18] sm:$0xff]  ;;  %v12320_v51 = vld [vmem:[#allocation3 + $0x20] sm:$0xff]  ;;  %4534 = vst.msk [vmem:[#allocation3 + $0x49] sm:$0xff] %vm416_vm3, %v4501_v20  ;;  %v4504_v9 = vmax.f32 %v4472_v47, 0.0  ;;  %v4471_v30 = vadd.f32 %v12229_v43, %v4432_v45  ;;  %v4435_v38 = vmul.f32 %v12211_v2, %v4396_v27  ;;  %v4395_v3 = vadd.f32 %v4268_v39, %v4005_v7  ;;  %9995 = vmatprep.mubr.msk.f32.mxu0 %vm416_vm3, %v12316_v0  ;;  %v14385_v20 = vld [vmem:[#allocation115_spill] sm:$0xff]  ;;  %v12372_v57 = vpop.f32.mrf.mxu0 }
 0x212   : > { %10045 = vmatprep.mubr.msk.f32.mxu1 %vm416_vm3, %v12318_v60  ;;  %v9959_v56 = vpop.f32.mrf.mxu1  ;;  %9996 = vmatmul.mubr.msk.f32.gmra.mxu0 %vm416_vm3, %v12329_v31  ;;  %v14383_v7 = vld [vmem:[#allocation74_spill] sm:$0xff]  ;;  %v4010_v42 = vadd.f32 %v14384_v1, %v3620_v52  ;;  %v3622_v47 = vadd.f32 %v14385_v20, %v3231_v48  ;;  %v14387_v52 = vld [vmem:[#allocation72_spill] sm:$0xff] }
 0x213   : > { %10046 = vmatmul.mubr.msk.f32.gmra.mxu1 %vm416_vm3, %v12320_v51  ;;  %4537 = vst.msk [vmem:[#allocation3 + $0x69] sm:$0xff] %vm416_vm3, %v4504_v9  ;;  %v4503_v41 = vmax.f32 %v4471_v30, 0.0  ;;  %v4474_v15 = vadd.f32 %v12229_v43, %v4435_v38  ;;  %v4434_v53 = vmul.f32 %v12211_v2, %v4395_v3  ;;  %v4398_v6 = vadd.f32 %v9959_v56, %v4008_v5  ;;  %v14388_v30 = vld [vmem:[#allocation117_spill] sm:$0xff]  ;;  %v14390_v56 = vld [vmem:[#allocation78_spill] sm:$0xff] }
 0x214   : > { %v2842_v35 = vadd.f32 %v14383_v7, %v12200_v36  ;;  %v4278_v45 = vpop.f32.mrf.mxu1  ;;  %v12349_v27 = vld [vmem:[#allocation3 + $0x31] sm:$0xff]  ;;  %v12362_v36 = vld [vmem:[#allocation3 + $0x39] sm:$0xff]  ;;  %v3233_v39 = vadd.f32 %v14387_v52, %v14386_v25  ;;  %v4009_v9 = vadd.f32 %v12121_v18, %v3619_v40  ;;  %v3621_v38 = vadd.f32 %v14388_v30, %v3230_v34  ;;  %v14389_v18 = vld [vmem:[#allocation75_spill] sm:$0xff]  ;;  %v12405_v52 = vpop.f32.mrf.mxu0 }
 0x215   : > { %v12351_v62 = vld [vmem:[#allocation3 + $0x30] sm:$0xff]  ;;  %v12353_v61 = vld [vmem:[#allocation3 + $0x38] sm:$0xff]  ;;  %4536 = vst.msk [vmem:[#allocation3 + $0x61] sm:$0xff] %vm416_vm3, %v4503_v41  ;;  %v4506_v37 = vmax.f32 %v4474_v15, 0.0  ;;  %v4473_v33 = vadd.f32 %v12229_v43, %v4434_v53  ;;  %v4437_v46 = vmul.f32 %v12211_v2, %v4398_v6  ;;  %v4397_v5 = vadd.f32 %v4278_v45, %v4007_v17  ;;  %9998 = vmatprep.mubr.msk.f32.mxu0 %vm416_vm3, %v12349_v27  ;;  %v14391_v53 = vld [vmem:[#allocation118_spill] sm:$0xff] }
 0x216   : > { %10048 = vmatprep.mubr.msk.f32.mxu1 %vm416_vm3, %v12351_v62  ;;  %v9962_v3 = vpop.f32.mrf.mxu1  ;;  %9999 = vmatmul.mubr.msk.f32.gmra.mxu0 %vm416_vm3, %v12362_v36  ;;  %v3232_v40 = vadd.f32 %v14389_v18, %v2842_v35  ;;  %v2844_v41 = vadd.f32 %v14390_v56, %v12203_v32  ;;  %v4012_v15 = vadd.f32 %v12129_v29, %v3622_v47  ;;  %v12395_v29 = vld [vmem:[#allocation3 + $0x51] sm:$0xff] }
 0x217   : > { %10049 = vmatmul.mubr.msk.f32.gmra.mxu1 %vm416_vm3, %v12353_v61  ;;  %4539 = vst.msk [vmem:[#allocation3 + $0x81] sm:$0xff] %vm416_vm3, %v4506_v37  ;;  %v4505_v10 = vmax.f32 %v4473_v33, 0.0  ;;  %v4476_v48 = vadd.f32 %v12229_v43, %v4437_v46  ;;  %v4436_v17 = vmul.f32 %v12211_v2, %v4397_v5  ;;  %v4400_v23 = vadd.f32 %v9962_v3, %v4010_v42  ;;  %v14393_v32 = vld [vmem:[#allocation77_spill] sm:$0xff]  ;;  %v14394_v47 = vld [vmem:[#allocation76_spill] sm:$0xff] }
 0x218   : > { %v3624_v6 = vadd.f32 %v14391_v53, %v3233_v39  ;;  %v4288_v50 = vpop.f32.mrf.mxu1  ;;  %v12382_v34 = vld [vmem:[#allocation3 + $0x49] sm:$0xff]  ;;  %v3235_v37 = vadd.f32 %v14394_v47, %v14393_v32  ;;  %v4011_v33 = vadd.f32 %v12144_v59, %v3621_v38 }
 0x219   : > { %v12384_v7 = vld [vmem:[#allocation3 + $0x48] sm:$0xff]  ;;  %v12386_v1 = vld [vmem:[#allocation3 + $0x50] sm:$0xff]  ;;  %4538 = vst.msk [vmem:[#allocation3 + $0x79] sm:$0xff] %vm416_vm3, %v4505_v10  ;;  %v4508_v20 = vmax.f32 %v4476_v48, 0.0  ;;  %v4475_v42 = vadd.f32 %v12229_v43, %v4436_v17  ;;  %v4439_v35 = vmul.f32 %v12211_v2, %v4400_v23  ;;  %v4399_v45 = vadd.f32 %v4288_v50, %v4009_v9  ;;  %10001 = vmatprep.mubr.msk.f32.mxu0 %vm416_vm3, %v12382_v34  ;;  %v14397_v10 = vld [vmem:[#allocation82_spill] sm:$0xff] }
 0x21a   : > { %14392 = vst [vmem:[#allocation40_spill] sm:$0xff] %v12386_v1  ;;  %10051 = vmatprep.mubr.msk.f32.mxu1 %vm416_vm3, %v12384_v7  ;;  %v14395_v46 = vld [vmem:[#allocation120_spill] sm:$0xff]  ;;  %v9965_v25 = vpop.f32.mrf.mxu1  ;;  %10002 = vmatmul.mubr.msk.f32.gmra.mxu0 %vm416_vm3, %v12395_v29  ;;  %v14396_v59 = vld [vmem:[#allocation79_spill] sm:$0xff]  ;;  %v2846_v48 = vadd.f32 %v14397_v10, %v12214_v4  ;;  %v4014_v17 = vadd.f32 %v12180_v21, %v3624_v6  ;;  %v14398_v23 = vld [vmem:[#allocation121_spill] sm:$0xff] }
 0x21b   : > { %v3623_v5 = vadd.f32 %v14395_v46, %v3232_v40  ;;  %10052 = vmatmul.mubr.msk.f32.gmra.mxu1 %vm416_vm3, %v12386_v1  ;;  %4541 = vst.msk [vmem:[#allocation3 + $0x99] sm:$0xff] %vm416_vm3, %v4508_v20  ;;  %v4507_v39 = vmax.f32 %v4475_v42, 0.0  ;;  %v4478_v9 = vadd.f32 %v12229_v43, %v4439_v35  ;;  %v4438_v30 = vmul.f32 %v12211_v2, %v4399_v45  ;;  %v12428_v21 = vld [vmem:[#allocation3 + $0x69] sm:$0xff]  ;;  %v14401_v4 = vld [vmem:[#allocation81_spill] sm:$0xff] }
 0x21c   : > { %v4402_v3 = vadd.f32 %v9965_v25, %v4012_v15  ;;  %v3234_v38 = vadd.f32 %v14396_v59, %v2844_v41  ;;  %v3626_v18 = vadd.f32 %v14398_v23, %v3235_v37  ;;  %v4298_v40 = vpop.f32.mrf.mxu1  ;;  %v12415_v56 = vld [vmem:[#allocation3 + $0x61] sm:$0xff]  ;;  %v14402_v6 = vld [vmem:[#allocation80_spill] sm:$0xff] }
 0x21d   : > { %v12417_v53 = vld [vmem:[#allocation3 + $0x60] sm:$0xff]  ;;  %v12419_v50 = vld [vmem:[#allocation3 + $0x68] sm:$0xff]  ;;  %4540 = vst.msk [vmem:[#allocation3 + $0x91] sm:$0xff] %vm416_vm3, %v4507_v39  ;;  %v4510_v20 = vmax.f32 %v4478_v9, 0.0  ;;  %v4477_v15 = vadd.f32 %v12229_v43, %v4438_v30  ;;  %v4401_v42 = vadd.f32 %v4298_v40, %v4011_v33  ;;  %10004 = vmatprep.mubr.msk.f32.mxu0 %vm416_vm3, %v12415_v56  ;;  %v3237_v35 = vadd.f32 %v14402_v6, %v14401_v4  ;;  %v12438_v33 = vpop.f32.mrf.mxu0 }
 0x21e   : > { %14399 = vst [vmem:[#allocation42_spill] sm:$0xff] %v12417_v53  ;;  %14400 = vst [vmem:[#allocation50_spill] sm:$0xff] %v12419_v50  ;;  %v4441_v41 = vmul.f32 %v12211_v2, %v4402_v3  ;;  %10054 = vmatprep.mubr.msk.f32.mxu1 %vm416_vm3, %v12417_v53  ;;  %v4013_v45 = vadd.f32 %v12218_v8, %v3623_v5  ;;  %v14403_v32 = vld [vmem:[#allocation123_spill] sm:$0xff]  ;;  %v9968_v37 = vpop.f32.mrf.mxu1  ;;  %10005 = vmatmul.mubr.msk.f32.gmra.mxu0 %vm416_vm3, %v12428_v21  ;;  %v14405_v30 = vld [vmem:[#allocation86_spill] sm:$0xff] }
 0x21f   : > { %v3625_v47 = vadd.f32 %v14403_v32, %v3234_v38  ;;  %10055 = vmatmul.mubr.msk.f32.gmra.mxu1 %vm416_vm3, %v12419_v50  ;;  %4543 = vst.msk [vmem:[#allocation3 + $0xb1] sm:$0xff] %vm416_vm3, %v4510_v20  ;;  %v4509_v46 = vmax.f32 %v4477_v15, 0.0  ;;  %v4440_v39 = vmul.f32 %v12211_v2, %v4401_v42  ;;  %v4404_v9 = vadd.f32 %v9968_v37, %v4014_v17  ;;  %v14404_v8 = vld [vmem:[#allocation83_spill] sm:$0xff]  ;;  %v14406_v38 = vld [vmem:[#allocation124_spill] sm:$0xff] }
 0x220   : > { %v4480_v25 = vadd.f32 %v12229_v43, %v4441_v41  ;;  %v3236_v5 = vadd.f32 %v14404_v8, %v2846_v48  ;;  %v2848_v3 = vadd.f32 %v14405_v30, %v12221_v24  ;;  %v4016_v59 = vadd.f32 %v12244_v63, %v3626_v18  ;;  %v4308_v23 = vpop.f32.mrf.mxu1  ;;  %v12448_v40 = vld [vmem:[#allocation3 + $0x79] sm:$0xff]  ;;  %v12461_v24 = vld [vmem:[#allocation3 + $0x81] sm:$0xff]  ;;  %v14410_v18 = vld [vmem:[#allocation84_spill] sm:$0xff] }
 0x221   : > { %v3628_v10 = vadd.f32 %v14406_v38, %v3237_v35  ;;  %v12450_v4 = vld [vmem:[#allocation3 + $0x78] sm:$0xff]  ;;  %v12452_v20 = vld [vmem:[#allocation3 + $0x80] sm:$0xff]  ;;  %4542 = vst.msk [vmem:[#allocation3 + $0xa9] sm:$0xff] %vm416_vm3, %v4509_v46  ;;  %v4479_v17 = vadd.f32 %v12229_v43, %v4440_v39  ;;  %v4443_v48 = vmul.f32 %v12211_v2, %v4404_v9  ;;  %v4403_v41 = vadd.f32 %v4308_v23, %v4013_v45  ;;  %v12471_v45 = vpop.f32.mrf.mxu0 }
 0x222   : > { %14407 = vst [vmem:[#allocation37_spill] sm:$0xff] %v12450_v4  ;;  %14408 = vst [vmem:[#allocation36_spill] sm:$0xff] %v12452_v20  ;;  %v4512_v15 = vmax.f32 %v4480_v25, 0.0  ;;  %10007 = vmatprep.mubr.msk.f32.mxu0 %vm416_vm3, %v12448_v40  ;;  %10057 = vmatprep.mubr.msk.f32.mxu1 %vm416_vm3, %v12450_v4  ;;  %v14409_v63 = vld [vmem:[#allocation85_spill] sm:$0xff]  ;;  %v4015_v6 = vadd.f32 %v12261_v22, %v3625_v47  ;;  %v9971_v37 = vpop.f32.mrf.mxu1  ;;  %v14412_v22 = vld [vmem:[#allocation87_spill] sm:$0xff] }
 0x223   : > { %v3239_v42 = vadd.f32 %v14410_v18, %v14409_v63  ;;  %v14411_v35 = vld [vmem:[#allocation125_spill] sm:$0xff]  ;;  %10008 = vmatmul.mubr.msk.f32.gmra.mxu0 %vm416_vm3, %v12461_v24  ;;  %10058 = vmatmul.mubr.msk.f32.gmra.mxu1 %vm416_vm3, %v12452_v20  ;;  %v4511_v46 = vmax.f32 %v4479_v17, 0.0  ;;  %v4482_v25 = vadd.f32 %v12229_v43, %v4443_v48  ;;  %v4442_v39 = vmul.f32 %v12211_v2, %v4403_v41  ;;  %v14413_v8 = vld [vmem:[#allocation90_spill] sm:$0xff] }
 0x224   : > { %v3627_v32 = vadd.f32 %v14411_v35, %v3236_v5  ;;  %4545 = vst.msk [vmem:[#allocation3 + $0xc9] sm:$0xff] %vm416_vm3, %v4512_v15  ;;  %v4406_v9 = vadd.f32 %v9971_v37, %v4016_v59  ;;  %v3238_v47 = vadd.f32 %v14412_v22, %v2848_v3  ;;  %v2850_v5 = vadd.f32 %v14413_v8, %v12232_v44  ;;  %v14414_v38 = vld [vmem:[#allocation126_spill] sm:$0xff]  ;;  %v4318_v63 = vpop.f32.mrf.mxu1  ;;  %v12481_v18 = vld [vmem:[#allocation3 + $0x91] sm:$0xff] }
 0x225   : > { %v4018_v30 = vadd.f32 %v12280_v16, %v3628_v10  ;;  %v3630_v23 = vadd.f32 %v14414_v38, %v3239_v42  ;;  %14415 = vst [vmem:[#allocation38_spill] sm:$0xff] %v12481_v18  ;;  %v12483_v35 = vld [vmem:[#allocation3 + $0x90] sm:$0xff]  ;;  %v12485_v15 = vld [vmem:[#allocation3 + $0x98] sm:$0xff]  ;;  %4544 = vst.msk [vmem:[#allocation3 + $0xc1] sm:$0xff] %vm416_vm3, %v4511_v46  ;;  %v4514_v17 = vmax.f32 %v4482_v25, 0.0  ;;  %v4481_v59 = vadd.f32 %v12229_v43, %v4442_v39 }
 0x226   : > { %14416 = vst [vmem:[#allocation44_spill] sm:$0xff] %v12483_v35  ;;  %14417 = vst [vmem:[#allocation52_spill] sm:$0xff] %v12485_v15  ;;  %v4445_v3 = vmul.f32 %v12211_v2, %v4406_v9  ;;  %v4405_v48 = vadd.f32 %v4318_v63, %v4015_v6  ;;  %10010 = vmatprep.mubr.msk.f32.mxu0 %vm416_vm3, %v12481_v18  ;;  %10060 = vmatprep.mubr.msk.f32.mxu1 %vm416_vm3, %v12483_v35  ;;  %v12494_v44 = vld [vmem:[#allocation3 + $0x99] sm:$0xff]  ;;  %v14420_v10 = vld [vmem:[#allocation88_spill] sm:$0xff]  ;;  %v9974_v25 = vpop.f32.mrf.mxu1  ;;  %v12504_v6 = vpop.f32.mrf.mxu0 }
 0x227   : > { %14418 = vst [vmem:[#allocation51_spill] sm:$0xff] %v12494_v44  ;;  %v14419_v16 = vld [vmem:[#allocation89_spill] sm:$0xff]  ;;  %v4017_v42 = vadd.f32 %v12306_v26, %v3627_v32  ;;  %v14421_v37 = vld [vmem:[#allocation128_spill] sm:$0xff]  ;;  %10011 = vmatmul.mubr.msk.f32.gmra.mxu0 %vm416_vm3, %v12494_v44  ;;  %10061 = vmatmul.mubr.msk.f32.gmra.mxu1 %vm416_vm3, %v12485_v15  ;;  %4547 = vst.msk [vmem:[#allocation3 + $0xe1] sm:$0xff] %vm416_vm3, %v4514_v17  ;;  %v4513_v39 = vmax.f32 %v4481_v59, 0.0  ;;  %v4408_v8 = vadd.f32 %v9974_v25, %v4018_v30 }
 0x228   : > { %v3241_v41 = vadd.f32 %v14420_v10, %v14419_v16  ;;  %v3629_v46 = vadd.f32 %v14421_v37, %v3238_v47  ;;  %v4484_v9 = vadd.f32 %v12229_v43, %v4445_v3  ;;  %v4444_v22 = vmul.f32 %v12211_v2, %v4405_v48  ;;  %v14422_v26 = vld [vmem:[#allocation91_spill] sm:$0xff]  ;;  %v14423_v47 = vld [vmem:[#allocation94_spill] sm:$0xff]  ;;  %v14424_v16 = vld [vmem:[#allocation129_spill] sm:$0xff]  ;;  %v4328_v37 = vpop.f32.mrf.mxu1 }
 0x229   : > { %v3240_v32 = vadd.f32 %v14422_v26, %v2850_v5  ;;  %v2852_v38 = vadd.f32 %v14423_v47, %v12237_v49  ;;  %v4020_v63 = vadd.f32 %v12339_v55, %v3630_v23  ;;  %v12514_v44 = vld [vmem:[#allocation3 + $0xa9] sm:$0xff]  ;;  %4546 = vst.msk [vmem:[#allocation3 + $0xd9] sm:$0xff] %vm416_vm3, %v4513_v39  ;;  %v4447_v5 = vmul.f32 %v12211_v2, %v4408_v8  ;;  %v12527_v49 = vld [vmem:[#allocation3 + $0xb1] sm:$0xff] }
 0x22a   : > { %v3632_v10 = vadd.f32 %v14424_v16, %v3241_v41  ;;  %v12516_v18 = vld [vmem:[#allocation3 + $0xa8] sm:$0xff]  ;;  %v12518_v17 = vld [vmem:[#allocation3 + $0xb0] sm:$0xff]  ;;  %v4516_v59 = vmax.f32 %v4484_v9, 0.0  ;;  %v4483_v30 = vadd.f32 %v12229_v43, %v4444_v22  ;;  %v4407_v3 = vadd.f32 %v4328_v37, %v4017_v42  ;;  %10013 = vmatprep.mubr.msk.f32.mxu0 %vm416_vm3, %v12514_v44  ;;  %14427 = vst [vmem:[#allocation53_spill] sm:$0xff] %v12527_v49  ;;  %v14428_v55 = vld [vmem:[#allocation93_spill] sm:$0xff]  ;;  %v9977_v39 = vpop.f32.mrf.mxu1  ;;  %v12537_v42 = vpop.f32.mrf.mxu0 }
 0x22b   : > { %14425 = vst [vmem:[#allocation39_spill] sm:$0xff] %v12516_v18  ;;  %14426 = vst [vmem:[#allocation41_spill] sm:$0xff] %v12518_v17  ;;  %10063 = vmatprep.mubr.msk.f32.mxu1 %vm416_vm3, %v12516_v18  ;;  %v14429_v23 = vld [vmem:[#allocation92_spill] sm:$0xff]  ;;  %v4019_v41 = vadd.f32 %v12372_v57, %v3629_v46  ;;  %v3631_v25 = vadd.f32 %v12123_v14, %v3240_v32  ;;  %10014 = vmatmul.mubr.msk.f32.gmra.mxu0 %vm416_vm3, %v12527_v49  ;;  %v14430_v57 = vld [vmem:[#allocation95_spill] sm:$0xff] }
 0x22c   : > { %v3243_v48 = vadd.f32 %v14429_v23, %v14428_v55  ;;  %10064 = vmatmul.mubr.msk.f32.gmra.mxu1 %vm416_vm3, %v12518_v17  ;;  %4549 = vst.msk [vmem:[#allocation3 + $0xf9] sm:$0xff] %vm416_vm3, %v4516_v59  ;;  %v4515_v9 = vmax.f32 %v4483_v30, 0.0  ;;  %v4486_v22 = vadd.f32 %v12229_v43, %v4447_v5  ;;  %v4446_v8 = vmul.f32 %v12211_v2, %v4407_v3  ;;  %v14431_v14 = vld [vmem:[#allocation98_spill] sm:$0xff]  ;;  %v4338_v55 = vpop.f32.mrf.mxu1  ;;  %v12551_v59 = vld [vmem:[#allocation3 + $0xc8] sm:$0xff] }
 0x22d   : > { %v4410_v26 = vadd.f32 %v9977_v39, %v4020_v63  ;;  %v3242_v46 = vadd.f32 %v14430_v57, %v2852_v38  ;;  %v2854_v32 = vadd.f32 %v14431_v14, %v12255_v11  ;;  %v4022_v47 = vadd.f32 %v12405_v52, %v3632_v10  ;;  %v14432_v16 = vld [vmem:[#allocation130_spill] sm:$0xff]  ;;  %14434 = vst [vmem:[#allocation45_spill] sm:$0xff] %v12551_v59  ;;  %v12560_v11 = vld [vmem:[#allocation3 + $0xc9] sm:$0xff]  ;;  %v14436_v52 = vld [vmem:[#allocation97_spill] sm:$0xff] }
 0x22e   : > { %v3634_v37 = vadd.f32 %v14432_v16, %v3243_v48  ;;  %v12547_v23 = vld [vmem:[#allocation3 + $0xc1] sm:$0xff]  ;;  %4548 = vst.msk [vmem:[#allocation3 + $0xf1] sm:$0xff] %vm416_vm3, %v4515_v9  ;;  %v4518_v30 = vmax.f32 %v4486_v22, 0.0  ;;  %v4485_v63 = vadd.f32 %v12229_v43, %v4446_v8  ;;  %v4409_v5 = vadd.f32 %v4338_v55, %v4019_v41  ;;  %14435 = vst [vmem:[#allocation46_spill] sm:$0xff] %v12560_v11  ;;  %v14437_v10 = vld [vmem:[#allocation96_spill] sm:$0xff]  ;;  %v9980_v22 = vpop.f32.mrf.mxu1  ;;  %v3978_v41 = vpop.f32.mrf.mxu0 }
 0x22f   : > { %v12549_v49 = vld [vmem:[#allocation3 + $0xc0] sm:$0xff]  ;;  %v4449_v38 = vmul.f32 %v12211_v2, %v4410_v26  ;;  %10016 = vmatprep.mubr.msk.f32.mxu0 %vm416_vm3, %v12547_v23  ;;  %v3245_v3 = vadd.f32 %v14437_v10, %v14436_v52  ;;  %v4021_v48 = vadd.f32 %v12438_v33, %v3631_v25  ;;  %v14438_v39 = vld [vmem:[#allocation131_spill] sm:$0xff]  ;;  %v4412_v14 = vadd.f32 %v9980_v22, %v4022_v47 }
 0x230   : > { %14433 = vst [vmem:[#allocation43_spill] sm:$0xff] %v12549_v49  ;;  %10066 = vmatprep.mubr.msk.f32.mxu1 %vm416_vm3, %v12549_v49  ;;  %v3633_v9 = vadd.f32 %v14438_v39, %v3242_v46  ;;  %10017 = vmatmul.mubr.msk.f32.gmra.mxu0 %vm416_vm3, %v12560_v11  ;;  %4551 = vst.msk [vmem:[#allocation3 + $0x111] sm:$0xff] %vm416_vm3, %v4518_v30  ;;  %v4517_v8 = vmax.f32 %v4485_v63, 0.0  ;;  %v4448_v57 = vmul.f32 %v12211_v2, %v4409_v5  ;;  %v14439_v16 = vld [vmem:[#allocation99_spill] sm:$0xff]  ;;  %v14440_v25 = vld [vmem:[#allocation102_spill] sm:$0xff]  ;;  %v4348_v10 = vpop.f32.mrf.mxu1 }
 0x231   : > { %10067 = vmatmul.mubr.msk.f32.gmra.mxu1 %vm416_vm3, %v12551_v59  ;;  %v4488_v26 = vadd.f32 %v12229_v43, %v4449_v38  ;;  %v3244_v33 = vadd.f32 %v14439_v16, %v2854_v32  ;;  %v2856_v46 = vadd.f32 %v14440_v25, %v12300_v54  ;;  %v4024_v55 = vadd.f32 %v12471_v45, %v3634_v37  ;;  %v12578_v39 = vld [vmem:[#allocation3 + $0xd9] sm:$0xff]  ;;  %v14444_v45 = vld [vmem:[#allocation100_spill] sm:$0xff]  ;;  %v14445_v16 = vld [vmem:[#allocation103_spill] sm:$0xff] }
 0x232   : > { %v3636_v52 = vadd.f32 %v12134_v12, %v3245_v3  ;;  %v12580_v11 = vld [vmem:[#allocation3 + $0xd8] sm:$0xff]  ;;  %v12582_v30 = vld [vmem:[#allocation3 + $0xe0] sm:$0xff]  ;;  %4550 = vst.msk [vmem:[#allocation3 + $0x109] sm:$0xff] %vm416_vm3, %v4517_v8  ;;  %v4487_v47 = vadd.f32 %v12229_v43, %v4448_v57  ;;  %v4451_v32 = vmul.f32 %v12211_v2, %v4412_v14  ;;  %v4411_v38 = vadd.f32 %v4348_v10, %v4021_v48  ;;  %v9983_v22 = vpop.f32.mrf.mxu1  ;;  %v9939_v48 = vpop.f32.mrf.mxu0 }
 0x233   : > { %14441 = vst [vmem:[#allocation55_spill] sm:$0xff] %v12580_v11  ;;  %14442 = vst [vmem:[#allocation54_spill] sm:$0xff] %v12582_v30  ;;  %v4520_v63 = vmax.f32 %v4488_v26, 0.0  ;;  %10019 = vmatprep.mubr.msk.f32.mxu0 %vm416_vm3, %v12578_v39  ;;  %10069 = vmatprep.mubr.msk.f32.mxu1 %vm416_vm3, %v12580_v11  ;;  %v12591_v12 = vld [vmem:[#allocation3 + $0xe1] sm:$0xff]  ;;  %v14443_v54 = vld [vmem:[#allocation101_spill] sm:$0xff]  ;;  %v4023_v5 = vadd.f32 %v12504_v6, %v3633_v9  ;;  %v3635_v3 = vadd.f32 %v12154_v28, %v3244_v33 }
 0x234   : > { %v3247_v37 = vadd.f32 %v14444_v45, %v14443_v54  ;;  %10020 = vmatmul.mubr.msk.f32.gmra.mxu0 %vm416_vm3, %v12591_v12  ;;  %v4519_v8 = vmax.f32 %v4487_v47, 0.0  ;;  %v4490_v26 = vadd.f32 %v12229_v43, %v4451_v32  ;;  %v4450_v57 = vmul.f32 %v12211_v2, %v4411_v38  ;;  %v4358_v33 = vpop.f32.mrf.mxu1  ;;  %v3988_v38 = vpop.f32.mrf.mxu0 }
 0x235   : > { %10070 = vmatmul.mubr.msk.f32.gmra.mxu1 %vm416_vm3, %v12582_v30  ;;  %4553 = vst.msk [vmem:[#allocation3 + $0x129] sm:$0xff] %vm416_vm3, %v4520_v63  ;;  %v4414_v14 = vadd.f32 %v9983_v22, %v4024_v55  ;;  %v3246_v6 = vadd.f32 %v14445_v16, %v2856_v46  ;;  %v4026_v28 = vadd.f32 %v12537_v42, %v3636_v52  ;;  %v12607_v25 = vld [vmem:[#allocation3 + $0xf1] sm:$0xff] }
 0x236   : > { %v3638_v9 = vadd.f32 %v12170_v19, %v3247_v37  ;;  %v12609_v10 = vld [vmem:[#allocation3 + $0xf0] sm:$0xff]  ;;  %v12611_v54 = vld [vmem:[#allocation3 + $0xf8] sm:$0xff]  ;;  %4552 = vst.msk [vmem:[#allocation3 + $0x121] sm:$0xff] %vm416_vm3, %v4519_v8  ;;  %v4522_v63 = vmax.f32 %v4490_v26, 0.0  ;;  %v4489_v47 = vadd.f32 %v12229_v43, %v4450_v57  ;;  %v4413_v32 = vadd.f32 %v4358_v33, %v4023_v5  ;;  %10022 = vmatprep.mubr.msk.f32.mxu0 %vm416_vm3, %v12607_v25  ;;  %v9986_v52 = vpop.f32.mrf.mxu1 }
 0x237   : > { %14446 = vst [vmem:[#allocation56_spill] sm:$0xff] %v12609_v10  ;;  %14447 = vst [vmem:[#allocation105_spill] sm:$0xff] %v12611_v54  ;;  %v4453_v55 = vmul.f32 %v12211_v2, %v4414_v14  ;;  %10072 = vmatprep.mubr.msk.f32.mxu1 %vm416_vm3, %v12609_v10  ;;  %v12620_v19 = vld [vmem:[#allocation3 + $0xf9] sm:$0xff]  ;;  %v4025_v42 = vadd.f32 %v3978_v41, %v3635_v3  ;;  %v3637_v46 = vadd.f32 %v12192_v13, %v3246_v6 }
 0x238   : > { %10023 = vmatmul.mubr.msk.f32.gmra.mxu0 %vm416_vm3, %v12620_v19  ;;  %4555 = vst.msk [vmem:[#allocation3 + $0x141] sm:$0xff] %vm416_vm3, %v4522_v63  ;;  %v4521_v45 = vmax.f32 %v4489_v47, 0.0  ;;  %v4452_v5 = vmul.f32 %v12211_v2, %v4413_v32  ;;  %v4416_v22 = vadd.f32 %v9986_v52, %v4026_v28  ;;  %v4028_v8 = vadd.f32 %v9939_v48, %v3638_v9  ;;  %v4368_v41 = vpop.f32.mrf.mxu1  ;;  %v12643_v48 = vld [vmem:[#allocation3 + $0x111] sm:$0xff] }
 0x239   : > { %10073 = vmatmul.mubr.msk.f32.gmra.mxu1 %vm416_vm3, %v12611_v54  ;;  %v4492_v37 = vadd.f32 %v12229_v43, %v4453_v55  ;;  %v12630_v3 = vld [vmem:[#allocation3 + $0x109] sm:$0xff]  ;;  %v4415_v6 = vadd.f32 %v4368_v41, %v4025_v42  ;;  %v4027_v28 = vadd.f32 %v3988_v38, %v3637_v46 }
 0x23a   : > { %v12632_v13 = vld [vmem:[#allocation3 + $0x108] sm:$0xff]  ;;  %v12634_v26 = vld [vmem:[#allocation3 + $0x110] sm:$0xff]  ;;  %4554 = vst.msk [vmem:[#allocation3 + $0x139] sm:$0xff] %vm416_vm3, %v4521_v45  ;;  %v4491_v14 = vadd.f32 %v12229_v43, %v4452_v5  ;;  %v4455_v16 = vmul.f32 %v12211_v2, %v4416_v22  ;;  %10025 = vmatprep.mubr.msk.f32.mxu0 %vm416_vm3, %v12630_v3  ;;  %v9989_v9 = vpop.f32.mrf.mxu1 }
 0x23b   : > { %14448 = vst [vmem:[#allocation104_spill] sm:$0xff] %v12632_v13  ;;  %14449 = vst [vmem:[#allocation47_spill] sm:$0xff] %v12634_v26  ;;  %v4524_v57 = vmax.f32 %v4492_v37, 0.0  ;;  %10075 = vmatprep.mubr.msk.f32.mxu1 %vm416_vm3, %v12632_v13  ;;  %v4454_v47 = vmul.f32 %v12211_v2, %v4415_v6  ;;  %v4418_v55 = vadd.f32 %v9989_v9, %v4028_v8 }
 0x23c   : > { %10026 = vmatmul.mubr.msk.f32.gmra.mxu0 %vm416_vm3, %v12643_v48  ;;  %v4523_v33 = vmax.f32 %v4491_v14, 0.0  ;;  %v4494_v63 = vadd.f32 %v12229_v43, %v4455_v16  ;;  %v4378_v32 = vpop.f32.mrf.mxu1  ;;  %v12665_v22 = vld [vmem:[#allocation3 + $0x129] sm:$0xff] }
 0x23d   : > { %10076 = vmatmul.mubr.msk.f32.gmra.mxu1 %vm416_vm3, %v12634_v26  ;;  %4557 = vst.msk [vmem:[#allocation3 + $0x159] sm:$0xff] %vm416_vm3, %v4524_v57  ;;  %v12652_v42 = vld [vmem:[#allocation3 + $0x121] sm:$0xff]  ;;  %v4493_v45 = vadd.f32 %v12229_v43, %v4454_v47  ;;  %v4457_v37 = vmul.f32 %v12211_v2, %v4418_v55  ;;  %v4417_v5 = vadd.f32 %v4378_v32, %v4027_v28 }
 0x23e   : > { %v12654_v52 = vld [vmem:[#allocation3 + $0x120] sm:$0xff]  ;;  %v12656_v46 = vld [vmem:[#allocation3 + $0x128] sm:$0xff]  ;;  %4556 = vst.msk [vmem:[#allocation3 + $0x151] sm:$0xff] %vm416_vm3, %v4523_v33  ;;  %v4526_v38 = vmax.f32 %v4494_v63, 0.0  ;;  %10028 = vmatprep.mubr.msk.f32.mxu0 %vm416_vm3, %v12652_v42 }
 0x23f   : > { %14450 = vst [vmem:[#allocation58_spill] sm:$0xff] %v12654_v52  ;;  %14451 = vst [vmem:[#allocation57_spill] sm:$0xff] %v12656_v46  ;;  %10078 = vmatprep.mubr.msk.f32.mxu1 %vm416_vm3, %v12654_v52  ;;  %v4525_v8 = vmax.f32 %v4493_v45, 0.0  ;;  %v4496_v41 = vadd.f32 %v12229_v43, %v4457_v37  ;;  %v4456_v57 = vmul.f32 %v12211_v2, %v4417_v5  ;;  %v12686_v33 = vld [vmem:[#allocation3 + $0x141] sm:$0xff] }
 0x240   : > { %10029 = vmatmul.mubr.msk.f32.gmra.mxu0 %vm416_vm3, %v12665_v22  ;;  %4559 = vst.msk [vmem:[#allocation3 + $0x171] sm:$0xff] %vm416_vm3, %v4526_v38  ;;  %v5271_v32 = vld [vmem:[#allocation3 + $0x2] sm:$0xff] }
 0x241   : > { %10079 = vmatmul.mubr.msk.f32.gmra.mxu1 %vm416_vm3, %v12656_v46  ;;  %v12674_v14 = vld [vmem:[#allocation3 + $0x139] sm:$0xff]  ;;  %4558 = vst.msk [vmem:[#allocation3 + $0x169] sm:$0xff] %vm416_vm3, %v4525_v8  ;;  %v4528_v28 = vmax.f32 %v4496_v41, 0.0  ;;  %v4495_v9 = vadd.f32 %v12229_v43, %v4456_v57  ;;  %v5272_v8 = vld [vmem:[#allocation3 + $0xa] sm:$0xff]  ;;  %v9994_v41 = vpop.f32.mrf.mxu0 }
 0x242   : > { %v12676_v16 = vld [vmem:[#allocation3 + $0x138] sm:$0xff]  ;;  %v12678_v6 = vld [vmem:[#allocation3 + $0x140] sm:$0xff]  ;;  %10031 = vmatprep.mubr.msk.f32.mxu0 %vm416_vm3, %v12674_v14 }
 0x243   : > { %14452 = vst [vmem:[#allocation106_spill] sm:$0xff] %v12676_v16  ;;  %14453 = vst [vmem:[#allocation59_spill] sm:$0xff] %v12678_v6  ;;  %10081 = vmatprep.mubr.msk.f32.mxu1 %vm416_vm3, %v12676_v16  ;;  %v4527_v2 = vmax.f32 %v4495_v9, 0.0  ;;  %v12737_v9 = vld [vmem:[%s14155_s4 + $0x30] sm:$0xff] }
 0x244   : > { %10032 = vmatmul.mubr.msk.f32.gmra.mxu0 %vm416_vm3, %v12686_v33  ;;  %4561 = vst.msk [vmem:[#allocation3 + $0x189] sm:$0xff] %vm416_vm3, %v4528_v28  ;;  %v12704_v55 = vld [vmem:[#allocation3 + $0x159] sm:$0xff] }
 0x245   : > { %10082 = vmatmul.mubr.msk.f32.gmra.mxu1 %vm416_vm3, %v12678_v6  ;;  %v12693_v63 = vld [vmem:[#allocation3 + $0x151] sm:$0xff]  ;;  %4560 = vst.msk [vmem:[#allocation3 + $0x181] sm:$0xff] %vm416_vm3, %v4527_v2  ;;  %v12732_v28 = vld [vmem:[#allocation3 + $0x1a] sm:$0xff] }
 0x246   : > { %v12695_v43 = vld [vmem:[#allocation3 + $0x150] sm:$0xff]  ;;  %v12697_v47 = vld [vmem:[#allocation3 + $0x158] sm:$0xff]  ;;  %10034 = vmatprep.mubr.msk.f32.mxu0 %vm416_vm3, %v12693_v63 }
 0x247   : > { %14454 = vst [vmem:[#allocation62_spill] sm:$0xff] %v12695_v43  ;;  %14455 = vst [vmem:[#allocation110_spill] sm:$0xff] %v12697_v47  ;;  %10084 = vmatprep.mubr.msk.f32.mxu1 %vm416_vm3, %v12695_v43  ;;  %v12720_v5 = vld [vmem:[#allocation3 + $0x171] sm:$0xff] }
 0x248   : > { %10035 = vmatmul.mubr.msk.f32.gmra.mxu0 %vm416_vm3, %v12704_v55  ;;  %v12710_v38 = vld [vmem:[#allocation3 + $0x169] sm:$0xff] }
 0x249   : > { %10085 = vmatmul.mubr.msk.f32.gmra.mxu1 %vm416_vm3, %v12697_v47  ;;  %v12712_v45 = vld [vmem:[#allocation3 + $0x168] sm:$0xff]  ;;  %v12714_v37 = vld [vmem:[#allocation3 + $0x170] sm:$0xff]  ;;  %10037 = vmatprep.mubr.msk.f32.mxu0 %vm416_vm3, %v12710_v38 }
 0x24a   : > { %14456 = vst [vmem:[#allocation107_spill] sm:$0xff] %v12712_v45  ;;  %10087 = vmatprep.mubr.msk.f32.mxu1 %vm416_vm3, %v12712_v45 }
 0x24c   : > { %10038 = vmatmul.mubr.msk.f32.gmra.mxu0 %vm416_vm3, %v12720_v5 }
 0x24d   : > { %10088 = vmatmul.mubr.msk.f32.gmra.mxu1 %vm416_vm3, %v12714_v37  ;;  %10092 = vmatprep.mubr.msk.f32.mxu0 %vm416_vm3, %v5271_v32  ;;  %v10451_v32 = vld [vmem:[%s14155_s4 + $0x20] sm:$0xff] }
 0x24e   : > { %10142 = vmatprep.mubr.msk.f32.mxu1 %vm416_vm3, %v12318_v60  ;;  %v12742_v60 = vld [vmem:[%s14155_s4 + $0x38] sm:$0xff] }
 0x24f   : > { %v10044_v57 = vpop.f32.mrf.mxu1 }
 0x250   : > { %10093 = vmatmul.mubr.msk.f32.vlgmr.msra.gmra.mxu0 %vm416_vm3, %v5272_v8  ;;  %v12744_v2 = vadd.f32 %v10044_v57, %v9994_v41  ;;  %v12762_v8 = vld [vmem:[#allocation3 + $0x32] sm:$0xff]  ;;  %v12774_v41 = vld [vmem:[#allocation3 + $0x4a] sm:$0xff] }
 0x251   : > { %10143 = vmatmul.mubr.msk.f32.vlgmr.msra.gmra.mxu1 %vm416_vm3, %v12320_v51  ;;  %10191 = vmatpush3.msra.mxu0 %v10451_v32  ;;  %v12754_v51 = vld [vmem:[#allocation3 + $0x22] sm:$0xff]  ;;  %v12780_v57 = vld [vmem:[#allocation3 + $0x52] sm:$0xff] }
 0x252   : > { %14457 = vst [vmem:[#allocation48_spill] sm:$0xff] %v12744_v2  ;;  %10095 = vmatprep.mubr.msk.f32.mxu0 %vm416_vm3, %v12732_v28  ;;  %10145 = vmatprep.mubr.msk.f32.mxu1 %vm416_vm3, %v12351_v62  ;;  %v12786_v32 = vld [vmem:[#allocation3 + $0x62] sm:$0xff]  ;;  %v12792_v2 = vld [vmem:[#allocation3 + $0x6a] sm:$0xff] }
 0x253   : > { %10241 = vmatpush3.msra.mxu1 %v12288_v58  ;;  %10290 = vmatprep.subr.mxu0 %v12737_v9  ;;  %v12768_v58 = vld [vmem:[#allocation3 + $0x3a] sm:$0xff] }
 0x254   : > { %10340 = vmatprep.subr.mxu1 %v12742_v60  ;;  %10096 = vmatmul.mubr.msk.f32.gmra.mxu0 %vm416_vm3, %v12754_v51 }
 0x255   : > { %10146 = vmatmul.mubr.msk.f32.gmra.mxu1 %vm416_vm3, %v12353_v61  ;;  %10098 = vmatprep.mubr.msk.f32.mxu0 %vm416_vm3, %v12762_v8 }
 0x256   : > { %10148 = vmatprep.mubr.msk.f32.mxu1 %vm416_vm3, %v12384_v7 }
 0x258   : > { %10099 = vmatmul.mubr.msk.f32.gmra.mxu0 %vm416_vm3, %v12768_v58 }
 0x259   : > { %10149 = vmatmul.mubr.msk.f32.gmra.mxu1 %vm416_vm3, %v12386_v1  ;;  %10101 = vmatprep.mubr.msk.f32.mxu0 %vm416_vm3, %v12774_v41  ;;  %v12920_v1 = vld [vmem:[#allocation3 + $0x180] sm:$0xff] }
 0x25a   : > { %10151 = vmatprep.mubr.msk.f32.mxu1 %vm416_vm3, %v12417_v53  ;;  %v12798_v53 = vld [vmem:[#allocation3 + $0x7a] sm:$0xff]  ;;  %14458 = vst [vmem:[#allocation61_spill] sm:$0xff] %v12920_v1 }
 0x25c   : > { %10102 = vmatmul.mubr.msk.f32.gmra.mxu0 %vm416_vm3, %v12780_v57 }
 0x25d   : > { %10152 = vmatmul.mubr.msk.f32.gmra.mxu1 %vm416_vm3, %v12419_v50  ;;  %10104 = vmatprep.mubr.msk.f32.mxu0 %vm416_vm3, %v12786_v32  ;;  %v12804_v50 = vld [vmem:[#allocation3 + $0x82] sm:$0xff] }
 0x25e   : > { %10154 = vmatprep.mubr.msk.f32.mxu1 %vm416_vm3, %v12450_v4  ;;  %v12810_v4 = vld [vmem:[#allocation3 + $0x92] sm:$0xff] }
 0x260   : > { %10105 = vmatmul.mubr.msk.f32.gmra.mxu0 %vm416_vm3, %v12792_v2 }
 0x261   : > { %10155 = vmatmul.mubr.msk.f32.gmra.mxu1 %vm416_vm3, %v12452_v20  ;;  %10107 = vmatprep.mubr.msk.f32.mxu0 %vm416_vm3, %v12798_v53  ;;  %v12816_v20 = vld [vmem:[#allocation3 + $0x9a] sm:$0xff] }
 0x262   : > { %10157 = vmatprep.mubr.msk.f32.mxu1 %vm416_vm3, %v12483_v35  ;;  %v12822_v35 = vld [vmem:[#allocation3 + $0xaa] sm:$0xff] }
 0x264   : > { %10108 = vmatmul.mubr.msk.f32.gmra.mxu0 %vm416_vm3, %v12804_v50 }
 0x265   : > { %10158 = vmatmul.mubr.msk.f32.gmra.mxu1 %vm416_vm3, %v12485_v15  ;;  %10110 = vmatprep.mubr.msk.f32.mxu0 %vm416_vm3, %v12810_v4  ;;  %v12828_v15 = vld [vmem:[#allocation3 + $0xb2] sm:$0xff] }
 0x266   : > { %10160 = vmatprep.mubr.msk.f32.mxu1 %vm416_vm3, %v12516_v18  ;;  %v12834_v18 = vld [vmem:[#allocation3 + $0xc2] sm:$0xff] }
 0x268   : > { %10111 = vmatmul.mubr.msk.f32.gmra.mxu0 %vm416_vm3, %v12816_v20 }
 0x269   : > { %10161 = vmatmul.mubr.msk.f32.gmra.mxu1 %vm416_vm3, %v12518_v17  ;;  %10113 = vmatprep.mubr.msk.f32.mxu0 %vm416_vm3, %v12822_v35  ;;  %v12840_v17 = vld [vmem:[#allocation3 + $0xca] sm:$0xff] }
 0x26a   : > { %10163 = vmatprep.mubr.msk.f32.mxu1 %vm416_vm3, %v12549_v49  ;;  %v12846_v49 = vld [vmem:[#allocation3 + $0xda] sm:$0xff] }
 0x26c   : > { %10114 = vmatmul.mubr.msk.f32.gmra.mxu0 %vm416_vm3, %v12828_v15 }
 0x26d   : > { %10164 = vmatmul.mubr.msk.f32.gmra.mxu1 %vm416_vm3, %v12551_v59  ;;  %10116 = vmatprep.mubr.msk.f32.mxu0 %vm416_vm3, %v12834_v18  ;;  %v12852_v59 = vld [vmem:[#allocation3 + $0xe2] sm:$0xff] }
 0x26e   : > { %10166 = vmatprep.mubr.msk.f32.mxu1 %vm416_vm3, %v12580_v11  ;;  %v12858_v11 = vld [vmem:[#allocation3 + $0xf2] sm:$0xff] }
 0x270   : > { %10117 = vmatmul.mubr.msk.f32.gmra.mxu0 %vm416_vm3, %v12840_v17 }
 0x271   : > { %10167 = vmatmul.mubr.msk.f32.gmra.mxu1 %vm416_vm3, %v12582_v30  ;;  %10119 = vmatprep.mubr.msk.f32.mxu0 %vm416_vm3, %v12846_v49  ;;  %v12864_v30 = vld [vmem:[#allocation3 + $0xfa] sm:$0xff] }
 0x272   : > { %10169 = vmatprep.mubr.msk.f32.mxu1 %vm416_vm3, %v12609_v10  ;;  %v12870_v10 = vld [vmem:[#allocation3 + $0x10a] sm:$0xff] }
 0x274   : > { %10120 = vmatmul.mubr.msk.f32.gmra.mxu0 %vm416_vm3, %v12852_v59 }
 0x275   : > { %10170 = vmatmul.mubr.msk.f32.gmra.mxu1 %vm416_vm3, %v12611_v54  ;;  %10122 = vmatprep.mubr.msk.f32.mxu0 %vm416_vm3, %v12858_v11  ;;  %v12876_v54 = vld [vmem:[#allocation3 + $0x112] sm:$0xff] }
 0x276   : > { %10172 = vmatprep.mubr.msk.f32.mxu1 %vm416_vm3, %v12632_v13  ;;  %v12882_v13 = vld [vmem:[#allocation3 + $0x122] sm:$0xff] }
 0x278   : > { %10123 = vmatmul.mubr.msk.f32.gmra.mxu0 %vm416_vm3, %v12864_v30 }
 0x279   : > { %10173 = vmatmul.mubr.msk.f32.gmra.mxu1 %vm416_vm3, %v12634_v26  ;;  %10125 = vmatprep.mubr.msk.f32.mxu0 %vm416_vm3, %v12870_v10  ;;  %v12888_v26 = vld [vmem:[#allocation3 + $0x12a] sm:$0xff] }
 0x27a   : > { %10175 = vmatprep.mubr.msk.f32.mxu1 %vm416_vm3, %v12654_v52  ;;  %v12894_v52 = vld [vmem:[#allocation3 + $0x13a] sm:$0xff] }
 0x27c   : > { %10126 = vmatmul.mubr.msk.f32.gmra.mxu0 %vm416_vm3, %v12876_v54 }
 0x27d   : > { %10176 = vmatmul.mubr.msk.f32.gmra.mxu1 %vm416_vm3, %v12656_v46  ;;  %10128 = vmatprep.mubr.msk.f32.mxu0 %vm416_vm3, %v12882_v13  ;;  %v12900_v46 = vld [vmem:[#allocation3 + $0x142] sm:$0xff] }
 0x27e   : > { %10178 = vmatprep.mubr.msk.f32.mxu1 %vm416_vm3, %v12676_v16  ;;  %v12906_v16 = vld [vmem:[#allocation3 + $0x152] sm:$0xff] }
 0x280   : > { %10129 = vmatmul.mubr.msk.f32.gmra.mxu0 %vm416_vm3, %v12888_v26 }
 0x281   : > { %10179 = vmatmul.mubr.msk.f32.gmra.mxu1 %vm416_vm3, %v12678_v6  ;;  %10131 = vmatprep.mubr.msk.f32.mxu0 %vm416_vm3, %v12894_v52  ;;  %v12912_v6 = vld [vmem:[#allocation3 + $0x15a] sm:$0xff] }
 0x282   : > { %10181 = vmatprep.mubr.msk.f32.mxu1 %vm416_vm3, %v12695_v43  ;;  %v12918_v43 = vld [vmem:[#allocation3 + $0x16a] sm:$0xff] }
 0x284   : > { %10132 = vmatmul.mubr.msk.f32.gmra.mxu0 %vm416_vm3, %v12900_v46 }
 0x285   : > { %10182 = vmatmul.mubr.msk.f32.gmra.mxu1 %vm416_vm3, %v12697_v47  ;;  %10134 = vmatprep.mubr.msk.f32.mxu0 %vm416_vm3, %v12906_v16  ;;  %v12926_v47 = vld [vmem:[#allocation3 + $0x172] sm:$0xff] }
 0x286   : > { %10184 = vmatprep.mubr.msk.f32.mxu1 %vm416_vm3, %v12712_v45  ;;  %v12928_v45 = vld [vmem:[#allocation3 + $0x188] sm:$0xff] }
 0x288   : > { %10135 = vmatmul.mubr.msk.f32.gmra.mxu0 %vm416_vm3, %v12912_v6 }
 0x289   : > { %10185 = vmatmul.mubr.msk.f32.gmra.mxu1 %vm416_vm3, %v12714_v37  ;;  %10137 = vmatprep.mubr.msk.f32.mxu0 %vm416_vm3, %v12918_v43 }
 0x28a   : > { %10187 = vmatprep.mubr.msk.f32.mxu1 %vm416_vm3, %v12920_v1  ;;  %v12945_v1 = vld [vmem:[%s14155_s4 + $0x40] sm:$0xff] }
 0x28c   : > { %10138 = vmatmul.mubr.msk.f32.gmra.mxu0 %vm416_vm3, %v12926_v47 }
 0x28d   : > { %10188 = vmatmul.mubr.msk.f32.gmra.mxu1 %vm416_vm3, %v12928_v45  ;;  %10192 = vmatprep.mubr.msk.f32.mxu0 %vm416_vm3, %v12316_v0  ;;  %v14459_v0 = vld [vmem:[#allocation38_spill] sm:$0xff] }
 0x28e   : > { %10242 = vmatprep.mubr.msk.f32.mxu1 %vm416_vm3, %v12732_v28  ;;  %v14461_v28 = vld [vmem:[#allocation53_spill] sm:$0xff] }
 0x290   : > { %10193 = vmatmul.mubr.msk.f32.vlgmr.msra.gmra.mxu0 %vm416_vm3, %v12329_v31  ;;  %v14460_v31 = vld [vmem:[#allocation51_spill] sm:$0xff] }
 0x291   : > { %10243 = vmatmul.mubr.msk.f32.vlgmr.msra.gmra.mxu1 %vm416_vm3, %v12754_v51  ;;  %10291 = vmatpush3.msra.mxu0 %v12737_v9  ;;  %v14462_v9 = vld [vmem:[#allocation46_spill] sm:$0xff] }
 0x292   : > { %10195 = vmatprep.mubr.msk.f32.mxu0 %vm416_vm3, %v12349_v27  ;;  %10245 = vmatprep.mubr.msk.f32.mxu1 %vm416_vm3, %v12762_v8  ;;  %v14465_v51 = vld [vmem:[#allocation50_spill] sm:$0xff] }
 0x293   : > { %10341 = vmatpush3.msra.mxu1 %v12742_v60  ;;  %10390 = vmatprep.subr.mxu0 %v12945_v1 }
 0x294   : > { %10196 = vmatmul.mubr.msk.f32.gmra.mxu0 %vm416_vm3, %v12362_v36 }
 0x295   : > { %10246 = vmatmul.mubr.msk.f32.gmra.mxu1 %vm416_vm3, %v12768_v58  ;;  %10198 = vmatprep.mubr.msk.f32.mxu0 %vm416_vm3, %v12382_v34 }
 0x296   : > { %10248 = vmatprep.mubr.msk.f32.mxu1 %vm416_vm3, %v12774_v41 }
 0x298   : > { %10199 = vmatmul.mubr.msk.f32.gmra.mxu0 %vm416_vm3, %v12395_v29 }
 0x299   : > { %10249 = vmatmul.mubr.msk.f32.gmra.mxu1 %vm416_vm3, %v12780_v57  ;;  %10201 = vmatprep.mubr.msk.f32.mxu0 %vm416_vm3, %v12415_v56 }
 0x29a   : > { %10251 = vmatprep.mubr.msk.f32.mxu1 %vm416_vm3, %v12786_v32 }
 0x29c   : > { %10202 = vmatmul.mubr.msk.f32.gmra.mxu0 %vm416_vm3, %v12428_v21 }
 0x29d   : > { %10252 = vmatmul.mubr.msk.f32.gmra.mxu1 %vm416_vm3, %v12792_v2  ;;  %10204 = vmatprep.mubr.msk.f32.mxu0 %vm416_vm3, %v12448_v40 }
 0x29e   : > { %10254 = vmatprep.mubr.msk.f32.mxu1 %vm416_vm3, %v12798_v53 }
 0x2a0   : > { %10205 = vmatmul.mubr.msk.f32.gmra.mxu0 %vm416_vm3, %v12461_v24 }
 0x2a1   : > { %10255 = vmatmul.mubr.msk.f32.gmra.mxu1 %vm416_vm3, %v12804_v50  ;;  %10207 = vmatprep.mubr.msk.f32.mxu0 %vm416_vm3, %v14459_v0 }
 0x2a2   : > { %10257 = vmatprep.mubr.msk.f32.mxu1 %vm416_vm3, %v12810_v4 }
 0x2a4   : > { %10208 = vmatmul.mubr.msk.f32.gmra.mxu0 %vm416_vm3, %v14460_v31 }
 0x2a5   : > { %10258 = vmatmul.mubr.msk.f32.gmra.mxu1 %vm416_vm3, %v12816_v20  ;;  %10210 = vmatprep.mubr.msk.f32.mxu0 %vm416_vm3, %v12514_v44 }
 0x2a6   : > { %10260 = vmatprep.mubr.msk.f32.mxu1 %vm416_vm3, %v12822_v35 }
 0x2a8   : > { %10211 = vmatmul.mubr.msk.f32.gmra.mxu0 %vm416_vm3, %v14461_v28 }
 0x2a9   : > { %10261 = vmatmul.mubr.msk.f32.gmra.mxu1 %vm416_vm3, %v12828_v15  ;;  %10213 = vmatprep.mubr.msk.f32.mxu0 %vm416_vm3, %v12547_v23 }
 0x2aa   : > { %10263 = vmatprep.mubr.msk.f32.mxu1 %vm416_vm3, %v12834_v18 }
 0x2ac   : > { %10214 = vmatmul.mubr.msk.f32.gmra.mxu0 %vm416_vm3, %v14462_v9 }
 0x2ad   : > { %10264 = vmatmul.mubr.msk.f32.gmra.mxu1 %vm416_vm3, %v12840_v17  ;;  %10216 = vmatprep.mubr.msk.f32.mxu0 %vm416_vm3, %v12578_v39 }
 0x2ae   : > { %10266 = vmatprep.mubr.msk.f32.mxu1 %vm416_vm3, %v12846_v49 }
 0x2b0   : > { %10217 = vmatmul.mubr.msk.f32.gmra.mxu0 %vm416_vm3, %v12591_v12 }
 0x2b1   : > { %10267 = vmatmul.mubr.msk.f32.gmra.mxu1 %vm416_vm3, %v12852_v59  ;;  %10219 = vmatprep.mubr.msk.f32.mxu0 %vm416_vm3, %v12607_v25 }
 0x2b2   : > { %10269 = vmatprep.mubr.msk.f32.mxu1 %vm416_vm3, %v12858_v11 }
 0x2b4   : > { %10220 = vmatmul.mubr.msk.f32.gmra.mxu0 %vm416_vm3, %v12620_v19 }
 0x2b5   : > { %10270 = vmatmul.mubr.msk.f32.gmra.mxu1 %vm416_vm3, %v12864_v30  ;;  %10222 = vmatprep.mubr.msk.f32.mxu0 %vm416_vm3, %v12630_v3 }
 0x2b6   : > { %10272 = vmatprep.mubr.msk.f32.mxu1 %vm416_vm3, %v12870_v10 }
 0x2b8   : > { %10223 = vmatmul.mubr.msk.f32.gmra.mxu0 %vm416_vm3, %v12643_v48 }
 0x2b9   : > { %10273 = vmatmul.mubr.msk.f32.gmra.mxu1 %vm416_vm3, %v12876_v54  ;;  %10225 = vmatprep.mubr.msk.f32.mxu0 %vm416_vm3, %v12652_v42  ;;  %v13062_v54 = vld [vmem:[#allocation3 + $0x181] sm:$0xff] }
 0x2ba   : > { %10275 = vmatprep.mubr.msk.f32.mxu1 %vm416_vm3, %v12882_v13 }
 0x2bc   : > { %10226 = vmatmul.mubr.msk.f32.gmra.mxu0 %vm416_vm3, %v12665_v22 }
 0x2bd   : > { %10276 = vmatmul.mubr.msk.f32.gmra.mxu1 %vm416_vm3, %v12888_v26  ;;  %10228 = vmatprep.mubr.msk.f32.mxu0 %vm416_vm3, %v12674_v14  ;;  %v13064_v26 = vld [vmem:[#allocation3 + $0x182] sm:$0xff] }
 0x2be   : > { %10278 = vmatprep.mubr.msk.f32.mxu1 %vm416_vm3, %v12894_v52  ;;  %v13070_v52 = vld [vmem:[#allocation3 + $0x189] sm:$0xff] }
 0x2c0   : > { %10229 = vmatmul.mubr.msk.f32.gmra.mxu0 %vm416_vm3, %v12686_v33 }
 0x2c1   : > { %10279 = vmatmul.mubr.msk.f32.gmra.mxu1 %vm416_vm3, %v12900_v46  ;;  %10231 = vmatprep.mubr.msk.f32.mxu0 %vm416_vm3, %v12693_v63  ;;  %v13072_v46 = vld [vmem:[#allocation3 + $0x18a] sm:$0xff] }
 0x2c2   : > { %10281 = vmatprep.mubr.msk.f32.mxu1 %vm416_vm3, %v12906_v16  ;;  %v13089_v16 = vpop.f32.mrf.mxu0 }
 0x2c4   : > { %10232 = vmatmul.mubr.msk.f32.gmra.mxu0 %vm416_vm3, %v12704_v55 }
 0x2c5   : > { %10282 = vmatmul.mubr.msk.f32.gmra.mxu1 %vm416_vm3, %v12912_v6  ;;  %10234 = vmatprep.mubr.msk.f32.mxu0 %vm416_vm3, %v12710_v38  ;;  %v13091_v6 = vpop.f32.mrf.mxu1 }
 0x2c6   : > { %10284 = vmatprep.mubr.msk.f32.mxu1 %vm416_vm3, %v12918_v43  ;;  %v14463_v43 = vld [vmem:[#allocation40_spill] sm:$0xff] }
 0x2c8   : > { %10235 = vmatmul.mubr.msk.f32.gmra.mxu0 %vm416_vm3, %v12720_v5 }
 0x2c9   : > { %10285 = vmatmul.mubr.msk.f32.gmra.mxu1 %vm416_vm3, %v12926_v47  ;;  %10237 = vmatprep.mubr.msk.f32.mxu0 %vm416_vm3, %v13062_v54 }
 0x2ca   : > { %10287 = vmatprep.mubr.msk.f32.mxu1 %vm416_vm3, %v13064_v26 }
 0x2cc   : > { %10238 = vmatmul.mubr.msk.f32.gmra.mxu0 %vm416_vm3, %v13070_v52 }
 0x2cd   : > { %10288 = vmatmul.mubr.msk.f32.gmra.mxu1 %vm416_vm3, %v13072_v46  ;;  %10292 = vmatprep.mubr.msk.f32.mxu0 %vm416_vm3, %v12351_v62 }
 0x2ce   : > { %10342 = vmatprep.mubr.msk.f32.mxu1 %vm416_vm3, %v12349_v27 }
 0x2d0   : > { %10293 = vmatmul.mubr.msk.f32.vlgmr.msra.gmra.mxu0 %vm416_vm3, %v12353_v61 }
 0x2d1   : > { %10343 = vmatmul.mubr.msk.f32.vlgmr.msra.gmra.mxu1 %vm416_vm3, %v12362_v36  ;;  %10391 = vmatpush3.msra.mxu0 %v12945_v1  ;;  %v14464_v36 = vld [vmem:[#allocation42_spill] sm:$0xff] }
 0x2d2   : > { %10295 = vmatprep.mubr.msk.f32.mxu0 %vm416_vm3, %v12384_v7  ;;  %10345 = vmatprep.mubr.msk.f32.mxu1 %vm416_vm3, %v12382_v34  ;;  %v9997_v62 = vpop.f32.mrf.mxu0 }
 0x2d3   : > { %v10047_v27 = vpop.f32.mrf.mxu1 }
 0x2d4   : > { %10296 = vmatmul.mubr.msk.f32.gmra.mxu0 %vm416_vm3, %v14463_v43  ;;  %v13099_v61 = vadd.f32 %v10047_v27, %v9997_v62  ;;  %v4801_v7 = vpop.f32.mrf.mxu0  ;;  %v14466_v62 = vld [vmem:[#allocation37_spill] sm:$0xff] }
 0x2d5   : > { %10346 = vmatmul.mubr.msk.f32.gmra.mxu1 %vm416_vm3, %v12395_v29  ;;  %10298 = vmatprep.mubr.msk.f32.mxu0 %vm416_vm3, %v14464_v36  ;;  %v5122_v1 = vpop.f32.mrf.mxu1 }
 0x2d6   : > { %10348 = vmatprep.mubr.msk.f32.mxu1 %vm416_vm3, %v12415_v56  ;;  %v13105_v47 = vadd.f32 %v5122_v1, %v4801_v7  ;;  %v10000_v34 = vpop.f32.mrf.mxu0  ;;  %v14467_v1 = vld [vmem:[#allocation36_spill] sm:$0xff] }
 0x2d7   : > { %v10050_v60 = vpop.f32.mrf.mxu1 }
 0x2d8   : > { %10299 = vmatmul.mubr.msk.f32.gmra.mxu0 %vm416_vm3, %v14465_v51  ;;  %v13111_v29 = vadd.f32 %v10050_v60, %v10000_v34  ;;  %v4811_v56 = vpop.f32.mrf.mxu0  ;;  %v14468_v34 = vld [vmem:[#allocation44_spill] sm:$0xff] }
 0x2d9   : > { %10349 = vmatmul.mubr.msk.f32.gmra.mxu1 %vm416_vm3, %v12428_v21  ;;  %10301 = vmatprep.mubr.msk.f32.mxu0 %vm416_vm3, %v14466_v62  ;;  %v5132_v27 = vpop.f32.mrf.mxu1 }
 0x2da   : > { %10351 = vmatprep.mubr.msk.f32.mxu1 %vm416_vm3, %v12448_v40  ;;  %v13117_v43 = vadd.f32 %v5132_v27, %v4811_v56  ;;  %v10003_v36 = vpop.f32.mrf.mxu0  ;;  %v14469_v27 = vld [vmem:[#allocation52_spill] sm:$0xff] }
 0x2db   : > { %v10053_v7 = vpop.f32.mrf.mxu1 }
 0x2dc   : > { %10302 = vmatmul.mubr.msk.f32.gmra.mxu0 %vm416_vm3, %v14467_v1  ;;  %v13123_v21 = vadd.f32 %v10053_v7, %v10003_v36  ;;  %v4821_v40 = vpop.f32.mrf.mxu0  ;;  %v14470_v36 = vld [vmem:[#allocation39_spill] sm:$0xff] }
 0x2dd   : > { %10352 = vmatmul.mubr.msk.f32.gmra.mxu1 %vm416_vm3, %v12461_v24  ;;  %10304 = vmatprep.mubr.msk.f32.mxu0 %vm416_vm3, %v14468_v34  ;;  %v5142_v60 = vpop.f32.mrf.mxu1 }
 0x2de   : > { %10354 = vmatprep.mubr.msk.f32.mxu1 %vm416_vm3, %v14459_v0  ;;  %v13129_v51 = vadd.f32 %v5142_v60, %v4821_v40  ;;  %v10006_v62 = vpop.f32.mrf.mxu0  ;;  %v14471_v60 = vld [vmem:[#allocation41_spill] sm:$0xff] }
 0x2df   : > { %v10056_v56 = vpop.f32.mrf.mxu1 }
 0x2e0   : > { %10305 = vmatmul.mubr.msk.f32.gmra.mxu0 %vm416_vm3, %v14469_v27  ;;  %v13135_v24 = vadd.f32 %v10056_v56, %v10006_v62  ;;  %v4831_v0 = vpop.f32.mrf.mxu0  ;;  %v14472_v62 = vld [vmem:[#allocation43_spill] sm:$0xff] }
 0x2e1   : > { %10355 = vmatmul.mubr.msk.f32.gmra.mxu1 %vm416_vm3, %v14460_v31  ;;  %10307 = vmatprep.mubr.msk.f32.mxu0 %vm416_vm3, %v14470_v36  ;;  %v5152_v7 = vpop.f32.mrf.mxu1 }
 0x2e2   : > { %10357 = vmatprep.mubr.msk.f32.mxu1 %vm416_vm3, %v12514_v44  ;;  %v13141_v1 = vadd.f32 %v5152_v7, %v4831_v0  ;;  %v14473_v7 = vld [vmem:[#allocation45_spill] sm:$0xff] }
 0x2e3   : > { %v10009_v34 = vpop.f32.mrf.mxu0  ;;  %v10059_v40 = vpop.f32.mrf.mxu1 }
 0x2e4   : > { %10308 = vmatmul.mubr.msk.f32.gmra.mxu0 %vm416_vm3, %v14471_v60  ;;  %v13147_v31 = vadd.f32 %v10059_v40, %v10009_v34  ;;  %v14474_v34 = vld [vmem:[#allocation55_spill] sm:$0xff] }
 0x2e5   : > { %10358 = vmatmul.mubr.msk.f32.gmra.mxu1 %vm416_vm3, %v14461_v28  ;;  %10310 = vmatprep.mubr.msk.f32.mxu0 %vm416_vm3, %v14472_v62  ;;  %v4841_v44 = vpop.f32.mrf.mxu0  ;;  %v5162_v56 = vpop.f32.mrf.mxu1 }
 0x2e6   : > { %10360 = vmatprep.mubr.msk.f32.mxu1 %vm416_vm3, %v12547_v23  ;;  %v13153_v27 = vadd.f32 %v5162_v56, %v4841_v44  ;;  %v14475_v56 = vld [vmem:[#allocation54_spill] sm:$0xff] }
 0x2e7   : > { %v10012_v36 = vpop.f32.mrf.mxu0  ;;  %v10062_v0 = vpop.f32.mrf.mxu1 }
 0x2e8   : > { %10311 = vmatmul.mubr.msk.f32.gmra.mxu0 %vm416_vm3, %v14473_v7  ;;  %v13159_v28 = vadd.f32 %v10062_v0, %v10012_v36  ;;  %v14476_v36 = vld [vmem:[#allocation56_spill] sm:$0xff] }
 0x2e9   : > { %10361 = vmatmul.mubr.msk.f32.gmra.mxu1 %vm416_vm3, %v14462_v9  ;;  %10313 = vmatprep.mubr.msk.f32.mxu0 %vm416_vm3, %v14474_v34  ;;  %v4851_v23 = vpop.f32.mrf.mxu0  ;;  %v5172_v40 = vpop.f32.mrf.mxu1 }
 0x2ea   : > { %10363 = vmatprep.mubr.msk.f32.mxu1 %vm416_vm3, %v12578_v39  ;;  %v13165_v60 = vadd.f32 %v5172_v40, %v4851_v23  ;;  %v14477_v40 = vld [vmem:[#allocation105_spill] sm:$0xff] }
 0x2eb   : > { %v10015_v62 = vpop.f32.mrf.mxu0 }
 0x2ec   : > { %v10065_v44 = vpop.f32.mrf.mxu1  ;;  %10314 = vmatmul.mubr.msk.f32.gmra.mxu0 %vm416_vm3, %v14475_v56 }
 0x2ed   : > { %10364 = vmatmul.mubr.msk.f32.gmra.mxu1 %vm416_vm3, %v12591_v12  ;;  %v13171_v9 = vadd.f32 %v10065_v44, %v10015_v62  ;;  %10316 = vmatprep.mubr.msk.f32.mxu0 %vm416_vm3, %v14476_v36  ;;  %v4861_v39 = vpop.f32.mrf.mxu0  ;;  %v14478_v62 = vld [vmem:[#allocation104_spill] sm:$0xff] }
 0x2ee   : > { %10366 = vmatprep.mubr.msk.f32.mxu1 %vm416_vm3, %v12607_v25  ;;  %v5182_v0 = vpop.f32.mrf.mxu1 }
 0x2ef   : > { %v13177_v7 = vadd.f32 %v5182_v0, %v4861_v39  ;;  %v14479_v0 = vld [vmem:[#allocation47_spill] sm:$0xff] }
 0x2f0   : > { %v10018_v34 = vpop.f32.mrf.mxu0  ;;  %10317 = vmatmul.mubr.msk.f32.gmra.mxu0 %vm416_vm3, %v14477_v40 }
 0x2f1   : > { %v10068_v23 = vpop.f32.mrf.mxu1  ;;  %10367 = vmatmul.mubr.msk.f32.gmra.mxu1 %vm416_vm3, %v12620_v19  ;;  %10319 = vmatprep.mubr.msk.f32.mxu0 %vm416_vm3, %v14478_v62 }
 0x2f2   : > { %v13183_v12 = vadd.f32 %v10068_v23, %v10018_v34  ;;  %10369 = vmatprep.mubr.msk.f32.mxu1 %vm416_vm3, %v12630_v3  ;;  %v4871_v25 = vpop.f32.mrf.mxu0  ;;  %v14480_v34 = vld [vmem:[#allocation58_spill] sm:$0xff] }
 0x2f3   : > { %v5192_v44 = vpop.f32.mrf.mxu1 }
 0x2f4   : > { %v13189_v56 = vadd.f32 %v5192_v44, %v4871_v25  ;;  %v10021_v36 = vpop.f32.mrf.mxu0  ;;  %10320 = vmatmul.mubr.msk.f32.gmra.mxu0 %vm416_vm3, %v14479_v0  ;;  %v14481_v44 = vld [vmem:[#allocation57_spill] sm:$0xff] }
 0x2f5   : > { %v10071_v39 = vpop.f32.mrf.mxu1  ;;  %10370 = vmatmul.mubr.msk.f32.gmra.mxu1 %vm416_vm3, %v12643_v48  ;;  %10322 = vmatprep.mubr.msk.f32.mxu0 %vm416_vm3, %v14480_v34 }
 0x2f6   : > { %v13195_v19 = vadd.f32 %v10071_v39, %v10021_v36  ;;  %10372 = vmatprep.mubr.msk.f32.mxu1 %vm416_vm3, %v12652_v42  ;;  %v4881_v3 = vpop.f32.mrf.mxu0  ;;  %v14482_v36 = vld [vmem:[#allocation106_spill] sm:$0xff] }
 0x2f7   : > { %v5202_v23 = vpop.f32.mrf.mxu1 }
 0x2f8   : > { %v13201_v40 = vadd.f32 %v5202_v23, %v4881_v3  ;;  %v10024_v62 = vpop.f32.mrf.mxu0  ;;  %10323 = vmatmul.mubr.msk.f32.gmra.mxu0 %vm416_vm3, %v14481_v44  ;;  %v14483_v23 = vld [vmem:[#allocation59_spill] sm:$0xff] }
 0x2f9   : > { %v10074_v25 = vpop.f32.mrf.mxu1  ;;  %10373 = vmatmul.mubr.msk.f32.gmra.mxu1 %vm416_vm3, %v12665_v22  ;;  %10325 = vmatprep.mubr.msk.f32.mxu0 %vm416_vm3, %v14482_v36 }
 0x2fa   : > { %v13207_v48 = vadd.f32 %v10074_v25, %v10024_v62  ;;  %10375 = vmatprep.mubr.msk.f32.mxu1 %vm416_vm3, %v12674_v14  ;;  %v4891_v42 = vpop.f32.mrf.mxu0  ;;  %v14484_v62 = vld [vmem:[#allocation62_spill] sm:$0xff] }
 0x2fb   : > { %v5212_v39 = vpop.f32.mrf.mxu1 }
 0x2fc   : > { %v13213_v0 = vadd.f32 %v5212_v39, %v4891_v42  ;;  %v10027_v34 = vpop.f32.mrf.mxu0  ;;  %10326 = vmatmul.mubr.msk.f32.gmra.mxu0 %vm416_vm3, %v14483_v23  ;;  %v14485_v39 = vld [vmem:[#allocation110_spill] sm:$0xff] }
 0x2fd   : > { %v10077_v3 = vpop.f32.mrf.mxu1  ;;  %10376 = vmatmul.mubr.msk.f32.gmra.mxu1 %vm416_vm3, %v12686_v33  ;;  %10328 = vmatprep.mubr.msk.f32.mxu0 %vm416_vm3, %v14484_v62 }
 0x2fe   : > { %v13219_v22 = vadd.f32 %v10077_v3, %v10027_v34  ;;  %10378 = vmatprep.mubr.msk.f32.mxu1 %vm416_vm3, %v12693_v63  ;;  %v4901_v14 = vpop.f32.mrf.mxu0  ;;  %v14486_v34 = vld [vmem:[#allocation107_spill] sm:$0xff] }
 0x2ff   : > { %v5222_v25 = vpop.f32.mrf.mxu1 }
 0x300   : > { %v13225_v44 = vadd.f32 %v5222_v25, %v4901_v14  ;;  %v10030_v36 = vpop.f32.mrf.mxu0  ;;  %10329 = vmatmul.mubr.msk.f32.gmra.mxu0 %vm416_vm3, %v14485_v39  ;;  %v14487_v25 = vld [vmem:[#allocation61_spill] sm:$0xff] }
 0x301   : > { %v10080_v42 = vpop.f32.mrf.mxu1  ;;  %10379 = vmatmul.mubr.msk.f32.gmra.mxu1 %vm416_vm3, %v12704_v55  ;;  %10331 = vmatprep.mubr.msk.f32.mxu0 %vm416_vm3, %v14486_v34  ;;  %v7237_v39 = vld [vmem:[#allocation3 + $0x199] sm:$0xff] }
 0x302   : > { %v13231_v33 = vadd.f32 %v10080_v42, %v10030_v36  ;;  %10381 = vmatprep.mubr.msk.f32.mxu1 %vm416_vm3, %v12710_v38  ;;  %v4911_v63 = vpop.f32.mrf.mxu0  ;;  %v6850_v42 = vld [vmem:[#allocation3 + $0x198] sm:$0xff] }
 0x303   : > { %v5232_v3 = vpop.f32.mrf.mxu1 }
 0x304   : > { %v13237_v23 = vadd.f32 %v5232_v3, %v4911_v63  ;;  %v10033_v62 = vpop.f32.mrf.mxu0  ;;  %10332 = vmatmul.mubr.msk.f32.gmra.mxu0 %vm416_vm3, %v12714_v37 }
 0x305   : > { %v10083_v14 = vpop.f32.mrf.mxu1  ;;  %10382 = vmatmul.mubr.msk.f32.gmra.mxu1 %vm416_vm3, %v12720_v5  ;;  %10334 = vmatprep.mubr.msk.f32.mxu0 %vm416_vm3, %v14487_v25  ;;  %v6851_v5 = vld [vmem:[#allocation3 + $0x1a0] sm:$0xff] }
 0x306   : > { %v13243_v55 = vadd.f32 %v10083_v14, %v10033_v62  ;;  %10384 = vmatprep.mubr.msk.f32.mxu1 %vm416_vm3, %v13062_v54  ;;  %v4921_v38 = vpop.f32.mrf.mxu0  ;;  %v7238_v54 = vld [vmem:[#allocation3 + $0x1a1] sm:$0xff] }
 0x307   : > { %v5242_v36 = vpop.f32.mrf.mxu1 }
 0x308   : > { %v13249_v34 = vadd.f32 %v5242_v36, %v4921_v38  ;;  %v10036_v63 = vpop.f32.mrf.mxu0  ;;  %10335 = vmatmul.mubr.msk.f32.gmra.mxu0 %vm416_vm3, %v12928_v45 }
 0x309   : > { %v10086_v3 = vpop.f32.mrf.mxu1  ;;  %10385 = vmatmul.mubr.msk.f32.gmra.mxu1 %vm416_vm3, %v13070_v52  ;;  %10337 = vmatprep.mubr.msk.f32.mxu0 %vm416_vm3, %v6850_v42 }
 0x30a   : > { %v13255_v37 = vadd.f32 %v10086_v3, %v10036_v63  ;;  %10387 = vmatprep.mubr.msk.f32.mxu1 %vm416_vm3, %v7237_v39  ;;  %v4931_v62 = vpop.f32.mrf.mxu0 }
 0x30b   : > { %v5252_v14 = vpop.f32.mrf.mxu1 }
 0x30c   : > { %v13259_v25 = vadd.f32 %v5252_v14, %v4931_v62  ;;  %v10039_v38 = vpop.f32.mrf.mxu0  ;;  %10338 = vmatmul.mubr.msk.f32.gmra.mxu0 %vm416_vm3, %v6851_v5  ;;  %v5113_v62 = vadd.f32 %v13091_v6, %v13089_v16  ;;  %v14489_v5 = vld [vmem:[#allocation48_spill] sm:$0xff] }
 0x30d   : > { %v10089_v36 = vpop.f32.mrf.mxu1  ;;  %10388 = vmatmul.mubr.msk.f32.gmra.mxu1 %vm416_vm3, %v7238_v54  ;;  %10392 = vmatprep.mubr.msk.f32.mxu0 %vm416_vm3, %v12762_v8 }
 0x30e   : > { %v13263_v45 = vadd.f32 %v10089_v36, %v10039_v38  ;;  %v4941_v52 = vpop.f32.mrf.mxu0 }
 0x30f   : > { %v5262_v42 = vpop.f32.mrf.mxu1 }
 0x310   : > { %v13267_v63 = vadd.f32 %v5262_v42, %v4941_v52  ;;  %v10094_v39 = vpop.f32.mrf.mxu0  ;;  %10393 = vmatmul.mubr.msk.f32.vlgmr.msra.gmra.mxu0 %vm416_vm3, %v12768_v58 }
 0x311   : > { %v10144_v3 = vpop.f32.mrf.mxu1  ;;  %v5627_v14 = vadd.f32 %v10094_v39, %v14489_v5  ;;  %10395 = vmatprep.mubr.msk.f32.mxu0 %vm416_vm3, %v12774_v41 }
 0x312   : > { %14488 = vst [vmem:[#allocation60_spill] sm:$0xff] %v13267_v63  ;;  %v5467_v54 = vpop.f32.mrf.mxu0 }
 0x313   : > { %v5854_v38 = vpop.f32.mrf.mxu1  ;;  %v13276_v8 = vadd.f32 %v10144_v3, %v5627_v14  ;;  %v5626_v36 = vadd.f32 %v5467_v54, %v5113_v62 }
 0x314   : > { %v10097_v52 = vpop.f32.mrf.mxu0  ;;  %10396 = vmatmul.mubr.msk.f32.gmra.mxu0 %vm416_vm3, %v12780_v57 }
 0x315   : > { %v10147_v42 = vpop.f32.mrf.mxu1  ;;  %v13280_v63 = vadd.f32 %v5854_v38, %v5626_v36  ;;  %v5629_v58 = vadd.f32 %v10097_v52, %v13099_v61  ;;  %10398 = vmatprep.mubr.msk.f32.mxu0 %vm416_vm3, %v12786_v32 }
 0x316   : > { %v5477_v16 = vpop.f32.mrf.mxu0 }
 0x317   : > { %v5864_v6 = vpop.f32.mrf.mxu1  ;;  %v13285_v41 = vadd.f32 %v10147_v42, %v5629_v58  ;;  %v5628_v39 = vadd.f32 %v5477_v16, %v13105_v47 }
 0x318   : > { %v10100_v3 = vpop.f32.mrf.mxu0  ;;  %10399 = vmatmul.mubr.msk.f32.gmra.mxu0 %vm416_vm3, %v12792_v2 }
 0x319   : > { %v10150_v62 = vpop.f32.mrf.mxu1  ;;  %v13290_v5 = vadd.f32 %v5864_v6, %v5628_v39  ;;  %v5631_v57 = vadd.f32 %v10100_v3, %v13111_v29  ;;  %10401 = vmatprep.mubr.msk.f32.mxu0 %vm416_vm3, %v12798_v53 }
 0x31a   : > { %v5487_v61 = vpop.f32.mrf.mxu0 }
 0x31b   : > { %v5874_v32 = vpop.f32.mrf.mxu1  ;;  %v13295_v14 = vadd.f32 %v10150_v62, %v5631_v57  ;;  %v5630_v54 = vadd.f32 %v5487_v61, %v13117_v43 }
 0x31c   : > { %v10103_v38 = vpop.f32.mrf.mxu0  ;;  %10402 = vmatmul.mubr.msk.f32.gmra.mxu0 %vm416_vm3, %v12804_v50 }
 0x31d   : > { %v10153_v47 = vpop.f32.mrf.mxu1  ;;  %v13300_v36 = vadd.f32 %v5874_v32, %v5630_v54  ;;  %v5633_v2 = vadd.f32 %v10103_v38, %v13123_v21  ;;  %10404 = vmatprep.mubr.msk.f32.mxu0 %vm416_vm3, %v12810_v4 }
 0x31e   : > { %v5497_v29 = vpop.f32.mrf.mxu0 }
 0x31f   : > { %v5884_v53 = vpop.f32.mrf.mxu1  ;;  %v13305_v52 = vadd.f32 %v10153_v47, %v5633_v2  ;;  %v5632_v42 = vadd.f32 %v5497_v29, %v13129_v51 }
 0x320   : > { %v10106_v58 = vpop.f32.mrf.mxu0  ;;  %10405 = vmatmul.mubr.msk.f32.gmra.mxu0 %vm416_vm3, %v12816_v20 }
 0x321   : > { %v10156_v43 = vpop.f32.mrf.mxu1  ;;  %v13310_v16 = vadd.f32 %v5884_v53, %v5632_v42  ;;  %v5635_v50 = vadd.f32 %v10106_v58, %v13135_v24  ;;  %10407 = vmatprep.mubr.msk.f32.mxu0 %vm416_vm3, %v12822_v35 }
 0x322   : > { %v5507_v21 = vpop.f32.mrf.mxu0 }
 0x323   : > { %v5894_v4 = vpop.f32.mrf.mxu1  ;;  %v13315_v6 = vadd.f32 %v10156_v43, %v5635_v50  ;;  %v5634_v39 = vadd.f32 %v5507_v21, %v13141_v1 }
 0x324   : > { %v10109_v3 = vpop.f32.mrf.mxu0  ;;  %10408 = vmatmul.mubr.msk.f32.gmra.mxu0 %vm416_vm3, %v12828_v15 }
 0x325   : > { %v10159_v51 = vpop.f32.mrf.mxu1  ;;  %v13320_v62 = vadd.f32 %v5894_v4, %v5634_v39  ;;  %v5637_v20 = vadd.f32 %v10109_v3, %v13147_v31  ;;  %10410 = vmatprep.mubr.msk.f32.mxu0 %vm416_vm3, %v12834_v18  ;;  %v7613_v4 = vld [vmem:[#allocation3 + $0x112] sm:$0xff] }
 0x326   : > { %v5517_v24 = vpop.f32.mrf.mxu0 }
 0x327   : > { %v5904_v35 = vpop.f32.mrf.mxu1  ;;  %v13325_v57 = vadd.f32 %v10159_v51, %v5637_v20  ;;  %v5636_v61 = vadd.f32 %v5517_v24, %v13153_v27  ;;  %v7615_v24 = vld [vmem:[#allocation3 + $0x12a] sm:$0xff] }
 0x328   : > { %v10112_v32 = vpop.f32.mrf.mxu0  ;;  %10411 = vmatmul.mubr.msk.f32.gmra.mxu0 %vm416_vm3, %v12840_v17 }
 0x329   : > { %v10162_v1 = vpop.f32.mrf.mxu1  ;;  %v13330_v54 = vadd.f32 %v5904_v35, %v5636_v61  ;;  %v5639_v15 = vadd.f32 %v10112_v32, %v13159_v28  ;;  %10413 = vmatprep.mubr.msk.f32.mxu0 %vm416_vm3, %v12846_v49  ;;  %v7616_v61 = vld [vmem:[#allocation3 + $0x13a] sm:$0xff] }
 0x32a   : > { %v5527_v31 = vpop.f32.mrf.mxu0 }
 0x32b   : > { %v5914_v18 = vpop.f32.mrf.mxu1  ;;  %v13335_v38 = vadd.f32 %v10162_v1, %v5639_v15  ;;  %v5638_v47 = vadd.f32 %v5527_v31, %v13165_v60 }
 0x32c   : > { %v10115_v2 = vpop.f32.mrf.mxu0  ;;  %10414 = vmatmul.mubr.msk.f32.gmra.mxu0 %vm416_vm3, %v12852_v59 }
 0x32d   : > { %v10165_v27 = vpop.f32.mrf.mxu1  ;;  %v13340_v29 = vadd.f32 %v5914_v18, %v5638_v47  ;;  %v5641_v17 = vadd.f32 %v10115_v2, %v13171_v9  ;;  %10416 = vmatprep.mubr.msk.f32.mxu0 %vm416_vm3, %v12858_v11  ;;  %v7617_v18 = vld [vmem:[#allocation3 + $0x142] sm:$0xff]  ;;  %v7618_v2 = vld [vmem:[#allocation3 + $0x152] sm:$0xff] }
 0x32e   : > { %v5537_v28 = vpop.f32.mrf.mxu0 }
 0x32f   : > { %v5924_v49 = vpop.f32.mrf.mxu1  ;;  %v13345_v53 = vadd.f32 %v10165_v27, %v5641_v17  ;;  %v5640_v42 = vadd.f32 %v5537_v28, %v13177_v7 }
 0x330   : > { %v10118_v58 = vpop.f32.mrf.mxu0  ;;  %10417 = vmatmul.mubr.msk.f32.gmra.mxu0 %vm416_vm3, %v12864_v30 }
 0x331   : > { %v10168_v60 = vpop.f32.mrf.mxu1  ;;  %v13350_v43 = vadd.f32 %v5924_v49, %v5640_v42  ;;  %v5643_v59 = vadd.f32 %v10118_v58, %v13183_v12  ;;  %10419 = vmatprep.mubr.msk.f32.mxu0 %vm416_vm3, %v12870_v10  ;;  %v7619_v58 = vld [vmem:[#allocation3 + $0x15a] sm:$0xff] }
 0x332   : > { %v5547_v9 = vpop.f32.mrf.mxu0 }
 0x333   : > { %v5934_v11 = vpop.f32.mrf.mxu1  ;;  %v13355_v50 = vadd.f32 %v10168_v60, %v5643_v59  ;;  %v5642_v21 = vadd.f32 %v5547_v9, %v13189_v56  ;;  %v7620_v59 = vld [vmem:[#allocation3 + $0x16a] sm:$0xff] }
 0x334   : > { %v10121_v7 = vpop.f32.mrf.mxu0  ;;  %10420 = vmatmul.mubr.msk.f32.gmra.mxu0 %vm416_vm3, %v7613_v4 }
 0x335   : > { %v10171_v39 = vpop.f32.mrf.mxu1  ;;  %v13359_v3 = vadd.f32 %v5934_v11, %v5642_v21  ;;  %v5645_v30 = vadd.f32 %v10121_v7, %v13195_v19  ;;  %10422 = vmatprep.mubr.msk.f32.mxu0 %vm416_vm3, %v12882_v13 }
 0x336   : > { %v5557_v12 = vpop.f32.mrf.mxu0 }
 0x337   : > { %v5944_v10 = vpop.f32.mrf.mxu1  ;;  %v13364_v51 = vadd.f32 %v10171_v39, %v5645_v30  ;;  %v5644_v20 = vadd.f32 %v5557_v12, %v13201_v40  ;;  %v7621_v39 = vld [vmem:[#allocation3 + $0x172] sm:$0xff] }
 0x338   : > { %v10124_v56 = vpop.f32.mrf.mxu0  ;;  %10423 = vmatmul.mubr.msk.f32.gmra.mxu0 %vm416_vm3, %v7615_v24  ;;  %v7624_v24 = vld [vmem:[#allocation3 + $0x19a] sm:$0xff] }
 0x339   : > { %v10174_v35 = vpop.f32.mrf.mxu1  ;;  %v13368_v32 = vadd.f32 %v5944_v10, %v5644_v20  ;;  %v5647_v1 = vadd.f32 %v10124_v56, %v13207_v48  ;;  %10425 = vmatprep.mubr.msk.f32.mxu0 %vm416_vm3, %v7616_v61 }
 0x33a   : > { %v5567_v19 = vpop.f32.mrf.mxu0 }
 0x33b   : > { %v5954_v13 = vpop.f32.mrf.mxu1  ;;  %v13372_v15 = vadd.f32 %v10174_v35, %v5647_v1  ;;  %v5646_v31 = vadd.f32 %v5567_v19, %v13213_v0 }
 0x33c   : > { %v10127_v40 = vpop.f32.mrf.mxu0  ;;  %10426 = vmatmul.mubr.msk.f32.gmra.mxu0 %vm416_vm3, %v7617_v18 }
 0x33d   : > { %v10177_v47 = vpop.f32.mrf.mxu1  ;;  %v13376_v27 = vadd.f32 %v5954_v13, %v5646_v31  ;;  %v5649_v17 = vadd.f32 %v10127_v40, %v13219_v22  ;;  %10428 = vmatprep.mubr.msk.f32.mxu0 %vm416_vm3, %v7618_v2 }
 0x33e   : > { %v5577_v48 = vpop.f32.mrf.mxu0 }
 0x33f   : > { %v5964_v28 = vpop.f32.mrf.mxu1  ;;  %v13380_v49 = vadd.f32 %v10177_v47, %v5649_v17  ;;  %v5648_v42 = vadd.f32 %v5577_v48, %v13225_v44  ;;  %v14490_v48 = vld [vmem:[#allocation60_spill] sm:$0xff] }
 0x340   : > { %v10130_v0 = vpop.f32.mrf.mxu0  ;;  %10429 = vmatmul.mubr.msk.f32.gmra.mxu0 %vm416_vm3, %v7619_v58 }
 0x341   : > { %v10180_v60 = vpop.f32.mrf.mxu1  ;;  %v13384_v9 = vadd.f32 %v5964_v28, %v5648_v42  ;;  %v5651_v11 = vadd.f32 %v10130_v0, %v13231_v33  ;;  %10431 = vmatprep.mubr.msk.f32.mxu0 %vm416_vm3, %v7620_v59 }
 0x342   : > { %v5587_v22 = vpop.f32.mrf.mxu0 }
 0x343   : > { %v5974_v21 = vpop.f32.mrf.mxu1  ;;  %v13388_v4 = vadd.f32 %v10180_v60, %v5651_v11  ;;  %v5650_v7 = vadd.f32 %v5587_v22, %v13237_v23 }
 0x344   : > { %v10133_v44 = vpop.f32.mrf.mxu0  ;;  %10432 = vmatmul.mubr.msk.f32.gmra.mxu0 %vm416_vm3, %v7621_v39 }
 0x345   : > { %v10183_v30 = vpop.f32.mrf.mxu1  ;;  %v13392_v12 = vadd.f32 %v5974_v21, %v5650_v7  ;;  %v5653_v10 = vadd.f32 %v10133_v44, %v13243_v55  ;;  %10434 = vmatprep.mubr.msk.f32.mxu0 %vm416_vm3, %v13064_v26  ;;  %v7625_v55 = vld [vmem:[#allocation3 + $0x1a2] sm:$0xff] }
 0x346   : > { %v5597_v33 = vpop.f32.mrf.mxu0 }
 0x347   : > { %v5984_v20 = vpop.f32.mrf.mxu1  ;;  %v13397_v56 = vadd.f32 %v10183_v30, %v5653_v10  ;;  %v5652_v35 = vadd.f32 %v5597_v33, %v13249_v34 }
 0x348   : > { %v10136_v23 = vpop.f32.mrf.mxu0  ;;  %10435 = vmatmul.mubr.msk.f32.gmra.mxu0 %vm416_vm3, %v13072_v46 }
 0x349   : > { %v10186_v61 = vpop.f32.mrf.mxu1  ;;  %v13402_v1 = vadd.f32 %v5984_v20, %v5652_v35  ;;  %v5655_v19 = vadd.f32 %v10136_v23, %v13255_v37  ;;  %10437 = vmatprep.mubr.msk.f32.mxu0 %vm416_vm3, %v7624_v24 }
 0x34a   : > { %v5607_v26 = vpop.f32.mrf.mxu0 }
 0x34b   : > { %v5994_v13 = vpop.f32.mrf.mxu1  ;;  %v13406_v31 = vadd.f32 %v10186_v61, %v5655_v19  ;;  %v5654_v18 = vadd.f32 %v5607_v26, %v13259_v25 }
 0x34c   : > { %v10139_v40 = vpop.f32.mrf.mxu0  ;;  %10438 = vmatmul.mubr.msk.f32.gmra.mxu0 %vm416_vm3, %v7625_v55 }
 0x34d   : > { %v10189_v34 = vpop.f32.mrf.mxu1  ;;  %v13410_v47 = vadd.f32 %v5994_v13, %v5654_v18  ;;  %v5657_v46 = vadd.f32 %v10139_v40, %v13263_v45 }
 0x34e   : > { %v5617_v2 = vpop.f32.mrf.mxu0 }
 0x34f   : > { %v6004_v17 = vpop.f32.mrf.mxu1  ;;  %v13413_v37 = vadd.f32 %v10189_v34, %v5657_v46  ;;  %v5656_v28 = vadd.f32 %v5617_v2, %v14490_v48 }
 0x350   : > { %v10194_v42 = vpop.f32.mrf.mxu0 }
 0x351   : > { %v13416_v58 = vpop.f32.mrf.mxu1  ;;  %v13418_v0 = vadd.f32 %v6004_v17, %v5656_v28  ;;  %v13421_v25 = vadd.f32 %v10194_v42, %v13276_v8 }
 0x352   : > { %v6241_v60 = vpop.f32.mrf.mxu0 }
 0x353   : > { %v13423_v59 = vpop.f32.mrf.mxu1  ;;  %v13426_v11 = vadd.f32 %v6241_v60, %v13280_v63 }
 0x354   : > { %v10197_v45 = vpop.f32.mrf.mxu0 }
 0x355   : > { %v13428_v22 = vpop.f32.mrf.mxu1  ;;  %v13431_v21 = vadd.f32 %v10197_v45, %v13285_v41 }
 0x356   : > { %v6251_v7 = vpop.f32.mrf.mxu0 }
 0x357   : > { %v13433_v39 = vpop.f32.mrf.mxu1  ;;  %v13436_v44 = vadd.f32 %v6251_v7, %v13290_v5 }
 0x358   : > { %v10200_v8 = vpop.f32.mrf.mxu0 }
 0x359   : > { %v13438_v30 = vpop.f32.mrf.mxu1  ;;  %v13441_v10 = vadd.f32 %v10200_v8, %v13295_v14 }
 0x35a   : > { %v6261_v63 = vpop.f32.mrf.mxu0 }
 0x35b   : > { %v13443_v33 = vpop.f32.mrf.mxu1  ;;  %v13446_v20 = vadd.f32 %v6261_v63, %v13300_v36 }
 0x35c   : > { %v10203_v41 = vpop.f32.mrf.mxu0 }
 0x35d   : > { %v13448_v24 = vpop.f32.mrf.mxu1  ;;  %v13451_v35 = vadd.f32 %v10203_v41, %v13305_v52 }
 0x35e   : > { %v6271_v5 = vpop.f32.mrf.mxu0 }
 0x35f   : > { %v13453_v23 = vpop.f32.mrf.mxu1  ;;  %v13456_v61 = vadd.f32 %v6271_v5, %v13310_v16 }
 0x360   : > { %v10206_v14 = vpop.f32.mrf.mxu0 }
 0x361   : > { %v13458_v19 = vpop.f32.mrf.mxu1  ;;  %v13461_v55 = vadd.f32 %v10206_v14, %v13315_v6 }
 0x362   : > { %v6281_v36 = vpop.f32.mrf.mxu0 }
 0x363   : > { %v13463_v26 = vpop.f32.mrf.mxu1  ;;  %v13466_v13 = vadd.f32 %v6281_v36, %v13320_v62 }
 0x364   : > { %v10209_v52 = vpop.f32.mrf.mxu0 }
 0x365   : > { %v13468_v18 = vpop.f32.mrf.mxu1  ;;  %v13471_v40 = vadd.f32 %v10209_v52, %v13325_v57 }
 0x366   : > { %v6291_v16 = vpop.f32.mrf.mxu0 }
 0x367   : > { %v13473_v34 = vpop.f32.mrf.mxu1  ;;  %v13476_v46 = vadd.f32 %v6291_v16, %v13330_v54 }
 0x368   : > { %v10212_v6 = vpop.f32.mrf.mxu0 }
 0x369   : > { %v13478_v2 = vpop.f32.mrf.mxu1  ;;  %v13481_v17 = vadd.f32 %v10212_v6, %v13335_v38 }
 0x36a   : > { %14491 = vst [vmem:[#allocation113_spill] sm:$0xff] %v13478_v2  ;;  %v6301_v62 = vpop.f32.mrf.mxu0  ;;  %v14563_v2 = vld [vmem:[#allocation15_spill] sm:$0xff] }
 0x36b   : > { %14492 = vst [vmem:[#allocation108_spill] sm:$0xff] %v13481_v17  ;;  %v13483_v48 = vpop.f32.mrf.mxu1  ;;  %v13486_v28 = vadd.f32 %v6301_v62, %v13340_v29 }
 0x36c   : > { %14493 = vst [vmem:[#allocation63_spill] sm:$0xff] %v13483_v48  ;;  %v10215_v57 = vpop.f32.mrf.mxu0  ;;  %v14562_v48 = vld [vmem:[#allocation14_spill] sm:$0xff] }
 0x36d   : > { %14494 = vst [vmem:[#allocation66_spill] sm:$0xff] %v13486_v28  ;;  %v13488_v42 = vpop.f32.mrf.mxu1  ;;  %v13491_v60 = vadd.f32 %v10215_v57, %v13345_v53 }
 0x36e   : > { %14495 = vst [vmem:[#allocation116_spill] sm:$0xff] %v13488_v42  ;;  %v6311_v54 = vpop.f32.mrf.mxu0  ;;  %v14554_v42 = vld [vmem:[#allocation9_spill] sm:$0xff] }
 0x36f   : > { %14496 = vst [vmem:[#allocation109_spill] sm:$0xff] %v13491_v60  ;;  %v13493_v45 = vpop.f32.mrf.mxu1  ;;  %v13496_v7 = vadd.f32 %v6311_v54, %v13350_v43 }
 0x370   : > { %14497 = vst [vmem:[#allocation49_spill] sm:$0xff] %v13493_v45  ;;  %v10218_v38 = vpop.f32.mrf.mxu0 }
 0x371   : > { %14498 = vst [vmem:[#allocation65_spill] sm:$0xff] %v13496_v7  ;;  %v13498_v8 = vpop.f32.mrf.mxu1  ;;  %v13501_v63 = vadd.f32 %v10218_v38, %v13355_v50 }
 0x372   : > { %14499 = vst [vmem:[#allocation64_spill] sm:$0xff] %v13498_v8  ;;  %v6321_v29 = vpop.f32.mrf.mxu0 }
 0x373   : > { %14500 = vst [vmem:[#allocation119_spill] sm:$0xff] %v13501_v63  ;;  %v13503_v41 = vpop.f32.mrf.mxu1  ;;  %v13506_v5 = vadd.f32 %v6321_v29, %v13359_v3 }
 0x374   : > { %14501 = vst [vmem:[#allocation111_spill] sm:$0xff] %v13503_v41  ;;  %v10221_v53 = vpop.f32.mrf.mxu0 }
 0x375   : > { %14502 = vst [vmem:[#allocation67_spill] sm:$0xff] %v13506_v5  ;;  %v13508_v14 = vpop.f32.mrf.mxu1  ;;  %v13511_v36 = vadd.f32 %v10221_v53, %v13364_v51 }
 0x376   : > { %14503 = vst [vmem:[#allocation70_spill] sm:$0xff] %v13508_v14  ;;  %v6331_v43 = vpop.f32.mrf.mxu0 }
 0x377   : > { %14504 = vst [vmem:[#allocation122_spill] sm:$0xff] %v13511_v36  ;;  %v13513_v52 = vpop.f32.mrf.mxu1  ;;  %v13516_v16 = vadd.f32 %v6331_v43, %v13368_v32 }
 0x378   : > { %14505 = vst [vmem:[#allocation112_spill] sm:$0xff] %v13513_v52  ;;  %v10224_v50 = vpop.f32.mrf.mxu0 }
 0x379   : > { %14506 = vst [vmem:[#allocation69_spill] sm:$0xff] %v13516_v16  ;;  %v13518_v6 = vpop.f32.mrf.mxu1  ;;  %v13521_v62 = vadd.f32 %v10224_v50, %v13372_v15 }
 0x37a   : > { %14507 = vst [vmem:[#allocation68_spill] sm:$0xff] %v13518_v6  ;;  %v6341_v3 = vpop.f32.mrf.mxu0 }
 0x37b   : > { %14508 = vst [vmem:[#allocation114_spill] sm:$0xff] %v13521_v62  ;;  %v13523_v57 = vpop.f32.mrf.mxu1  ;;  %v13526_v54 = vadd.f32 %v6341_v3, %v13376_v27 }
 0x37c   : > { %14509 = vst [vmem:[#allocation71_spill] sm:$0xff] %v13523_v57  ;;  %v10227_v51 = vpop.f32.mrf.mxu0 }
 0x37d   : > { %14510 = vst [vmem:[#allocation74_spill] sm:$0xff] %v13526_v54  ;;  %v13528_v38 = vpop.f32.mrf.mxu1  ;;  %v13531_v29 = vadd.f32 %v10227_v51, %v13380_v49 }
 0x37e   : > { %14511 = vst [vmem:[#allocation127_spill] sm:$0xff] %v13528_v38  ;;  %v6351_v32 = vpop.f32.mrf.mxu0 }
 0x37f   : > { %14512 = vst [vmem:[#allocation115_spill] sm:$0xff] %v13531_v29  ;;  %v13533_v53 = vpop.f32.mrf.mxu1  ;;  %v13536_v43 = vadd.f32 %v6351_v32, %v13384_v9 }
 0x380   : > { %14513 = vst [vmem:[#allocation73_spill] sm:$0xff] %v13533_v53  ;;  %v10230_v15 = vpop.f32.mrf.mxu0 }
 0x381   : > { %14514 = vst [vmem:[#allocation72_spill] sm:$0xff] %v13536_v43  ;;  %v13538_v50 = vpop.f32.mrf.mxu1  ;;  %v13541_v57 = vadd.f32 %v10230_v15, %v13388_v4 }
 0x382   : > { %14515 = vst [vmem:[#allocation117_spill] sm:$0xff] %v13538_v50  ;;  %v6361_v27 = vpop.f32.mrf.mxu0 }
 0x383   : > { %14516 = vst [vmem:[#allocation75_spill] sm:$0xff] %v13541_v57  ;;  %v13543_v3 = vpop.f32.mrf.mxu1  ;;  %v13546_v38 = vadd.f32 %v6361_v27, %v13392_v12 }
 0x384   : > { %14517 = vst [vmem:[#allocation78_spill] sm:$0xff] %v13543_v3  ;;  %v10233_v49 = vpop.f32.mrf.mxu0 }
 0x385   : > { %14518 = vst [vmem:[#allocation118_spill] sm:$0xff] %v13546_v38  ;;  %v13548_v51 = vpop.f32.mrf.mxu1  ;;  %v13551_v53 = vadd.f32 %v10233_v49, %v13397_v56 }
 0x386   : > { %14519 = vst [vmem:[#allocation77_spill] sm:$0xff] %v13548_v51  ;;  %v6371_v9 = vpop.f32.mrf.mxu0 }
 0x387   : > { %14520 = vst [vmem:[#allocation76_spill] sm:$0xff] %v13551_v53  ;;  %v13553_v32 = vpop.f32.mrf.mxu1  ;;  %v13556_v50 = vadd.f32 %v6371_v9, %v13402_v1 }
 0x388   : > { %14521 = vst [vmem:[#allocation120_spill] sm:$0xff] %v13553_v32  ;;  %v10236_v4 = vpop.f32.mrf.mxu0 }
 0x389   : > { %14522 = vst [vmem:[#allocation79_spill] sm:$0xff] %v13556_v50  ;;  %v13558_v15 = vpop.f32.mrf.mxu1  ;;  %v13561_v3 = vadd.f32 %v10236_v4, %v13406_v31 }
 0x38a   : > { %14523 = vst [vmem:[#allocation82_spill] sm:$0xff] %v13558_v15  ;;  %v6381_v12 = vpop.f32.mrf.mxu0 }
 0x38b   : > { %14524 = vst [vmem:[#allocation121_spill] sm:$0xff] %v13561_v3  ;;  %v13563_v27 = vpop.f32.mrf.mxu1  ;;  %v13566_v51 = vadd.f32 %v6381_v12, %v13410_v47 }
 0x38c   : > { %14525 = vst [vmem:[#allocation81_spill] sm:$0xff] %v13563_v27  ;;  %v10239_v56 = vpop.f32.mrf.mxu0 }
 0x38d   : > { %14526 = vst [vmem:[#allocation80_spill] sm:$0xff] %v13566_v51  ;;  %v13568_v49 = vpop.f32.mrf.mxu1  ;;  %v13571_v32 = vadd.f32 %v10239_v56, %v13413_v37 }
 0x38e   : > { %14527 = vst [vmem:[#allocation123_spill] sm:$0xff] %v13568_v49  ;;  %v6391_v1 = vpop.f32.mrf.mxu0 }
 0x38f   : > { %14528 = vst [vmem:[#allocation83_spill] sm:$0xff] %v13571_v32  ;;  %v13573_v9 = vpop.f32.mrf.mxu1  ;;  %v13576_v15 = vadd.f32 %v6391_v1, %v13418_v0 }
 0x390   : > { %14529 = vst [vmem:[#allocation86_spill] sm:$0xff] %v13573_v9  ;;  %v13578_v31 = vpop.f32.mrf.mxu0 }
 0x391   : > { %14530 = vst [vmem:[#allocation124_spill] sm:$0xff] %v13576_v15  ;;  %v13580_v4 = vpop.f32.mrf.mxu1 }
 0x392   : > { %v13582_v27 = vpop.f32.mrf.mxu0 }
 0x393   : > { %v13584_v47 = vpop.f32.mrf.mxu1 }
 0x394   : > { %v13586_v12 = vpop.f32.mrf.mxu0 }
 0x395   : > { %v13590_v37 = vpop.f32.mrf.mxu1 }
 0x396   : > { %v13588_v49 = vpop.f32.mrf.mxu0 }
 0x397   : > { %v13596_v0 = vpop.f32.mrf.mxu1 }
 0x398   : > { %v13592_v56 = vpop.f32.mrf.mxu0 }
 0x399   : > { %v13602_v32 = vpop.f32.mrf.mxu1 }
 0x39a   : > { %v13594_v9 = vpop.f32.mrf.mxu0 }
 0x39b   : > { %v13608_v50 = vpop.f32.mrf.mxu1 }
 0x39c   : > { %v13598_v1 = vpop.f32.mrf.mxu0 }
 0x39d   : > { %v13614_v57 = vpop.f32.mrf.mxu1 }
 0x39e   : > { %v13600_v15 = vpop.f32.mrf.mxu0 }
 0x39f   : > { %v13620_v54 = vpop.f32.mrf.mxu1 }
 0x3a0   : > { %v13604_v51 = vpop.f32.mrf.mxu0 }
 0x3a1   : > { %v13626_v52 = vpop.f32.mrf.mxu1 }
 0x3a2   : > { %v13606_v3 = vpop.f32.mrf.mxu0 }
 0x3a3   : > { %14531 = vst [vmem:[#allocation85_spill] sm:$0xff] %v13606_v3  ;;  %v13632_v36 = vpop.f32.mrf.mxu1 }
 0x3a4   : > { %v13610_v53 = vpop.f32.mrf.mxu0  ;;  %14540 = vst [vmem:[#allocation91_spill] sm:$0xff] %v13632_v36  ;;  %v14559_v36 = vld [vmem:[#allocation12_spill] sm:$0xff] }
 0x3a5   : > { %14532 = vst [vmem:[#allocation84_spill] sm:$0xff] %v13610_v53  ;;  %v13638_v8 = vpop.f32.mrf.mxu1  ;;  %v14569_v53 = vld [vmem:[#allocation17_spill] sm:$0xff] }
 0x3a6   : > { %v13612_v38 = vpop.f32.mrf.mxu0  ;;  %14543 = vst [vmem:[#allocation93_spill] sm:$0xff] %v13638_v8 }
 0x3a7   : > { %14533 = vst [vmem:[#allocation125_spill] sm:$0xff] %v13612_v38  ;;  %v14560_v38 = vld [vmem:[#allocation13_spill] sm:$0xff] }
 0x3a8   : > { %v13616_v43 = vpop.f32.mrf.mxu0 }
 0x3a9   : > { %14534 = vst [vmem:[#allocation87_spill] sm:$0xff] %v13616_v43 }
 0x3aa   : > { %v13618_v29 = vpop.f32.mrf.mxu0 }
 0x3ab   : > { %14535 = vst [vmem:[#allocation90_spill] sm:$0xff] %v13618_v29 }
 0x3ac   : > { %v13622_v6 = vpop.f32.mrf.mxu0 }
 0x3ad   : > { %14536 = vst [vmem:[#allocation126_spill] sm:$0xff] %v13622_v6  ;;  %v13644_v6 = vpop.f32.mrf.mxu1 }
 0x3ae   : > { %v13624_v62 = vpop.f32.mrf.mxu0  ;;  %14546 = vst [vmem:[#allocation98_spill] sm:$0xff] %v13644_v6  ;;  %v14553_v6 = vld [vmem:[#allocation8_spill] sm:$0xff] }
 0x3af   : > { %14537 = vst [vmem:[#allocation89_spill] sm:$0xff] %v13624_v62 }
 0x3b0   : > { %v13628_v16 = vpop.f32.mrf.mxu0 }
 0x3b1   : > { %14538 = vst [vmem:[#allocation88_spill] sm:$0xff] %v13628_v16  ;;  %v14551_v16 = vld [vmem:[#allocation6_spill] sm:$0xff] }
 0x3b2   : > { %v13630_v14 = vpop.f32.mrf.mxu0 }
 0x3b3   : > { %14539 = vst [vmem:[#allocation128_spill] sm:$0xff] %v13630_v14  ;;  %v13653_v14 = vld [vmem:[%s14159_s8] ss:$0 sm:$0xff] }
 0x3b4   : > { %v13634_v41 = vpop.f32.mrf.mxu0  ;;  %v907_v28 = vmul.f32 %v14562_v48, %v13653_v14  ;;  %v923_v17 = vmul.f32 %v14563_v2, %v13653_v14  ;;  %v14568_v2 = vld [vmem:[#allocation16_spill] sm:$0xff] }
 0x3b5   : > { %14541 = vst [vmem:[#allocation94_spill] sm:$0xff] %v13634_v41  ;;  %v13655_v41 = vpop.f32.mrf.mxu1 }
 0x3b6   : > { %v13636_v5 = vpop.f32.mrf.mxu0  ;;  %14549 = vst [vmem:[#allocation96_spill] sm:$0xff] %v13655_v41  ;;  %v13672_v41 = vld [vmem:[%s14160_s9] ss:$0 sm:$0xff] }
 0x3b7   : > { %14542 = vst [vmem:[#allocation129_spill] sm:$0xff] %v13636_v5 }
 0x3b8   : > { %v13640_v63 = vpop.f32.mrf.mxu0 }
 0x3b9   : > { %14544 = vst [vmem:[#allocation92_spill] sm:$0xff] %v13640_v63  ;;  %v903_v63 = vmul.f32 %v14551_v16, %v13653_v14  ;;  %v14557_v16 = vld [vmem:[#allocation11_spill] sm:$0xff] }
 0x3ba   : > { %v13642_v45 = vpop.f32.mrf.mxu0  ;;  %v921_v8 = vmul.f32 %v14557_v16, %v13653_v14 }
 0x3bb   : > { %14545 = vst [vmem:[#allocation95_spill] sm:$0xff] %v13642_v45  ;;  %v14552_v45 = vld [vmem:[#allocation7_spill] sm:$0xff] }
 0x3bc   : > { %v13646_v62 = vpop.f32.mrf.mxu0  ;;  %v919_v29 = vmul.f32 %v14552_v45, %v13653_v14  ;;  %v13678_v45 = vpop.f32.mrf.mxu1  ;;  %v13708_v48 = vadd.f32 %v13672_v41, %v921_v8  ;;  %v14574_v8 = vld [vmem:[#allocation19_spill] sm:$0xff] }
 0x3bd   : > { %14547 = vst [vmem:[#allocation130_spill] sm:$0xff] %v13646_v62  ;;  %v902_v62 = vmul.f32 %v13653_v14, %v14553_v6  ;;  %14558 = vst [vmem:[#allocation102_spill] sm:$0xff] %v13678_v45  ;;  %v904_v6 = vmul.f32 %v13653_v14, %v14559_v36 }
 0x3be   : > { %v13648_v7 = vpop.f32.mrf.mxu0  ;;  %v13694_v16 = vadd.f32 %v13672_v41, %v919_v29  ;;  %14567 = vst [vmem:[#allocation51_spill] sm:$0xff] %v13708_v48  ;;  %v922_v29 = vmul.f32 %v13653_v14, %v14569_v53  ;;  %v925_v48 = vmul.f32 %v14574_v8, %v13653_v14  ;;  %v13732_v53 = vadd.f32 %v13672_v41, %v923_v17 }
 0x3bf   : > { %14548 = vst [vmem:[#allocation97_spill] sm:$0xff] %v13648_v7  ;;  %v918_v7 = vmul.f32 %v13653_v14, %v14554_v42  ;;  %v920_v42 = vmul.f32 %v13653_v14, %v14560_v38  ;;  %v13697_v45 = vadd.f32 %v13672_v41, %v902_v62  ;;  %v13717_v62 = vadd.f32 %v13672_v41, %v904_v6 }
 0x3c0   : > { %v13657_v5 = vpop.f32.mrf.mxu0  ;;  %14564 = vst [vmem:[#allocation100_spill] sm:$0xff] %v13694_v16  ;;  %v13714_v16 = vpop.f32.mrf.mxu1  ;;  %14577 = vst [vmem:[#allocation37_spill] sm:$0xff] %v13732_v53 }
 0x3c1   : > { %14550 = vst [vmem:[#allocation131_spill] sm:$0xff] %v13657_v5  ;;  %v14556_v5 = vld [vmem:[#allocation10_spill] sm:$0xff]  ;;  %v13700_v36 = vadd.f32 %v13672_v41, %v918_v7  ;;  %14570 = vst [vmem:[#allocation53_spill] sm:$0xff] %v13714_v16  ;;  %v13720_v7 = vadd.f32 %v13672_v41, %v920_v42  ;;  %v14578_v16 = vld [vmem:[#allocation20_spill] sm:$0xff]  ;;  %v6788_v42 = vadd.f32 %v13416_v58, %v13421_v25 }
 0x3c2   : > { %v13667_v60 = vpop.f32.mrf.mxu0  ;;  %v905_v43 = vmul.f32 %v14556_v5, %v13653_v14  ;;  %v13691_v5 = vadd.f32 %v13672_v41, %v903_v63  ;;  %v906_v63 = vmul.f32 %v13653_v14, %v14568_v2  ;;  %14571 = vst [vmem:[#allocation46_spill] sm:$0xff] %v13717_v62  ;;  %v13729_v2 = vadd.f32 %v13672_v41, %v907_v28  ;;  %v14580_v62 = vld [vmem:[#allocation22_spill] sm:$0xff]  ;;  %v14582_v28 = vld [vmem:[#allocation24_spill] sm:$0xff] }
 0x3c3   : > { %14555 = vst [vmem:[#allocation99_spill] sm:$0xff] %v13667_v60  ;;  %14565 = vst [vmem:[#allocation103_spill] sm:$0xff] %v13700_v36  ;;  %v908_v6 = vmul.f32 %v13653_v14, %v14578_v16  ;;  %v911_v8 = vmul.f32 %v14580_v62, %v13653_v14  ;;  %v13752_v16 = vadd.f32 %v13672_v41, %v922_v29  ;;  %v13757_v62 = vpop.f32.mrf.mxu1 }
 0x3c4   : > { %v13684_v60 = vpop.f32.mrf.mxu0  ;;  %14572 = vst [vmem:[#allocation40_spill] sm:$0xff] %v13720_v7  ;;  %14576 = vst [vmem:[#allocation50_spill] sm:$0xff] %v13729_v2  ;;  %v14579_v7 = vld [vmem:[#allocation21_spill] sm:$0xff]  ;;  %v910_v2 = vmul.f32 %v13653_v14, %v14582_v28  ;;  %v13749_v53 = vadd.f32 %v13672_v41, %v906_v63  ;;  %v6787_v58 = vadd.f32 %v13423_v59, %v13426_v11  ;;  %v14589_v11 = vld [vmem:[#allocation4_spill] sm:$0xff] }
 0x3c5   : > { %14561 = vst [vmem:[#allocation101_spill] sm:$0xff] %v13684_v60  ;;  %v13705_v60 = vadd.f32 %v13672_v41, %v905_v43  ;;  %v14573_v43 = vld [vmem:[#allocation18_spill] sm:$0xff]  ;;  %14584 = vst [vmem:[#allocation44_spill] sm:$0xff] %v13752_v16  ;;  %v7176_v25 = vadd.f32 %v13578_v31, %v6788_v42  ;;  %v14586_v28 = vld [vmem:[#allocation25_spill] sm:$0xff]  ;;  %v13772_v59 = vadd.f32 %v13672_v41, %v908_v6 }
 0x3c6   : > { %v13702_v38 = vpop.f32.mrf.mxu0  ;;  %v926_v63 = vmul.f32 %v13653_v14, %v14586_v28  ;;  %v912_v31 = vmul.f32 %v13653_v14, %v14589_v11  ;;  %v13783_v28 = vadd.f32 %v13672_v41, %v911_v8  ;;  %v13789_v6 = vadd.f32 %v13672_v41, %v910_v2  ;;  %v14592_v11 = vld [vmem:[#allocation29_spill] sm:$0xff]  ;;  %v14594_v8 = vld [vmem:[#allocation27_spill] sm:$0xff] }
 0x3c7   : > { %14566 = vst [vmem:[#allocation38_spill] sm:$0xff] %v13702_v38  ;;  %v909_v38 = vmul.f32 %v14573_v43, %v13653_v14  ;;  %v924_v43 = vmul.f32 %v13653_v14, %v14579_v7  ;;  %v13763_v7 = vadd.f32 %v13672_v41, %v925_v48  ;;  %v7175_v48 = vadd.f32 %v13582_v27, %v6787_v58 }
 0x3c8   : > { %v13726_v36 = vpop.f32.mrf.mxu0  ;;  %v13809_v58 = vmul.f32 %v14594_v8, %v13653_v14  ;;  %v14597_v8 = vld [vmem:[#allocation34_spill] sm:$0xff] }
 0x3c9   : > { %14575 = vst [vmem:[#allocation42_spill] sm:$0xff] %v13726_v36  ;;  %v14581_v36 = vld [vmem:[#allocation23_spill] sm:$0xff]  ;;  %14585 = vst [vmem:[#allocation52_spill] sm:$0xff] %v13763_v7  ;;  %v13780_v42 = vadd.f32 %v13672_v41, %v924_v43  ;;  %v915_v7 = vmul.f32 %v14592_v11, %v13653_v14  ;;  %v13799_v43 = vpop.f32.mrf.mxu1  ;;  %v14595_v11 = vld [vmem:[#allocation5_spill] sm:$0xff] }
 0x3ca   : > { %v927_v3 = vmul.f32 %v14581_v36, %v13653_v14  ;;  %v13746_v17 = vpop.f32.mrf.mxu0  ;;  %v13760_v36 = vadd.f32 %v13672_v41, %v909_v38  ;;  %v6790_v38 = vadd.f32 %v13428_v22, %v13431_v21  ;;  %v6789_v22 = vadd.f32 %v13433_v39, %v13436_v44  ;;  %v13816_v44 = vld [vmem:[%s14156_s5] ss:$0 sm:$0xff] }
 0x3cb   : > { %14583 = vst [vmem:[#allocation36_spill] sm:$0xff] %v13746_v17  ;;  %v14587_v17 = vld [vmem:[#allocation26_spill] sm:$0xff]  ;;  %v7563_v21 = vadd.f32 %v13580_v4, %v7176_v25  ;;  %v13819_v4 = vadd.f32 %v13672_v41, %v912_v31  ;;  %v13834_v31 = vld [vmem:[%s14157_s6] ss:$0 sm:$0xff] }
 0x3cc   : > { %v913_v29 = vmul.f32 %v14587_v17, %v13653_v14  ;;  %v13769_v16 = vpop.f32.mrf.mxu0  ;;  %v13786_v17 = vadd.f32 %v13672_v41, %v927_v3  ;;  %v7178_v27 = vadd.f32 %v13586_v12, %v6790_v38  ;;  %v13802_v3 = vadd.f32 %v13672_v41, %v926_v63 }
 0x3cd   : > { %14588 = vst [vmem:[#allocation39_spill] sm:$0xff] %v13769_v16  ;;  %v7562_v12 = vadd.f32 %v13584_v47, %v7175_v48  ;;  %v7177_v25 = vadd.f32 %v13588_v49, %v6789_v22  ;;  %v13837_v49 = vadd.f32 %v13672_v41, %v915_v7  ;;  %v13840_v22 = vpop.f32.mrf.mxu1 }
 0x3ce   : > { %14590 = vst [vmem:[#allocation41_spill] sm:$0xff] %v13786_v17  ;;  %v13791_v16 = vpop.f32.mrf.mxu0  ;;  %14593 = vst [vmem:[#allocation45_spill] sm:$0xff] %v13802_v3  ;;  %v13805_v2 = vadd.f32 %v13672_v41, %v913_v29  ;;  %v914_v17 = vmul.f32 %v13653_v14, %v14595_v11  ;;  %v14596_v29 = vld [vmem:[#allocation32_spill] sm:$0xff]  ;;  %v916_v11 = vmul.f32 %v13653_v14, %v14597_v8 }
 0x3cf   : > { %14591 = vst [vmem:[#allocation43_spill] sm:$0xff] %v13791_v16  ;;  %v917_v38 = vmul.f32 %v14596_v29, %v13653_v14  ;;  %v6792_v3 = vadd.f32 %v13438_v30, %v13441_v10  ;;  %v6791_v16 = vadd.f32 %v13443_v33, %v13446_v20  ;;  %v7565_v48 = vadd.f32 %v13590_v37, %v7178_v27 }
 0x3d0   : > { %v10394_v39 = vpop.f32.mrf.mxu0  ;;  %v13844_v30 = vadd.f32 %v13672_v41, %v914_v17  ;;  %v6794_v10 = vadd.f32 %v13448_v24, %v13451_v35  ;;  %v7564_v7 = vadd.f32 %v13596_v0, %v7177_v25  ;;  %v13857_v17 = vadd.f32 %v13672_v41, %v916_v11 }
 0x3d1   : > { %v7950_v63 = vadd.f32 %v10394_v39, %v7563_v21  ;;  %v7180_v33 = vadd.f32 %v13592_v56, %v6792_v3  ;;  %v7179_v20 = vadd.f32 %v13594_v9, %v6791_v16  ;;  %v6793_v24 = vadd.f32 %v13453_v23, %v13456_v61  ;;  %v13862_v56 = vpop.f32.mrf.mxu1 }
 0x3d2   : > { %v7790_v47 = vpop.f32.mrf.mxu0  ;;  %v7182_v35 = vadd.f32 %v13598_v1, %v6794_v10 }
 0x3d3   : > { %v7989_v21 = vmul.f32 %v13816_v44, %v7950_v63  ;;  %v7949_v39 = vadd.f32 %v7790_v47, %v7562_v12  ;;  %v13854_v12 = vadd.f32 %v13672_v41, %v917_v38  ;;  %v6796_v38 = vadd.f32 %v13458_v19, %v13461_v55 }
 0x3d4   : > { %v10397_v29 = vpop.f32.mrf.mxu0  ;;  %v7567_v8 = vadd.f32 %v13602_v32, %v7180_v33  ;;  %v7566_v11 = vadd.f32 %v13608_v50, %v7179_v20  ;;  %v7181_v23 = vadd.f32 %v13600_v15, %v6793_v24  ;;  %v6795_v55 = vadd.f32 %v13463_v26, %v13466_v13  ;;  %v14599_v24 = vld [vmem:[#allocation84_spill] sm:$0xff] }
 0x3d5   : > { %v8028_v37 = vadd.f32 %v13834_v31, %v7989_v21  ;;  %v7988_v27 = vmul.f32 %v13816_v44, %v7949_v39  ;;  %v7952_v63 = vadd.f32 %v10397_v29, %v7565_v48  ;;  %v7569_v50 = vadd.f32 %v13614_v57, %v7182_v35  ;;  %v13885_v39 = vpop.f32.mrf.mxu1 }
 0x3d6   : > { %v7800_v9 = vpop.f32.mrf.mxu0  ;;  %v7184_v32 = vadd.f32 %v13604_v51, %v6796_v38  ;;  %v6798_v26 = vadd.f32 %v13468_v18, %v13471_v40  ;;  %v6797_v13 = vadd.f32 %v13473_v34, %v13476_v46  ;;  %v7568_v57 = vadd.f32 %v13620_v54, %v7181_v23  ;;  %v14598_v18 = vld [vmem:[#allocation85_spill] sm:$0xff] }
 0x3d7   : > { %v8060_v0 = vmax.f32 %v8028_v37, 0.0  ;;  %v8027_v16 = vadd.f32 %v13834_v31, %v7988_v27  ;;  %v7991_v3 = vmul.f32 %v13816_v44, %v7952_v63  ;;  %v7951_v25 = vadd.f32 %v7800_v9, %v7564_v7  ;;  %v13905_v35 = vpop.f32.mrf.mxu1  ;;  %v14600_v9 = vld [vmem:[#allocation46_spill] sm:$0xff] }
 0x3d8   : > { %v10400_v61 = vpop.f32.mrf.mxu0  ;;  %v7571_v63 = vadd.f32 %v13626_v52, %v7184_v32  ;;  %v7183_v40 = vadd.f32 %v14598_v18, %v6795_v55  ;;  %v7186_v34 = vadd.f32 %v14599_v24, %v6798_v26  ;;  %v14601_v52 = vld [vmem:[#allocation108_spill] sm:$0xff]  ;;  %v14609_v26 = vld [vmem:[#allocation50_spill] sm:$0xff] }
 0x3d9   : > { %v8092_v1 = vadd.f32 %v8060_v0, %v13691_v5  ;;  %v8059_v47 = vmax.f32 %v8027_v16, 0.0  ;;  %v8030_v48 = vadd.f32 %v13834_v31, %v7991_v3  ;;  %v7990_v19 = vmul.f32 %v13816_v44, %v7951_v25  ;;  %v14602_v25 = vld [vmem:[#allocation113_spill] sm:$0xff] }
 0x3da   : > { %v7954_v15 = vadd.f32 %v10400_v61, %v7567_v8  ;;  %v7810_v21 = vpop.f32.mrf.mxu0  ;;  %v6800_v38 = vadd.f32 %v14602_v25, %v14601_v52  ;;  %v14603_v8 = vld [vmem:[#allocation66_spill] sm:$0xff]  ;;  %v14605_v61 = vld [vmem:[#allocation125_spill] sm:$0xff] }
 0x3db   : > { %8124 = vst.msk [vmem:[%s13876_s23 + $0x8] sm:$0xff] %vm416_vm3, %v8092_v1  ;;  %v8091_v5 = vadd.f32 %v8059_v47, %v13697_v45  ;;  %v8062_v10 = vmax.f32 %v8030_v48, 0.0  ;;  %v8029_v33 = vadd.f32 %v13834_v31, %v7990_v19  ;;  %v7953_v20 = vadd.f32 %v7810_v21, %v7566_v11  ;;  %v14604_v11 = vld [vmem:[#allocation63_spill] sm:$0xff]  ;;  %v14615_v52 = vld [vmem:[#allocation49_spill] sm:$0xff] }
 0x3dc   : > { %v7993_v51 = vmul.f32 %v13816_v44, %v7954_v15  ;;  %v10403_v29 = vpop.f32.mrf.mxu0  ;;  %v6799_v23 = vadd.f32 %v14604_v11, %v14603_v8  ;;  %v7185_v1 = vadd.f32 %v14605_v61, %v6797_v13  ;;  %v14606_v15 = vld [vmem:[#allocation91_spill] sm:$0xff]  ;;  %v14617_v8 = vld [vmem:[#allocation64_spill] sm:$0xff] }
 0x3dd   : > { %8123 = vst.msk [vmem:[%s13876_s23] sm:$0xff] %vm416_vm3, %v8091_v5  ;;  %v8094_v45 = vadd.f32 %v8062_v10, %v13705_v60  ;;  %v8061_v7 = vmax.f32 %v8029_v33, 0.0  ;;  %v7992_v37 = vmul.f32 %v13816_v44, %v7953_v20  ;;  %v7956_v27 = vadd.f32 %v10403_v29, %v7569_v50  ;;  %v14607_v5 = vld [vmem:[#allocation93_spill] sm:$0xff]  ;;  %v14608_v33 = vld [vmem:[#allocation87_spill] sm:$0xff] }
 0x3de   : > { %v8032_v46 = vadd.f32 %v13834_v31, %v7993_v51  ;;  %v7820_v54 = vpop.f32.mrf.mxu0  ;;  %v7570_v21 = vadd.f32 %v14606_v15, %v7183_v40  ;;  %v7573_v10 = vadd.f32 %v14607_v5, %v7186_v34  ;;  %v7188_v20 = vadd.f32 %v14608_v33, %v6800_v38  ;;  %v13925_v51 = vpop.f32.mrf.mxu1  ;;  %v14612_v40 = vld [vmem:[#allocation98_spill] sm:$0xff]  ;;  %v14616_v38 = vld [vmem:[#allocation119_spill] sm:$0xff] }
 0x3df   : > { %8126 = vst.msk [vmem:[%s13876_s23 + $0x18] sm:$0xff] %vm416_vm3, %v8094_v45  ;;  %v8093_v60 = vadd.f32 %v8061_v7, %v14600_v9  ;;  %v8031_v0 = vadd.f32 %v13834_v31, %v7992_v37  ;;  %v7995_v16 = vmul.f32 %v13816_v44, %v7956_v27  ;;  %v7955_v3 = vadd.f32 %v7820_v54, %v7568_v57  ;;  %v14610_v27 = vld [vmem:[#allocation109_spill] sm:$0xff]  ;;  %v14613_v34 = vld [vmem:[#allocation90_spill] sm:$0xff] }
 0x3e0   : > { %v8064_v47 = vmax.f32 %v8032_v46, 0.0  ;;  %v10406_v48 = vpop.f32.mrf.mxu0  ;;  %v7572_v24 = vadd.f32 %v14612_v40, %v7185_v1  ;;  %v7187_v46 = vadd.f32 %v14613_v34, %v6799_v23  ;;  %v6804_v11 = vadd.f32 %v14617_v8, %v14616_v38  ;;  %v14618_v23 = vld [vmem:[#allocation96_spill] sm:$0xff] }
 0x3e1   : > { %8125 = vst.msk [vmem:[%s13876_s23 + $0x10] sm:$0xff] %vm416_vm3, %v8093_v60  ;;  %v8063_v19 = vmax.f32 %v8031_v0, 0.0  ;;  %v8034_v55 = vadd.f32 %v13834_v31, %v7995_v16  ;;  %v7994_v50 = vmul.f32 %v13816_v44, %v7955_v3  ;;  %v7958_v32 = vadd.f32 %v10406_v48, %v7571_v63  ;;  %v14611_v63 = vld [vmem:[#allocation116_spill] sm:$0xff]  ;;  %v14614_v3 = vld [vmem:[#allocation65_spill] sm:$0xff]  ;;  %v13946_v48 = vpop.f32.mrf.mxu1 }
 0x3e2   : > { %v8096_v13 = vadd.f32 %v8064_v47, %v14609_v26  ;;  %v7830_v57 = vpop.f32.mrf.mxu0  ;;  %v6802_v18 = vadd.f32 %v14611_v63, %v14610_v27  ;;  %v6801_v25 = vadd.f32 %v14615_v52, %v14614_v3  ;;  %v7575_v61 = vadd.f32 %v14618_v23, %v7188_v20  ;;  %v14624_v27 = vld [vmem:[#allocation122_spill] sm:$0xff]  ;;  %v14626_v40 = vld [vmem:[#allocation88_spill] sm:$0xff] }
 0x3e3   : > { %v8095_v29 = vadd.f32 %v8063_v19, %v13749_v53  ;;  %v8066_v45 = vmax.f32 %v8034_v55, 0.0  ;;  %v8033_v7 = vadd.f32 %v13834_v31, %v7994_v50  ;;  %v7997_v37 = vmul.f32 %v13816_v44, %v7958_v32  ;;  %v14619_v32 = vld [vmem:[#allocation102_spill] sm:$0xff]  ;;  %v14628_v52 = vld [vmem:[#allocation128_spill] sm:$0xff] }
 0x3e4   : > { %8128 = vst.msk [vmem:[%s13876_s23 + $0x28] sm:$0xff] %vm416_vm3, %v8096_v13  ;;  %v7957_v54 = vadd.f32 %v7830_v57, %v7570_v21  ;;  %v10409_v9 = vpop.f32.mrf.mxu0  ;;  %v7574_v15 = vadd.f32 %v14619_v32, %v7187_v46  ;;  %v14620_v21 = vld [vmem:[#allocation126_spill] sm:$0xff] }
 0x3e5   : > { %8127 = vst.msk [vmem:[%s13876_s23 + $0x20] sm:$0xff] %vm416_vm3, %v8095_v29  ;;  %v8098_v53 = vadd.f32 %v8066_v45, %v13760_v36  ;;  %v8065_v60 = vmax.f32 %v8033_v7, 0.0  ;;  %v8036_v0 = vadd.f32 %v13834_v31, %v7997_v37  ;;  %v7960_v16 = vadd.f32 %v10409_v9, %v7573_v10  ;;  %v14621_v10 = vld [vmem:[#allocation89_spill] sm:$0xff]  ;;  %v14622_v45 = vld [vmem:[#allocation67_spill] sm:$0xff]  ;;  %v14625_v63 = vld [vmem:[#allocation70_spill] sm:$0xff] }
 0x3e6   : > { %v7996_v1 = vmul.f32 %v13816_v44, %v7957_v54  ;;  %v7840_v47 = vpop.f32.mrf.mxu0  ;;  %v7190_v5 = vadd.f32 %v14620_v21, %v6802_v18  ;;  %v7189_v33 = vadd.f32 %v14621_v10, %v6801_v25  ;;  %v14623_v7 = vld [vmem:[#allocation111_spill] sm:$0xff]  ;;  %v6806_v18 = vadd.f32 %v14625_v63, %v14624_v27  ;;  %v13966_v54 = vpop.f32.mrf.mxu1 }
 0x3e7   : > { %8130 = vst.msk [vmem:[%s13876_s23 + $0x38] sm:$0xff] %vm416_vm3, %v8098_v53  ;;  %v8097_v36 = vadd.f32 %v8065_v60, %v13772_v59  ;;  %v8068_v19 = vmax.f32 %v8036_v0, 0.0  ;;  %v7999_v55 = vmul.f32 %v13816_v44, %v7960_v16  ;;  %v7959_v50 = vadd.f32 %v7840_v47, %v7572_v24  ;;  %v14627_v0 = vld [vmem:[#allocation53_spill] sm:$0xff] }
 0x3e8   : > { %v8035_v20 = vadd.f32 %v13834_v31, %v7996_v1  ;;  %v10412_v26 = vpop.f32.mrf.mxu0  ;;  %v6803_v37 = vadd.f32 %v14623_v7, %v14622_v45  ;;  %v7192_v24 = vadd.f32 %v14626_v40, %v6804_v11  ;;  %v7577_v16 = vadd.f32 %v14627_v0, %v7190_v5  ;;  %v14629_v47 = vld [vmem:[#allocation69_spill] sm:$0xff]  ;;  %v14639_v0 = vld [vmem:[#allocation127_spill] sm:$0xff] }
 0x3e9   : > { %8129 = vst.msk [vmem:[%s13876_s23 + $0x30] sm:$0xff] %vm416_vm3, %v8097_v36  ;;  %v8100_v13 = vadd.f32 %v8068_v19, %v13783_v28  ;;  %v8038_v59 = vadd.f32 %v13834_v31, %v7999_v55  ;;  %v7998_v57 = vmul.f32 %v13816_v44, %v7959_v50  ;;  %v7962_v29 = vadd.f32 %v10412_v26, %v7575_v61  ;;  %v14630_v36 = vld [vmem:[#allocation112_spill] sm:$0xff]  ;;  %v14631_v50 = vld [vmem:[#allocation94_spill] sm:$0xff] }
 0x3ea   : > { %v8067_v34 = vmax.f32 %v8035_v20, 0.0  ;;  %v7850_v46 = vpop.f32.mrf.mxu0  ;;  %v7576_v3 = vadd.f32 %v13757_v62, %v7189_v33  ;;  %v7191_v25 = vadd.f32 %v14628_v52, %v6803_v37  ;;  %v6805_v19 = vadd.f32 %v14630_v36, %v14629_v47  ;;  %v14632_v33 = vld [vmem:[#allocation114_spill] sm:$0xff]  ;;  %v14633_v20 = vld [vmem:[#allocation68_spill] sm:$0xff]  ;;  %v14641_v52 = vld [vmem:[#allocation73_spill] sm:$0xff] }
 0x3eb   : > { %8132 = vst.msk [vmem:[%s13876_s23 + $0x48] sm:$0xff] %vm416_vm3, %v8100_v13  ;;  %v8070_v28 = vmax.f32 %v8038_v59, 0.0  ;;  %v8037_v9 = vadd.f32 %v13834_v31, %v7998_v57  ;;  %v8001_v53 = vmul.f32 %v13816_v44, %v7962_v29  ;;  %v7961_v60 = vadd.f32 %v7850_v46, %v7574_v15  ;;  %v13985_v15 = vpop.f32.mrf.mxu1  ;;  %v14634_v26 = vld [vmem:[#allocation74_spill] sm:$0xff]  ;;  %v14635_v13 = vld [vmem:[#allocation71_spill] sm:$0xff] }
 0x3ec   : > { %v8099_v38 = vadd.f32 %v8067_v34, %v13789_v6  ;;  %v10415_v8 = vpop.f32.mrf.mxu0  ;;  %v7579_v55 = vadd.f32 %v13799_v43, %v7192_v24  ;;  %v7194_v62 = vadd.f32 %v14631_v50, %v6806_v18  ;;  %v6808_v43 = vadd.f32 %v14633_v20, %v14632_v33  ;;  %v14636_v18 = vld [vmem:[#allocation129_spill] sm:$0xff]  ;;  %v14637_v24 = vld [vmem:[#allocation92_spill] sm:$0xff]  ;;  %v14644_v33 = vld [vmem:[#allocation75_spill] sm:$0xff] }
 0x3ed   : > { %v8102_v11 = vadd.f32 %v8070_v28, %v13805_v2  ;;  %v8069_v23 = vmax.f32 %v8037_v9, 0.0  ;;  %v8040_v61 = vadd.f32 %v13834_v31, %v8001_v53  ;;  %v8000_v1 = vmul.f32 %v13816_v44, %v7961_v60  ;;  %v14005_v28 = vpop.f32.mrf.mxu1  ;;  %v14645_v20 = vld [vmem:[#allocation117_spill] sm:$0xff] }
 0x3ee   : > { %8131 = vst.msk [vmem:[%s13876_s23 + $0x40] sm:$0xff] %vm416_vm3, %v8099_v38  ;;  %v7964_v32 = vadd.f32 %v10415_v8, %v7577_v16  ;;  %v7860_v6 = vpop.f32.mrf.mxu0  ;;  %v6807_v59 = vadd.f32 %v14635_v13, %v14634_v26  ;;  %v7578_v57 = vadd.f32 %v13840_v22, %v7191_v25  ;;  %v7581_v63 = vadd.f32 %v13862_v56, %v7194_v62  ;;  %v14638_v56 = vld [vmem:[#allocation115_spill] sm:$0xff]  ;;  %v14646_v26 = vld [vmem:[#allocation97_spill] sm:$0xff] }
 0x3ef   : > { %8134 = vst.msk [vmem:[%s13876_s23 + $0x58] sm:$0xff] %vm416_vm3, %v8102_v11  ;;  %v8101_v2 = vadd.f32 %v8069_v23, %v13819_v4  ;;  %v8072_v21 = vmax.f32 %v8040_v61, 0.0  ;;  %v8039_v5 = vadd.f32 %v13834_v31, %v8000_v1  ;;  %v7963_v10 = vadd.f32 %v7860_v6, %v7576_v3  ;;  %v14640_v3 = vld [vmem:[#allocation72_spill] sm:$0xff]  ;;  %v14642_v38 = vld [vmem:[#allocation95_spill] sm:$0xff]  ;;  %v10383_v6 = vpop.f32.mrf.mxu1 }
 0x3f0   : > { %v8003_v29 = vmul.f32 %v13816_v44, %v7964_v32  ;;  %v10418_v45 = vpop.f32.mrf.mxu0  ;;  %v7193_v40 = vadd.f32 %v14636_v18, %v6805_v19  ;;  %v7196_v34 = vadd.f32 %v14637_v24, %v6808_v43  ;;  %v6810_v16 = vadd.f32 %v14639_v0, %v14638_v56  ;;  %v14653_v56 = vld [vmem:[#allocation131_spill] sm:$0xff] }
 0x3f1   : > { %8133 = vst.msk [vmem:[%s13876_s23 + $0x50] sm:$0xff] %vm416_vm3, %v8101_v2  ;;  %v8104_v4 = vadd.f32 %v8072_v21, %v13837_v49  ;;  %v8071_v7 = vmax.f32 %v8039_v5, 0.0  ;;  %v8002_v37 = vmul.f32 %v13816_v44, %v7963_v10  ;;  %v7966_v27 = vadd.f32 %v10418_v45, %v7579_v55  ;;  %v14643_v55 = vld [vmem:[#allocation130_spill] sm:$0xff] }
 0x3f2   : > { %v8042_v22 = vadd.f32 %v13834_v31, %v8003_v29  ;;  %v7870_v46 = vpop.f32.mrf.mxu0  ;;  %v6809_v25 = vadd.f32 %v14641_v52, %v14640_v3  ;;  %v7195_v8 = vadd.f32 %v14642_v38, %v6807_v59  ;;  %v7580_v36 = vadd.f32 %v13885_v39, %v7193_v40 }
 0x3f3   : > { %8136 = vst.msk [vmem:[%s13876_s23 + $0x68] sm:$0xff] %vm416_vm3, %v8104_v4  ;;  %v8103_v49 = vadd.f32 %v8071_v7, %v13844_v30  ;;  %v8041_v9 = vadd.f32 %v13834_v31, %v8002_v37  ;;  %v8005_v53 = vmul.f32 %v13816_v44, %v7966_v27  ;;  %v7965_v60 = vadd.f32 %v7870_v46, %v7578_v57  ;;  %v14648_v4 = vld [vmem:[#allocation118_spill] sm:$0xff]  ;;  %v14650_v27 = vld [vmem:[#allocation76_spill] sm:$0xff] }
 0x3f4   : > { %v8074_v11 = vmax.f32 %v8042_v22, 0.0  ;;  %v10421_v23 = vpop.f32.mrf.mxu0  ;;  %v7583_v19 = vadd.f32 %v13905_v35, %v7196_v34  ;;  %v7198_v50 = vadd.f32 %v14643_v55, %v6810_v16  ;;  %v6812_v43 = vadd.f32 %v14645_v20, %v14644_v33  ;;  %v14649_v7 = vld [vmem:[#allocation78_spill] sm:$0xff]  ;;  %v7533_v34 = vpop.f32.mrf.mxu1  ;;  %v14652_v22 = vld [vmem:[#allocation103_spill] sm:$0xff] }
 0x3f5   : > { %8135 = vst.msk [vmem:[%s13876_s23 + $0x60] sm:$0xff] %vm416_vm3, %v8103_v49  ;;  %v8073_v61 = vmax.f32 %v8041_v9, 0.0  ;;  %v8044_v30 = vadd.f32 %v13834_v31, %v8005_v53  ;;  %v8004_v1 = vmul.f32 %v13816_v44, %v7965_v60  ;;  %v7968_v47 = vadd.f32 %v10421_v23, %v7581_v63  ;;  %v14654_v16 = vld [vmem:[#allocation99_spill] sm:$0xff] }
 0x3f6   : > { %v8106_v62 = vadd.f32 %v8074_v11, %v13854_v12  ;;  %v7880_v32 = vpop.f32.mrf.mxu0  ;;  %v7582_v39 = vadd.f32 %v13925_v51, %v7195_v8  ;;  %v7197_v35 = vadd.f32 %v14646_v26, %v6809_v25  ;;  %v6811_v37 = vadd.f32 %v14649_v7, %v14648_v4  ;;  %v14651_v51 = vld [vmem:[#allocation77_spill] sm:$0xff]  ;;  %v14655_v25 = vld [vmem:[#allocation51_spill] sm:$0xff]  ;;  %v14662_v26 = vld [vmem:[#allocation40_spill] sm:$0xff] }
 0x3f7   : > { %v8105_v2 = vadd.f32 %v8073_v61, %v13857_v17  ;;  %v8076_v21 = vmax.f32 %v8044_v30, 0.0  ;;  %v8043_v5 = vadd.f32 %v13834_v31, %v8004_v1  ;;  %v8007_v10 = vmul.f32 %v13816_v44, %v7968_v47  ;;  %v14647_v17 = vld [vmem:[#allocation100_spill] sm:$0xff]  ;;  %v14656_v61 = vld [vmem:[#allocation79_spill] sm:$0xff]  ;;  %v14658_v1 = vld [vmem:[#allocation121_spill] sm:$0xff] }
 0x3f8   : > { %8138 = vst.msk [vmem:[%s13876_s23 + $0x78] sm:$0xff] %vm416_vm3, %v8106_v62  ;;  %v7967_v12 = vadd.f32 %v7880_v32, %v7580_v36  ;;  %v10424_v13 = vpop.f32.mrf.mxu0  ;;  %v6814_v63 = vadd.f32 %v14651_v51, %v14650_v27  ;;  %v7585_v18 = vadd.f32 %v13946_v48, %v7198_v50  ;;  %v7584_v60 = vadd.f32 %v13966_v54, %v7197_v35  ;;  %v14657_v30 = vld [vmem:[#allocation120_spill] sm:$0xff]  ;;  %v14659_v47 = vld [vmem:[#allocation82_spill] sm:$0xff]  ;;  %v10386_v32 = vpop.f32.mrf.mxu1  ;;  %v14665_v4 = vld [vmem:[#allocation81_spill] sm:$0xff] }
 0x3f9   : > { %8137 = vst.msk [vmem:[%s13876_s23 + $0x70] sm:$0xff] %vm416_vm3, %v8105_v2  ;;  %v8108_v59 = vadd.f32 %v8076_v21, %v14647_v17  ;;  %v8075_v57 = vmax.f32 %v8043_v5, 0.0  ;;  %v8046_v29 = vadd.f32 %v13834_v31, %v8007_v10  ;;  %v7970_v45 = vadd.f32 %v10424_v13, %v7583_v19  ;;  %v14660_v19 = vld [vmem:[#allocation101_spill] sm:$0xff] }
 0x3fa   : > { %v8006_v40 = vmul.f32 %v13816_v44, %v7967_v12  ;;  %v7890_v24 = vpop.f32.mrf.mxu0  ;;  %v7200_v0 = vadd.f32 %v14653_v56, %v6812_v43  ;;  %v7199_v3 = vadd.f32 %v14654_v16, %v6811_v37  ;;  %v6813_v54 = vadd.f32 %v14657_v30, %v14656_v61  ;;  %v14661_v43 = vld [vmem:[#allocation38_spill] sm:$0xff]  ;;  %v14663_v13 = vld [vmem:[#allocation37_spill] sm:$0xff]  ;;  %v14673_v61 = vld [vmem:[#allocation36_spill] sm:$0xff] }
 0x3fb   : > { %8140 = vst.msk [vmem:[%s13876_s23 + $0x88] sm:$0xff] %vm416_vm3, %v8108_v59  ;;  %v8107_v46 = vadd.f32 %v8075_v57, %v14652_v22  ;;  %v8078_v49 = vmax.f32 %v8046_v29, 0.0  ;;  %v8009_v9 = vmul.f32 %v13816_v44, %v7970_v45  ;;  %v7969_v53 = vadd.f32 %v7890_v24, %v7582_v39  ;;  %v14664_v45 = vld [vmem:[#allocation80_spill] sm:$0xff] }
 0x3fc   : > { %v8045_v48 = vadd.f32 %v13834_v31, %v8006_v40  ;;  %v10427_v52 = vpop.f32.mrf.mxu0  ;;  %v6816_v36 = vadd.f32 %v14659_v47, %v14658_v1  ;;  %v7202_v55 = vadd.f32 %v14660_v19, %v6814_v63  ;;  %v7587_v33 = vadd.f32 %v13985_v15, %v7200_v0  ;;  %v14666_v15 = vld [vmem:[#allocation42_spill] sm:$0xff]  ;;  %v7543_v63 = vpop.f32.mrf.mxu1 }
 0x3fd   : > { %8139 = vst.msk [vmem:[%s13876_s23 + $0x80] sm:$0xff] %vm416_vm3, %v8107_v46  ;;  %v8110_v38 = vadd.f32 %v8078_v49, %v14655_v25  ;;  %v8048_v8 = vadd.f32 %v13834_v31, %v8009_v9  ;;  %v8008_v11 = vmul.f32 %v13816_v44, %v7969_v53  ;;  %v7972_v23 = vadd.f32 %v10427_v52, %v7585_v18  ;;  %v14667_v18 = vld [vmem:[#allocation44_spill] sm:$0xff]  ;;  %v14668_v49 = vld [vmem:[#allocation83_spill] sm:$0xff] }
 0x3fe   : > { %v8077_v50 = vmax.f32 %v8045_v48, 0.0  ;;  %v7900_v62 = vpop.f32.mrf.mxu0  ;;  %v7586_v20 = vadd.f32 %v14005_v28, %v7199_v3  ;;  %v7201_v39 = vadd.f32 %v14661_v43, %v6813_v54  ;;  %v6815_v7 = vadd.f32 %v14665_v4, %v14664_v45  ;;  %v14669_v9 = vld [vmem:[#allocation123_spill] sm:$0xff]  ;;  %v10389_v48 = vpop.f32.mrf.mxu1  ;;  %v14672_v52 = vld [vmem:[#allocation52_spill] sm:$0xff] }
 0x3ff   : > { %8142 = vst.msk [vmem:[%s13876_s23 + $0x98] sm:$0xff] %vm416_vm3, %v8110_v38  ;;  %v8080_v2 = vmax.f32 %v8048_v8, 0.0  ;;  %v8047_v21 = vadd.f32 %v13834_v31, %v8008_v11  ;;  %v8011_v5 = vmul.f32 %v13816_v44, %v7972_v23  ;;  %v7971_v10 = vadd.f32 %v7900_v62, %v7584_v60  ;;  %v14671_v60 = vld [vmem:[#allocation86_spill] sm:$0xff]  ;;  %v14674_v54 = vld [vmem:[#allocation39_spill] sm:$0xff] }
 0x400   : > { %v8109_v35 = vadd.f32 %v8077_v50, %v14662_v26  ;;  %v10430_v12 = vpop.f32.mrf.mxu0  ;;  %v7589_v37 = vadd.f32 %v10383_v6, %v7202_v55  ;;  %v7204_v27 = vadd.f32 %v14666_v15, %v6816_v36  ;;  %v6818_v53 = vadd.f32 %v14669_v9, %v14668_v49  ;;  %v14670_v6 = vld [vmem:[#allocation124_spill] sm:$0xff]  ;;  %v14681_v9 = vld [vmem:[#allocation33_spill] sm:$0xff] }
 0x401   : > { %v8112_v17 = vadd.f32 %v8080_v2, %v14663_v13  ;;  %v8079_v59 = vmax.f32 %v8047_v21, 0.0  ;;  %v8050_v57 = vadd.f32 %v13834_v31, %v8011_v5  ;;  %v8010_v29 = vmul.f32 %v13816_v44, %v7971_v10  ;;  %v14676_v21 = vld [vmem:[#allocation43_spill] sm:$0xff] }
 0x402   : > { %8141 = vst.msk [vmem:[%s13876_s23 + $0x90] sm:$0xff] %vm416_vm3, %v8109_v35  ;;  %v7974_v28 = vadd.f32 %v10430_v12, %v7587_v33  ;;  %v7910_v51 = vpop.f32.mrf.mxu0  ;;  %v6817_v56 = vadd.f32 %v14671_v60, %v14670_v6  ;;  %v7588_v0 = vadd.f32 %v7533_v34, %v7201_v39  ;;  %v7591_v23 = vadd.f32 %v10386_v32, %v7204_v27  ;;  %v14675_v32 = vld [vmem:[#allocation28_spill] sm:$0xff] }
 0x403   : > { %8144 = vst.msk [vmem:[%s13876_s23 + $0xa8] sm:$0xff] %vm416_vm3, %v8112_v17  ;;  %v8111_v40 = vadd.f32 %v8079_v59, %v14667_v18  ;;  %v8082_v24 = vmax.f32 %v8050_v57, 0.0  ;;  %v8049_v22 = vadd.f32 %v13834_v31, %v8010_v29  ;;  %v7973_v46 = vadd.f32 %v7910_v51, %v7586_v20  ;;  %v7553_v20 = vpop.f32.mrf.mxu1  ;;  %v14678_v17 = vld [vmem:[#allocation41_spill] sm:$0xff] }
 0x404   : > { %v8013_v16 = vmul.f32 %v13816_v44, %v7974_v28  ;;  %v10433_v3 = vpop.f32.mrf.mxu0  ;;  %v7203_v30 = vadd.f32 %v14673_v61, %v6815_v7  ;;  %v7206_v1 = vadd.f32 %v14674_v54, %v6818_v53  ;;  %v968_v62 = vadd.f32 %v13672_v41, %v13809_v58  ;;  %v14677_v58 = vld [vmem:[#allocation30_spill] sm:$0xff]  ;;  %v14679_v29 = vld [vmem:[#allocation45_spill] sm:$0xff] }
 0x405   : > { %8143 = vst.msk [vmem:[%s13876_s23 + $0xa0] sm:$0xff] %vm416_vm3, %v8111_v40  ;;  %v8114_v25 = vadd.f32 %v8082_v24, %v14672_v52  ;;  %v8081_v38 = vmax.f32 %v8049_v22, 0.0  ;;  %v8012_v8 = vmul.f32 %v13816_v44, %v7973_v46  ;;  %v7976_v11 = vadd.f32 %v10433_v3, %v7589_v37  ;;  %v14680_v46 = vld [vmem:[#allocation31_spill] sm:$0xff] }
 0x406   : > { %v8052_v34 = vadd.f32 %v13834_v31, %v8013_v16  ;;  %v7920_v47 = vpop.f32.mrf.mxu0  ;;  %v928_v2 = vmul.f32 %v13653_v14, %v14675_v32  ;;  %v7205_v5 = vadd.f32 %v14676_v21, %v6817_v56  ;;  %v931_v35 = vmul.f32 %v14677_v58, %v13653_v14  ;;  %v14682_v52 = vld [vmem:[#allocation35_spill] sm:$0xff] }
 0x407   : > { %8146 = vst.msk [vmem:[%s13876_s23 + $0xb8] sm:$0xff] %vm416_vm3, %v8114_v25  ;;  %v8113_v36 = vadd.f32 %v8081_v38, %v13780_v42  ;;  %v8051_v19 = vadd.f32 %v13834_v31, %v8012_v8  ;;  %v8015_v55 = vmul.f32 %v13816_v44, %v7976_v11  ;;  %v7975_v50 = vadd.f32 %v7920_v47, %v7588_v0 }
 0x408   : > { %v8084_v10 = vmax.f32 %v8052_v34, 0.0  ;;  %v10436_v33 = vpop.f32.mrf.mxu0  ;;  %v7590_v12 = vadd.f32 %v7543_v63, %v7203_v30  ;;  %v7593_v13 = vadd.f32 %v10389_v48, %v7206_v1  ;;  %v967_v15 = vadd.f32 %v13672_v41, %v928_v2 }
 0x409   : > { %8145 = vst.msk [vmem:[%s13876_s23 + $0xb0] sm:$0xff] %vm416_vm3, %v8113_v36  ;;  %v8083_v42 = vmax.f32 %v8051_v19, 0.0  ;;  %v8054_v43 = vadd.f32 %v13834_v31, %v8015_v55  ;;  %v8014_v39 = vmul.f32 %v13816_v44, %v7975_v50  ;;  %v7978_v26 = vadd.f32 %v10436_v33, %v7591_v23 }
 0x40a   : > { %v8116_v59 = vadd.f32 %v8084_v10, %v14678_v17  ;;  %v7930_v57 = vpop.f32.mrf.mxu0  ;;  %v7592_v27 = vadd.f32 %v7553_v20, %v7205_v5  ;;  %v970_v22 = vadd.f32 %v13672_v41, %v931_v35  ;;  %v930_v49 = vmul.f32 %v13653_v14, %v14680_v46 }
 0x40b   : > { %v8115_v45 = vadd.f32 %v8083_v42, %v14679_v29  ;;  %v8086_v4 = vmax.f32 %v8054_v43, 0.0  ;;  %v8053_v7 = vadd.f32 %v13834_v31, %v8014_v39  ;;  %v8017_v37 = vmul.f32 %v13816_v44, %v7978_v26 }
 0x40c   : > { %8148 = vst.msk [vmem:[%s13876_s23 + $0xc8] sm:$0xff] %vm416_vm3, %v8116_v59  ;;  %v7977_v28 = vadd.f32 %v7930_v57, %v7590_v12  ;;  %v10439_v51 = vpop.f32.mrf.mxu0  ;;  %v933_v53 = vmul.f32 %v14681_v9, %v13653_v14  ;;  %v932_v25 = vmul.f32 %v13653_v14, %v14682_v52  ;;  %v969_v23 = vadd.f32 %v13672_v41, %v930_v49 }
 0x40d   : > { %8147 = vst.msk [vmem:[%s13876_s23 + $0xc0] sm:$0xff] %vm416_vm3, %v8115_v45  ;;  %v8118_v63 = vadd.f32 %v8086_v4, %v968_v62  ;;  %v8085_v18 = vmax.f32 %v8053_v7, 0.0  ;;  %v8056_v40 = vadd.f32 %v13834_v31, %v8017_v37  ;;  %v7980_v24 = vadd.f32 %v10439_v51, %v7593_v13 }
 0x40e   : > { %v8016_v6 = vmul.f32 %v13816_v44, %v7977_v28  ;;  %v7940_v60 = vpop.f32.mrf.mxu0  ;;  %v972_v30 = vadd.f32 %v13672_v41, %v933_v53  ;;  %v971_v34 = vadd.f32 %v13672_v41, %v932_v25 }
 0x40f   : > { %8150 = vst.msk [vmem:[%s13876_s23 + $0xd8] sm:$0xff] %vm416_vm3, %v8118_v63  ;;  %v8117_v56 = vadd.f32 %v8085_v18, %v967_v15  ;;  %v8088_v0 = vmax.f32 %v8056_v40, 0.0  ;;  %v8019_v16 = vmul.f32 %v13816_v44, %v7980_v24  ;;  %v7979_v3 = vadd.f32 %v7940_v60, %v7592_v27 }
 0x410   : > { %v8055_v48 = vadd.f32 %v13834_v31, %v8016_v6 }
 0x411   : > { %8149 = vst.msk [vmem:[%s13876_s23 + $0xd0] sm:$0xff] %vm416_vm3, %v8117_v56  ;;  %v8120_v38 = vadd.f32 %v8088_v0, %v970_v22  ;;  %v8058_v8 = vadd.f32 %v13834_v31, %v8019_v16  ;;  %v8018_v11 = vmul.f32 %v13816_v44, %v7979_v3 }
 0x412   : > { %v8087_v61 = vmax.f32 %v8055_v48, 0.0 }
 0x413   : > { %8152 = vst.msk [vmem:[%s13876_s23 + $0xe8] sm:$0xff] %vm416_vm3, %v8120_v38  ;;  %v8090_v54 = vmax.f32 %v8058_v8, 0.0  ;;  %v8057_v1 = vadd.f32 %v13834_v31, %v8018_v11 }
 0x414   : > { %v8119_v14 = vadd.f32 %v8087_v61, %v969_v23 }
 0x415   : > { %v8122_v47 = vadd.f32 %v8090_v54, %v972_v30  ;;  %v8089_v36 = vmax.f32 %v8057_v1, 0.0 }
 0x416   : > { %8151 = vst.msk [vmem:[%s13876_s23 + $0xe0] sm:$0xff] %vm416_vm3, %v8119_v14 }
 0x417   : > { %8154 = vst.msk [vmem:[%s13876_s23 + $0xf8] sm:$0xff] %vm416_vm3, %v8122_v47  ;;  %v8121_v44 = vadd.f32 %v8089_v36, %v971_v34 }
 0x419   : > { %8153 = vst.msk [vmem:[%s13876_s23 + $0xf0] sm:$0xff] %vm416_vm3, %v8121_v44 }
 0x41a PF: > { %s20_s13 = sadd.s32 1, %s10458_s13  }
 0x41b   : > { %p17_p4 = scmp.ge.s32.totalorder %s20_s13, 4  }
 0x41d   :  { %19 = sbr.rel (!%p17_p4) target bundleno = 1 (0x1), region = 110 }

</bundles_post_ra>
